<compile_context>
chip_gen: v7x
topology: tpu7x:2x2x1
jax: 0.10.0
libtpu: 0.0.40
codegen_flags: <defaults>
</compile_context>

<pallas_src>
import functools

import jax
import jax.numpy as jnp
from jax.experimental import pallas as pl
from jax.experimental.pallas import tpu as pltpu


# ----------------------------- Pallas kernels ------------------------------ #

def _conv_act_kernel(a_ref, w_ref, b_ref, o_ref, *, act):
    """o = act(w @ a + b).

    w:(Cout,K) bf16, a:(K,TILE_M) bf16, b:(Cout,1) f32, o:(Cout,TILE_M).
    Transposed GEMM: the pixel dimension is last -> lane-dense stores.
    """
    y = jnp.dot(w_ref[...], a_ref[...], preferred_element_type=jnp.float32)
    y = y + b_ref[...]
    if act == "relu":
        y = jnp.maximum(y, 0.0)
    elif act == "sigmoid":
        y = jax.nn.sigmoid(y)
    o_ref[...] = y.astype(o_ref.dtype)


def _conv_relu_pool_kernel(a_ref, w_ref, b_ref, o_ref, acc_ref):
    """Fused Conv2d + ReLU + MaxPool2d(2).

    grid = (pixel tiles, 4 pooling-window members); the member axis is a
    reduction: acc = max_m relu(w @ a_m + b); written out on the last member.
    """
    m = pl.program_id(1)
    y = jnp.dot(w_ref[...], a_ref[...], preferred_element_type=jnp.float32)
    y = jnp.maximum(y + b_ref[...], 0.0)

    @pl.when(m == 0)
    def _():
        acc_ref[...] = y

    @pl.when(m > 0)
    def _():
        acc_ref[...] = jnp.maximum(acc_ref[...], y)

    @pl.when(m == pl.num_programs(1) - 1)
    def _():
        o_ref[...] = acc_ref[...].astype(o_ref.dtype)


def _attn_gate_kernel(a_ref, w_ref, b_ref, g_ref, o_ref):
    """o = g * sigmoid(w @ a + b)   (Attention_stage6 surrogate, fused)."""
    y = jnp.dot(w_ref[...], a_ref[...], preferred_element_type=jnp.float32)
    gate = jax.nn.sigmoid(y + b_ref[...])
    o_ref[...] = (g_ref[...].astype(jnp.float32) * gate).astype(o_ref.dtype)


# ------------------------------ layout helpers ------------------------------ #

def _round_up(x, m):
    return (x + m - 1) // m * m


def _choose_tile(m, k, cout, budget_bytes=8 * 1024 * 1024):
    """Largest pixel tile (multiple of 128) whose double-buffered bf16
    activation+output blocks stay well inside the scoped-VMEM default
    (32 MiB; only 64 MiB physical VMEM on v7x)."""
    tile = 512
    while tile > 128 and 2 * 2 * tile * (k + cout) > budget_bytes:
        tile //= 2
    return min(tile, _round_up(m, 128))


def _weight_t(w):
    """(Cout,Cin,KH,KW) -> (Cout, KH*KW*Cin), matching _im2col_t row order."""
    cout, cin, kh, kw = w.shape
    return jnp.transpose(w, (0, 2, 3, 1)).reshape(cout, kh * kw * cin)


def _im2col_t(x, ksize, padding):
    """x:(C,N,H,W) -> transposed patch matrix (K, N*H*W), K = k*k*C."""
    c, n, h, w = x.shape
    if ksize == 1 and padding == 0:
        return x.reshape(c, n * h * w)
    xp = jnp.pad(x, ((0, 0), (0, 0), (padding, padding), (padding, padding)))
    taps = []
    for kh in range(ksize):
        for kw in range(ksize):
            taps.append(xp[:, :, kh:kh + h, kw:kw + w])     # (C,N,H,W)
    pat = jnp.stack(taps, axis=0)                           # (k*k,C,N,H,W)
    return pat.reshape(ksize * ksize * c, n * h * w)


def _group_pool_members(at, n, h, w):
    """(K, N*H*W) -> (4, K, N*(H//2)*(W//2)): the 4 elements of every 2x2
    pooling window move to a leading axis that becomes a reduction grid axis."""
    k_dim = at.shape[0]
    ho, wo = h // 2, w // 2
    a = at.reshape(k_dim, n, ho, 2, wo, 2)
    a = a.transpose(3, 5, 0, 1, 2, 4)                       # (2,2,K,N,Ho,Wo)
    return a.reshape(4, k_dim, n * ho * wo)


# ------------------------------ conv wrappers ------------------------------- #

def conv_act(x, w, b, ksize, padding, act=None, out_dtype=jnp.bfloat16):
    """Conv2d (stride=1) + optional activation.  x:(Cin,N,H,W) -> (Cout,N,H,W)."""
    cin, n, h, wd = x.shape
    cout = w.shape[0]
    at = _im2col_t(x, ksize, padding)                       # (K, M)
    kdim, m = at.shape
    tile = _choose_tile(m, kdim, cout)
    m_pad = _round_up(m, tile)
    if m_pad != m:
        at = jnp.pad(at, ((0, 0), (0, m_pad - m)))
    at = at.astype(jnp.bfloat16)
    wt = _weight_t(w).astype(jnp.bfloat16)
    b2 = b.reshape(cout, 1).astype(jnp.float32)

    out = pl.pallas_call(
        functools.partial(_conv_act_kernel, act=act),
        out_shape=jax.ShapeDtypeStruct((cout, m_pad), out_dtype),
        grid_spec=pltpu.PrefetchScalarGridSpec(
            num_scalar_prefetch=0,
            grid=(m_pad // tile,),
            in_specs=[
                pl.BlockSpec((kdim, tile), lambda i: (0, i)),
                pl.BlockSpec((cout, kdim), lambda i: (0, 0)),
                pl.BlockSpec((cout, 1), lambda i: (0, 0)),
            ],
            out_specs=pl.BlockSpec((cout, tile), lambda i: (0, i)),
        ),
        compiler_params=pltpu.CompilerParams(
            dimension_semantics=("parallel",)),
    )(at, wt, b2)
    return out[:, :m].reshape(cout, n, h, wd)


def conv_relu_pool(x, w, b, ksize, padding):
    """Fused Conv2d + ReLU + MaxPool2d(2).  x:(Cin,N,H,W) -> (Cout,N,H//2,W//2)."""
    cin, n, h, wd = x.shape
    cout = w.shape[0]
    at = _im2col_t(x, ksize, padding)                       # (K, N*H*W)
    kdim = at.shape[0]
    a4 = _group_pool_members(at, n, h, wd)                  # (4, K, Mp)
    mp = a4.shape[-1]
    tile = _choose_tile(mp, kdim, cout)
    mp_pad = _round_up(mp, tile)
    if mp_pad != mp:
        a4 = jnp.pad(a4, ((0, 0), (0, 0), (0, mp_pad - mp)))
    a4 = a4.astype(jnp.bfloat16)
    wt = _weight_t(w).astype(jnp.bfloat16)
    b2 = b.reshape(cout, 1).astype(jnp.float32)

    out = pl.pallas_call(
        _conv_relu_pool_kernel,
        out_shape=jax.ShapeDtypeStruct((cout, mp_pad), jnp.bfloat16),
        grid_spec=pltpu.PrefetchScalarGridSpec(
            num_scalar_prefetch=0,
            grid=(mp_pad // tile, 4),
            in_specs=[
                pl.BlockSpec((None, kdim, tile), lambda i, m: (m, 0, i)),
                pl.BlockSpec((cout, kdim), lambda i, m: (0, 0)),
                pl.BlockSpec((cout, 1), lambda i, m: (0, 0)),
            ],
            out_specs=pl.BlockSpec((cout, tile), lambda i, m: (0, i)),
            scratch_shapes=[pltpu.VMEM((cout, tile), jnp.float32)],
        ),
        compiler_params=pltpu.CompilerParams(
            dimension_semantics=("parallel", "arbitrary")),
    )(a4, wt, b2)
    return out[:, :mp].reshape(cout, n, h // 2, wd // 2)


def attention_stage6(x, w, b, ksize, padding):
    """Surrogate Attention_stage6: x * sigmoid(conv(x)) (see TODO at top)."""
    c, n, h, wd = x.shape
    at = _im2col_t(x, ksize, padding)
    kdim, m = at.shape
    g = x.reshape(c, m)
    tile = _choose_tile(m, kdim + c, c)
    m_pad = _round_up(m, tile)
    if m_pad != m:
        at = jnp.pad(at, ((0, 0), (0, m_pad - m)))
        g = jnp.pad(g, ((0, 0), (0, m_pad - m)))
    at = at.astype(jnp.bfloat16)
    g = g.astype(jnp.bfloat16)
    wt = _weight_t(w).astype(jnp.bfloat16)
    b2 = b.reshape(c, 1).astype(jnp.float32)

    out = pl.pallas_call(
        _attn_gate_kernel,
        out_shape=jax.ShapeDtypeStruct((c, m_pad), jnp.bfloat16),
        grid_spec=pltpu.PrefetchScalarGridSpec(
            num_scalar_prefetch=0,
            grid=(m_pad // tile,),
            in_specs=[
                pl.BlockSpec((kdim, tile), lambda i: (0, i)),
                pl.BlockSpec((c, kdim), lambda i: (0, 0)),
                pl.BlockSpec((c, 1), lambda i: (0, 0)),
                pl.BlockSpec((c, tile), lambda i: (0, i)),
            ],
            out_specs=pl.BlockSpec((c, tile), lambda i: (0, i)),
        ),
        compiler_params=pltpu.CompilerParams(
            dimension_semantics=("parallel",)),
    )(at, wt, b2, g)
    return out[:, :m].reshape(c, n, h, wd)


# -------------------------------- forward ----------------------------------- #

def _pad_kernel_to(w, k_target):
    """Zero-pad a (Cout,Cin,k,k) kernel to k_target (keeps the conv identical
    when the conv padding grows by (k_target-k)//2)."""
    k = w.shape[-1]
    p = (k_target - k) // 2
    if p == 0:
        return w
    return jnp.pad(w, ((0, 0), (0, 0), (p, p), (p, p)))


def _branch_tail(x, p, ksizes):
    k2, k3, katt, k4 = ksizes
    x = conv_relu_pool(x, p["c2_w"], p["c2_b"], k2, k2 // 2)
    x = conv_act(x, p["c3_w"], p["c3_b"], k3, k3 // 2, act="relu")
    x = attention_stage6(x, p["att_w"], p["att_b"], katt, katt // 2)
    x = conv_act(x, p["c4_w"], p["c4_b"], k4, k4 // 2, act="relu")
    return x


def attention_mcnn_forward(img_nchw, params):
    # NCHW -> (C, N, H, W): pixel index is the minor (lane) dimension of every
    # kernel output, so all stores are lane-dense; back to NCHW at the end.
    x = jnp.transpose(img_nchw, (1, 0, 2, 3))

    # Merge stage 1 of all three branches (they consume the same image):
    # 7x7 and 5x5 kernels zero-padded to 9x9 == original padding=3/2 convs.
    w1 = jnp.concatenate(
        [params["b1"]["c1_w"],
         _pad_kernel_to(params["b2"]["c1_w"], 9),
         _pad_kernel_to(params["b3"]["c1_w"], 9)], axis=0)       # (60,3,9,9)
    b1 = jnp.concatenate(
        [params["b1"]["c1_b"], params["b2"]["c1_b"], params["b3"]["c1_b"]])
    y = conv_relu_pool(x, w1, b1, 9, 4)                          # (60,N,H/2,W/2)
    x1, x2, x3 = y[:16], y[16:36], y[36:60]

    x1 = _branch_tail(x1, params["b1"], (7, 7, 7, 7))
    x2 = _branch_tail(x2, params["b2"], (5, 5, 5, 5))
    x3 = _branch_tail(x3, params["b3"], (3, 3, 3, 3))

    cat = jnp.concatenate([x1, x2, x3], axis=0)    # channel concat == torch.cat(dim=1)
    out = conv_act(cat, params["fuse_w"], params["fuse_b"], 1, 0,
                   act=None, out_dtype=jnp.float32)              # (1,N,H/4,W/4)
    return jnp.transpose(out, (1, 0, 2, 3))                      # NCHW


# --------------------------- parameter creation ----------------------------- #

def _init_conv(key, cout, cin, k):
    # nn.init.normal_(weight, std=0.01); bias = 0  (matches _initialize_weights)
    w = 0.01 * jax.random.normal(key, (cout, cin, k, k), dtype=jnp.float32)
    b = jnp.zeros((cout,), dtype=jnp.float32)
    return w, b


def init_params(key):
    keys = iter(jax.random.split(key, 32))

    def branch(chs, ksizes):
        c1, c2, c3, c4 = chs
        k1, k2, k3, katt, k4 = ksizes
        p = {}
        p["c1_w"], p["c1_b"] = _init_conv(next(keys), c1, 3, k1)
        p["c2_w"], p["c2_b"] = _init_conv(next(keys), c2, c1, k2)
        p["c3_w"], p["c3_b"] = _init_conv(next(keys), c3, c2, k3)
        p["att_w"], p["att_b"] = _init_conv(next(keys), c3, c3, katt)
        p["c4_w"], p["c4_b"] = _init_conv(next(keys), c4, c3, k4)
        return p

    params = {
        "b1": branch((16, 32, 16, 8), (9, 7, 7, 7, 7)),
        "b2": branch((20, 40, 20, 10), (7, 5, 5, 5, 5)),
        "b3": branch((24, 48, 24, 12), (5, 3, 3, 3, 3)),
    }
    params["fuse_w"], params["fuse_b"] = _init_conv(next(keys), 1, 30, 1)
    return params


# ----------------------------------- main ----------------------------------- #

if __name__ == "__main__":
    key = jax.random.PRNGKey(0)
    pkey, xkey = jax.random.split(key)
    params = init_params(pkey)

    # small shapes consistent with the module: batch=2, RGB, 16x16 spatial
    img = jax.random.normal(xkey, (2, 3, 16, 16), dtype=jnp.float32)

    fwd = jax.jit(attention_mcnn_forward)
    out = fwd(img, params)
    out = jax.block_until_ready(out)

    assert out.shape == (2, 1, 4, 4), out.shape
    assert out.dtype == jnp.float32
    print("KERNEL_OK")
</pallas_src>

<mosaic_0001>
module attributes {stable_mosaic.version = 11 : i64} {
  func.func @_conv_relu_pool_kernel(%arg0: i32, %arg1: i32, %arg2: memref<1x243x128xbf16, #tpu.memory_space<vmem>>, %arg3: memref<60x243xbf16, #tpu.memory_space<vmem>>, %arg4: memref<60x1xf32, #tpu.memory_space<vmem>>, %arg5: memref<60x128xbf16, #tpu.memory_space<vmem>>, %arg6: memref<60x128xf32, #tpu.memory_space<vmem>>) attributes {dimension_semantics = [#tpu.dimension_semantics<parallel>, #tpu.dimension_semantics<arbitrary>], iteration_bounds = array<i64: 1, 4>, scalar_prefetch = 0 : i64, scratch_operands = 1 : i64, tpu.core_type = #tpu.core_type<tc>, window_params = [{transform_indices = @transform_0, window_bounds = array<i64: 1, 243, 128>}, {pipeline_mode = #tpu.pipeline_mode<synchronous>, transform_indices = @transform_1, window_bounds = array<i64: 60, 243>}, {pipeline_mode = #tpu.pipeline_mode<synchronous>, transform_indices = @transform_2, window_bounds = array<i64: 60, 1>}, {transform_indices = @transform_3, window_bounds = array<i64: 60, 128>}]} {
    %c0 = arith.constant 0 : index
    %c0_0 = arith.constant 0 : index
    %0 = vector.load %arg3[%c0, %c0_0] : memref<60x243xbf16, #tpu.memory_space<vmem>>, vector<60x243xbf16>
    %c0_1 = arith.constant 0 : index
    %c0_2 = arith.constant 0 : index
    %c0_3 = arith.constant 0 : index
    %1 = vector.load %arg2[%c0_1, %c0_2, %c0_3] : memref<1x243x128xbf16, #tpu.memory_space<vmem>>, vector<1x243x128xbf16>
    %2 = vector.shape_cast %1 : vector<1x243x128xbf16> to vector<243x128xbf16>
    %cst = arith.constant dense<0.000000e+00> : vector<60x128xf32>
    %3 = tpu.matmul %0, %2, %cst {dimension_numbers = #tpu.dot_dimension_numbers<[1], [0], [0], [1], [0, 0, 1, 1], [], []>} : vector<60x243xbf16>, vector<243x128xbf16>, vector<60x128xf32> -> vector<60x128xf32>
    %c0_4 = arith.constant 0 : index
    %c0_5 = arith.constant 0 : index
    %4 = vector.load %arg4[%c0_4, %c0_5] : memref<60x1xf32, #tpu.memory_space<vmem>>, vector<60x1xf32>
    %5 = vector.broadcast %4 : vector<60x1xf32> to vector<60x128xf32>
    %6 = arith.addf %3, %5 : vector<60x128xf32>
    %cst_6 = arith.constant 0.000000e+00 : f32
    %7 = vector.broadcast %cst_6 : f32 to vector<60x128xf32>
    %8 = arith.maximumf %6, %7 : vector<60x128xf32>
    %c0_i32 = arith.constant 0 : i32
    %9 = arith.cmpi eq, %arg1, %c0_i32 : i32
    %10 = arith.extui %9 : i1 to i32
    %c0_i32_7 = arith.constant 0 : i32
    %11 = arith.cmpi ne, %10, %c0_i32_7 : i32
    scf.if %11 {
      %c0_11 = arith.constant 0 : index
      %c0_12 = arith.constant 0 : index
      %18 = vector.load %arg6[%c0_11, %c0_12] : memref<60x128xf32, #tpu.memory_space<vmem>>, vector<60x128xf32>
      tpu.vector_store %arg6[%c0_11, %c0_12], %8 {strides = array<i32>} : memref<60x128xf32, #tpu.memory_space<vmem>>, vector<60x128xf32>,
    } else {
    }
    %c0_i32_8 = arith.constant 0 : i32
    %12 = arith.cmpi sgt, %arg1, %c0_i32_8 : i32
    %13 = arith.extui %12 : i1 to i32
    %c0_i32_9 = arith.constant 0 : i32
    %14 = arith.cmpi ne, %13, %c0_i32_9 : i32
    scf.if %14 {
      %c0_11 = arith.constant 0 : index
      %c0_12 = arith.constant 0 : index
      %18 = vector.load %arg6[%c0_11, %c0_12] : memref<60x128xf32, #tpu.memory_space<vmem>>, vector<60x128xf32>
      %19 = arith.maximumf %18, %8 : vector<60x128xf32>
      %c0_13 = arith.constant 0 : index
      %c0_14 = arith.constant 0 : index
      %20 = vector.load %arg6[%c0_13, %c0_14] : memref<60x128xf32, #tpu.memory_space<vmem>>, vector<60x128xf32>
      tpu.vector_store %arg6[%c0_13, %c0_14], %19 {strides = array<i32>} : memref<60x128xf32, #tpu.memory_space<vmem>>, vector<60x128xf32>,
    } else {
    }
    %c3_i32 = arith.constant 3 : i32
    %15 = arith.cmpi eq, %arg1, %c3_i32 : i32
    %16 = arith.extui %15 : i1 to i32
    %c0_i32_10 = arith.constant 0 : i32
    %17 = arith.cmpi ne, %16, %c0_i32_10 : i32
    scf.if %17 {
      %c0_11 = arith.constant 0 : index
      %c0_12 = arith.constant 0 : index
      %18 = vector.load %arg6[%c0_11, %c0_12] : memref<60x128xf32, #tpu.memory_space<vmem>>, vector<60x128xf32>
      %19 = arith.truncf %18 : vector<60x128xf32> to vector<60x128xbf16>
      %c0_13 = arith.constant 0 : index
      %c0_14 = arith.constant 0 : index
      %20 = vector.load %arg5[%c0_13, %c0_14] : memref<60x128xbf16, #tpu.memory_space<vmem>>, vector<60x128xbf16>
      tpu.vector_store %arg5[%c0_13, %c0_14], %19 {strides = array<i32>} : memref<60x128xbf16, #tpu.memory_space<vmem>>, vector<60x128xbf16>,
    } else {
    }
    return
  }
  func.func @transform_0(%arg0: i32, %arg1: i32) -> (i32, i32, i32) {
    %c0_i32 = arith.constant 0 : i32
    %c0_i32_0 = arith.constant 0 : i32
    return %arg1, %c0_i32, %arg0 : i32, i32, i32
  }
  func.func @transform_1(%arg0: i32, %arg1: i32) -> (i32, i32) {
    %c0_i32 = arith.constant 0 : i32
    %c0_i32_0 = arith.constant 0 : i32
    %c0_i32_1 = arith.constant 0 : i32
    return %c0_i32, %c0_i32_0 : i32, i32
  }
  func.func @transform_2(%arg0: i32, %arg1: i32) -> (i32, i32) {
    %c0_i32 = arith.constant 0 : i32
    %c0_i32_0 = arith.constant 0 : i32
    %c0_i32_1 = arith.constant 0 : i32
    return %c0_i32, %c0_i32_0 : i32, i32
  }
  func.func @transform_3(%arg0: i32, %arg1: i32) -> (i32, i32) {
    %c0_i32 = arith.constant 0 : i32
    %c0_i32_0 = arith.constant 0 : i32
    return %c0_i32, %arg0 : i32, i32
  }
}

module attributes {stable_mosaic.version = 11 : i64} {
  func.func @_conv_relu_pool_kernel(%arg0: i32, %arg1: i32, %arg2: memref<1x784x128xbf16, #tpu.memory_space<vmem>>, %arg3: memref<32x784xbf16, #tpu.memory_space<vmem>>, %arg4: memref<32x1xf32, #tpu.memory_space<vmem>>, %arg5: memref<32x128xbf16, #tpu.memory_space<vmem>>, %arg6: memref<32x128xf32, #tpu.memory_space<vmem>>) attributes {dimension_semantics = [#tpu.dimension_semantics<parallel>, #tpu.dimension_semantics<arbitrary>], iteration_bounds = array<i64: 1, 4>, scalar_prefetch = 0 : i64, scratch_operands = 1 : i64, tpu.core_type = #tpu.core_type<tc>, window_params = [{transform_indices = @transform_0, window_bounds = array<i64: 1, 784, 128>}, {pipeline_mode = #tpu.pipeline_mode<synchronous>, transform_indices = @transform_1, window_bounds = array<i64: 32, 784>}, {pipeline_mode = #tpu.pipeline_mode<synchronous>, transform_indices = @transform_2, window_bounds = array<i64: 32, 1>}, {transform_indices = @transform_3, window_bounds = array<i64: 32, 128>}]} {
    %c0 = arith.constant 0 : index
    %c0_0 = arith.constant 0 : index
    %0 = vector.load %arg3[%c0, %c0_0] : memref<32x784xbf16, #tpu.memory_space<vmem>>, vector<32x784xbf16>
    %c0_1 = arith.constant 0 : index
    %c0_2 = arith.constant 0 : index
    %c0_3 = arith.constant 0 : index
    %1 = vector.load %arg2[%c0_1, %c0_2, %c0_3] : memref<1x784x128xbf16, #tpu.memory_space<vmem>>, vector<1x784x128xbf16>
    %2 = vector.shape_cast %1 : vector<1x784x128xbf16> to vector<784x128xbf16>
    %cst = arith.constant dense<0.000000e+00> : vector<32x128xf32>
    %3 = tpu.matmul %0, %2, %cst {dimension_numbers = #tpu.dot_dimension_numbers<[1], [0], [0], [1], [0, 0, 1, 1], [], []>} : vector<32x784xbf16>, vector<784x128xbf16>, vector<32x128xf32> -> vector<32x128xf32>
    %c0_4 = arith.constant 0 : index
    %c0_5 = arith.constant 0 : index
    %4 = vector.load %arg4[%c0_4, %c0_5] : memref<32x1xf32, #tpu.memory_space<vmem>>, vector<32x1xf32>
    %5 = vector.broadcast %4 : vector<32x1xf32> to vector<32x128xf32>
    %6 = arith.addf %3, %5 : vector<32x128xf32>
    %cst_6 = arith.constant 0.000000e+00 : f32
    %7 = vector.broadcast %cst_6 : f32 to vector<32x128xf32>
    %8 = arith.maximumf %6, %7 : vector<32x128xf32>
    %c0_i32 = arith.constant 0 : i32
    %9 = arith.cmpi eq, %arg1, %c0_i32 : i32
    %10 = arith.extui %9 : i1 to i32
    %c0_i32_7 = arith.constant 0 : i32
    %11 = arith.cmpi ne, %10, %c0_i32_7 : i32
    scf.if %11 {
      %c0_11 = arith.constant 0 : index
      %c0_12 = arith.constant 0 : index
      %18 = vector.load %arg6[%c0_11, %c0_12] : memref<32x128xf32, #tpu.memory_space<vmem>>, vector<32x128xf32>
      tpu.vector_store %arg6[%c0_11, %c0_12], %8 {strides = array<i32>} : memref<32x128xf32, #tpu.memory_space<vmem>>, vector<32x128xf32>,
    } else {
    }
    %c0_i32_8 = arith.constant 0 : i32
    %12 = arith.cmpi sgt, %arg1, %c0_i32_8 : i32
    %13 = arith.extui %12 : i1 to i32
    %c0_i32_9 = arith.constant 0 : i32
    %14 = arith.cmpi ne, %13, %c0_i32_9 : i32
    scf.if %14 {
      %c0_11 = arith.constant 0 : index
      %c0_12 = arith.constant 0 : index
      %18 = vector.load %arg6[%c0_11, %c0_12] : memref<32x128xf32, #tpu.memory_space<vmem>>, vector<32x128xf32>
      %19 = arith.maximumf %18, %8 : vector<32x128xf32>
      %c0_13 = arith.constant 0 : index
      %c0_14 = arith.constant 0 : index
      %20 = vector.load %arg6[%c0_13, %c0_14] : memref<32x128xf32, #tpu.memory_space<vmem>>, vector<32x128xf32>
      tpu.vector_store %arg6[%c0_13, %c0_14], %19 {strides = array<i32>} : memref<32x128xf32, #tpu.memory_space<vmem>>, vector<32x128xf32>,
    } else {
    }
    %c3_i32 = arith.constant 3 : i32
    %15 = arith.cmpi eq, %arg1, %c3_i32 : i32
    %16 = arith.extui %15 : i1 to i32
    %c0_i32_10 = arith.constant 0 : i32
    %17 = arith.cmpi ne, %16, %c0_i32_10 : i32
    scf.if %17 {
      %c0_11 = arith.constant 0 : index
      %c0_12 = arith.constant 0 : index
      %18 = vector.load %arg6[%c0_11, %c0_12] : memref<32x128xf32, #tpu.memory_space<vmem>>, vector<32x128xf32>
      %19 = arith.truncf %18 : vector<32x128xf32> to vector<32x128xbf16>
      %c0_13 = arith.constant 0 : index
      %c0_14 = arith.constant 0 : index
      %20 = vector.load %arg5[%c0_13, %c0_14] : memref<32x128xbf16, #tpu.memory_space<vmem>>, vector<32x128xbf16>
      tpu.vector_store %arg5[%c0_13, %c0_14], %19 {strides = array<i32>} : memref<32x128xbf16, #tpu.memory_space<vmem>>, vector<32x128xbf16>,
    } else {
    }
    return
  }
  func.func @transform_0(%arg0: i32, %arg1: i32) -> (i32, i32, i32) {
    %c0_i32 = arith.constant 0 : i32
    %c0_i32_0 = arith.constant 0 : i32
    return %arg1, %c0_i32, %arg0 : i32, i32, i32
  }
  func.func @transform_1(%arg0: i32, %arg1: i32) -> (i32, i32) {
    %c0_i32 = arith.constant 0 : i32
    %c0_i32_0 = arith.constant 0 : i32
    %c0_i32_1 = arith.constant 0 : i32
    return %c0_i32, %c0_i32_0 : i32, i32
  }
  func.func @transform_2(%arg0: i32, %arg1: i32) -> (i32, i32) {
    %c0_i32 = arith.constant 0 : i32
    %c0_i32_0 = arith.constant 0 : i32
    %c0_i32_1 = arith.constant 0 : i32
    return %c0_i32, %c0_i32_0 : i32, i32
  }
  func.func @transform_3(%arg0: i32, %arg1: i32) -> (i32, i32) {
    %c0_i32 = arith.constant 0 : i32
    %c0_i32_0 = arith.constant 0 : i32
    return %c0_i32, %arg0 : i32, i32
  }
}

module attributes {stable_mosaic.version = 11 : i64} {
  func.func @_conv_act_kernel(%arg0: i32, %arg1: memref<1568x128xbf16, #tpu.memory_space<vmem>>, %arg2: memref<16x1568xbf16, #tpu.memory_space<vmem>>, %arg3: memref<16x1xf32, #tpu.memory_space<vmem>>, %arg4: memref<16x128xbf16, #tpu.memory_space<vmem>>) attributes {dimension_semantics = [#tpu.dimension_semantics<parallel>], iteration_bounds = array<i64: 1>, scalar_prefetch = 0 : i64, scratch_operands = 0 : i64, tpu.core_type = #tpu.core_type<tc>, window_params = [{transform_indices = @transform_0, window_bounds = array<i64: 1568, 128>}, {pipeline_mode = #tpu.pipeline_mode<synchronous>, transform_indices = @transform_1, window_bounds = array<i64: 16, 1568>}, {pipeline_mode = #tpu.pipeline_mode<synchronous>, transform_indices = @transform_2, window_bounds = array<i64: 16, 1>}, {transform_indices = @transform_3, window_bounds = array<i64: 16, 128>}]} {
    %c0 = arith.constant 0 : index
    %c0_0 = arith.constant 0 : index
    %0 = vector.load %arg2[%c0, %c0_0] : memref<16x1568xbf16, #tpu.memory_space<vmem>>, vector<16x1568xbf16>
    %c0_1 = arith.constant 0 : index
    %c0_2 = arith.constant 0 : index
    %1 = vector.load %arg1[%c0_1, %c0_2] : memref<1568x128xbf16, #tpu.memory_space<vmem>>, vector<1568x128xbf16>
    %cst = arith.constant dense<0.000000e+00> : vector<16x128xf32>
    %2 = tpu.matmul %0, %1, %cst {dimension_numbers = #tpu.dot_dimension_numbers<[1], [0], [0], [1], [0, 0, 1, 1], [], []>} : vector<16x1568xbf16>, vector<1568x128xbf16>, vector<16x128xf32> -> vector<16x128xf32>
    %c0_3 = arith.constant 0 : index
    %c0_4 = arith.constant 0 : index
    %3 = vector.load %arg3[%c0_3, %c0_4] : memref<16x1xf32, #tpu.memory_space<vmem>>, vector<16x1xf32>
    %4 = vector.broadcast %3 : vector<16x1xf32> to vector<16x128xf32>
    %5 = arith.addf %2, %4 : vector<16x128xf32>
    %cst_5 = arith.constant 0.000000e+00 : f32
    %6 = vector.broadcast %cst_5 : f32 to vector<16x128xf32>
    %7 = arith.maximumf %5, %6 : vector<16x128xf32>
    %8 = arith.truncf %7 : vector<16x128xf32> to vector<16x128xbf16>
    %c0_6 = arith.constant 0 : index
    %c0_7 = arith.constant 0 : index
    %9 = vector.load %arg4[%c0_6, %c0_7] : memref<16x128xbf16, #tpu.memory_space<vmem>>, vector<16x128xbf16>
    tpu.vector_store %arg4[%c0_6, %c0_7], %8 {strides = array<i32>} : memref<16x128xbf16, #tpu.memory_space<vmem>>, vector<16x128xbf16>,
    return
  }
  func.func @transform_0(%arg0: i32) -> (i32, i32) {
    %c0_i32 = arith.constant 0 : i32
    %c0_i32_0 = arith.constant 0 : i32
    return %c0_i32, %arg0 : i32, i32
  }
  func.func @transform_1(%arg0: i32) -> (i32, i32) {
    %c0_i32 = arith.constant 0 : i32
    %c0_i32_0 = arith.constant 0 : i32
    %c0_i32_1 = arith.constant 0 : i32
    return %c0_i32, %c0_i32_0 : i32, i32
  }
  func.func @transform_2(%arg0: i32) -> (i32, i32) {
    %c0_i32 = arith.constant 0 : i32
    %c0_i32_0 = arith.constant 0 : i32
    %c0_i32_1 = arith.constant 0 : i32
    return %c0_i32, %c0_i32_0 : i32, i32
  }
  func.func @transform_3(%arg0: i32) -> (i32, i32) {
    %c0_i32 = arith.constant 0 : i32
    %c0_i32_0 = arith.constant 0 : i32
    return %c0_i32, %arg0 : i32, i32
  }
}

module attributes {stable_mosaic.version = 11 : i64} {
  func.func @_attn_gate_kernel(%arg0: i32, %arg1: memref<784x128xbf16, #tpu.memory_space<vmem>>, %arg2: memref<16x784xbf16, #tpu.memory_space<vmem>>, %arg3: memref<16x1xf32, #tpu.memory_space<vmem>>, %arg4: memref<16x128xbf16, #tpu.memory_space<vmem>>, %arg5: memref<16x128xbf16, #tpu.memory_space<vmem>>) attributes {dimension_semantics = [#tpu.dimension_semantics<parallel>], iteration_bounds = array<i64: 1>, scalar_prefetch = 0 : i64, scratch_operands = 0 : i64, tpu.core_type = #tpu.core_type<tc>, window_params = [{transform_indices = @transform_0, window_bounds = array<i64: 784, 128>}, {pipeline_mode = #tpu.pipeline_mode<synchronous>, transform_indices = @transform_1, window_bounds = array<i64: 16, 784>}, {pipeline_mode = #tpu.pipeline_mode<synchronous>, transform_indices = @transform_2, window_bounds = array<i64: 16, 1>}, {transform_indices = @transform_3, window_bounds = array<i64: 16, 128>}, {transform_indices = @transform_4, window_bounds = array<i64: 16, 128>}]} {
    %c0 = arith.constant 0 : index
    %c0_0 = arith.constant 0 : index
    %0 = vector.load %arg2[%c0, %c0_0] : memref<16x784xbf16, #tpu.memory_space<vmem>>, vector<16x784xbf16>
    %c0_1 = arith.constant 0 : index
    %c0_2 = arith.constant 0 : index
    %1 = vector.load %arg1[%c0_1, %c0_2] : memref<784x128xbf16, #tpu.memory_space<vmem>>, vector<784x128xbf16>
    %cst = arith.constant dense<0.000000e+00> : vector<16x128xf32>
    %2 = tpu.matmul %0, %1, %cst {dimension_numbers = #tpu.dot_dimension_numbers<[1], [0], [0], [1], [0, 0, 1, 1], [], []>} : vector<16x784xbf16>, vector<784x128xbf16>, vector<16x128xf32> -> vector<16x128xf32>
    %c0_3 = arith.constant 0 : index
    %c0_4 = arith.constant 0 : index
    %3 = vector.load %arg3[%c0_3, %c0_4] : memref<16x1xf32, #tpu.memory_space<vmem>>, vector<16x1xf32>
    %4 = vector.broadcast %3 : vector<16x1xf32> to vector<16x128xf32>
    %5 = arith.addf %2, %4 : vector<16x128xf32>
    %6 = arith.negf %5 : vector<16x128xf32>
    %7 = math.exp %6 : vector<16x128xf32>
    %cst_5 = arith.constant 1.000000e+00 : f32
    %8 = vector.broadcast %cst_5 : f32 to vector<16x128xf32>
    %9 = arith.addf %8, %7 : vector<16x128xf32>
    %10 = arith.divf %8, %9 : vector<16x128xf32>
    %c0_6 = arith.constant 0 : index
    %c0_7 = arith.constant 0 : index
    %11 = vector.load %arg4[%c0_6, %c0_7] : memref<16x128xbf16, #tpu.memory_space<vmem>>, vector<16x128xbf16>
    %12 = arith.extf %11 : vector<16x128xbf16> to vector<16x128xf32>
    %13 = arith.mulf %12, %10 : vector<16x128xf32>
    %14 = arith.truncf %13 : vector<16x128xf32> to vector<16x128xbf16>
    %c0_8 = arith.constant 0 : index
    %c0_9 = arith.constant 0 : index
    %15 = vector.load %arg5[%c0_8, %c0_9] : memref<16x128xbf16, #tpu.memory_space<vmem>>, vector<16x128xbf16>
    tpu.vector_store %arg5[%c0_8, %c0_9], %14 {strides = array<i32>} : memref<16x128xbf16, #tpu.memory_space<vmem>>, vector<16x128xbf16>,
    return
  }
  func.func @transform_0(%arg0: i32) -> (i32, i32) {
    %c0_i32 = arith.constant 0 : i32
    %c0_i32_0 = arith.constant 0 : i32
    return %c0_i32, %arg0 : i32, i32
  }
  func.func @transform_1(%arg0: i32) -> (i32, i32) {
    %c0_i32 = arith.constant 0 : i32
    %c0_i32_0 = arith.constant 0 : i32
    %c0_i32_1 = arith.constant 0 : i32
    return %c0_i32, %c0_i32_0 : i32, i32
  }
  func.func @transform_2(%arg0: i32) -> (i32, i32) {
    %c0_i32 = arith.constant 0 : i32
    %c0_i32_0 = arith.constant 0 : i32
    %c0_i32_1 = arith.constant 0 : i32
    return %c0_i32, %c0_i32_0 : i32, i32
  }
  func.func @transform_3(%arg0: i32) -> (i32, i32) {
    %c0_i32 = arith.constant 0 : i32
    %c0_i32_0 = arith.constant 0 : i32
    return %c0_i32, %arg0 : i32, i32
  }
  func.func @transform_4(%arg0: i32) -> (i32, i32) {
    %c0_i32 = arith.constant 0 : i32
    %c0_i32_0 = arith.constant 0 : i32
    return %c0_i32, %arg0 : i32, i32
  }
}

module attributes {stable_mosaic.version = 11 : i64} {
  func.func @_conv_act_kernel(%arg0: i32, %arg1: memref<784x128xbf16, #tpu.memory_space<vmem>>, %arg2: memref<8x784xbf16, #tpu.memory_space<vmem>>, %arg3: memref<8x1xf32, #tpu.memory_space<vmem>>, %arg4: memref<8x128xbf16, #tpu.memory_space<vmem>>) attributes {dimension_semantics = [#tpu.dimension_semantics<parallel>], iteration_bounds = array<i64: 1>, scalar_prefetch = 0 : i64, scratch_operands = 0 : i64, tpu.core_type = #tpu.core_type<tc>, window_params = [{transform_indices = @transform_0, window_bounds = array<i64: 784, 128>}, {pipeline_mode = #tpu.pipeline_mode<synchronous>, transform_indices = @transform_1, window_bounds = array<i64: 8, 784>}, {pipeline_mode = #tpu.pipeline_mode<synchronous>, transform_indices = @transform_2, window_bounds = array<i64: 8, 1>}, {transform_indices = @transform_3, window_bounds = array<i64: 8, 128>}]} {
    %c0 = arith.constant 0 : index
    %c0_0 = arith.constant 0 : index
    %0 = vector.load %arg2[%c0, %c0_0] : memref<8x784xbf16, #tpu.memory_space<vmem>>, vector<8x784xbf16>
    %c0_1 = arith.constant 0 : index
    %c0_2 = arith.constant 0 : index
    %1 = vector.load %arg1[%c0_1, %c0_2] : memref<784x128xbf16, #tpu.memory_space<vmem>>, vector<784x128xbf16>
    %cst = arith.constant dense<0.000000e+00> : vector<8x128xf32>
    %2 = tpu.matmul %0, %1, %cst {dimension_numbers = #tpu.dot_dimension_numbers<[1], [0], [0], [1], [0, 0, 1, 1], [], []>} : vector<8x784xbf16>, vector<784x128xbf16>, vector<8x128xf32> -> vector<8x128xf32>
    %c0_3 = arith.constant 0 : index
    %c0_4 = arith.constant 0 : index
    %3 = vector.load %arg3[%c0_3, %c0_4] : memref<8x1xf32, #tpu.memory_space<vmem>>, vector<8x1xf32>
    %4 = vector.broadcast %3 : vector<8x1xf32> to vector<8x128xf32>
    %5 = arith.addf %2, %4 : vector<8x128xf32>
    %cst_5 = arith.constant 0.000000e+00 : f32
    %6 = vector.broadcast %cst_5 : f32 to vector<8x128xf32>
    %7 = arith.maximumf %5, %6 : vector<8x128xf32>
    %8 = arith.truncf %7 : vector<8x128xf32> to vector<8x128xbf16>
    %c0_6 = arith.constant 0 : index
    %c0_7 = arith.constant 0 : index
    %9 = vector.load %arg4[%c0_6, %c0_7] : memref<8x128xbf16, #tpu.memory_space<vmem>>, vector<8x128xbf16>
    tpu.vector_store %arg4[%c0_6, %c0_7], %8 {strides = array<i32>} : memref<8x128xbf16, #tpu.memory_space<vmem>>, vector<8x128xbf16>,
    return
  }
  func.func @transform_0(%arg0: i32) -> (i32, i32) {
    %c0_i32 = arith.constant 0 : i32
    %c0_i32_0 = arith.constant 0 : i32
    return %c0_i32, %arg0 : i32, i32
  }
  func.func @transform_1(%arg0: i32) -> (i32, i32) {
    %c0_i32 = arith.constant 0 : i32
    %c0_i32_0 = arith.constant 0 : i32
    %c0_i32_1 = arith.constant 0 : i32
    return %c0_i32, %c0_i32_0 : i32, i32
  }
  func.func @transform_2(%arg0: i32) -> (i32, i32) {
    %c0_i32 = arith.constant 0 : i32
    %c0_i32_0 = arith.constant 0 : i32
    %c0_i32_1 = arith.constant 0 : i32
    return %c0_i32, %c0_i32_0 : i32, i32
  }
  func.func @transform_3(%arg0: i32) -> (i32, i32) {
    %c0_i32 = arith.constant 0 : i32
    %c0_i32_0 = arith.constant 0 : i32
    return %c0_i32, %arg0 : i32, i32
  }
}

module attributes {stable_mosaic.version = 11 : i64} {
  func.func @_conv_relu_pool_kernel(%arg0: i32, %arg1: i32, %arg2: memref<1x500x128xbf16, #tpu.memory_space<vmem>>, %arg3: memref<40x500xbf16, #tpu.memory_space<vmem>>, %arg4: memref<40x1xf32, #tpu.memory_space<vmem>>, %arg5: memref<40x128xbf16, #tpu.memory_space<vmem>>, %arg6: memref<40x128xf32, #tpu.memory_space<vmem>>) attributes {dimension_semantics = [#tpu.dimension_semantics<parallel>, #tpu.dimension_semantics<arbitrary>], iteration_bounds = array<i64: 1, 4>, scalar_prefetch = 0 : i64, scratch_operands = 1 : i64, tpu.core_type = #tpu.core_type<tc>, window_params = [{transform_indices = @transform_0, window_bounds = array<i64: 1, 500, 128>}, {pipeline_mode = #tpu.pipeline_mode<synchronous>, transform_indices = @transform_1, window_bounds = array<i64: 40, 500>}, {pipeline_mode = #tpu.pipeline_mode<synchronous>, transform_indices = @transform_2, window_bounds = array<i64: 40, 1>}, {transform_indices = @transform_3, window_bounds = array<i64: 40, 128>}]} {
    %c0 = arith.constant 0 : index
    %c0_0 = arith.constant 0 : index
    %0 = vector.load %arg3[%c0, %c0_0] : memref<40x500xbf16, #tpu.memory_space<vmem>>, vector<40x500xbf16>
    %c0_1 = arith.constant 0 : index
    %c0_2 = arith.constant 0 : index
    %c0_3 = arith.constant 0 : index
    %1 = vector.load %arg2[%c0_1, %c0_2, %c0_3] : memref<1x500x128xbf16, #tpu.memory_space<vmem>>, vector<1x500x128xbf16>
    %2 = vector.shape_cast %1 : vector<1x500x128xbf16> to vector<500x128xbf16>
    %cst = arith.constant dense<0.000000e+00> : vector<40x128xf32>
    %3 = tpu.matmul %0, %2, %cst {dimension_numbers = #tpu.dot_dimension_numbers<[1], [0], [0], [1], [0, 0, 1, 1], [], []>} : vector<40x500xbf16>, vector<500x128xbf16>, vector<40x128xf32> -> vector<40x128xf32>
    %c0_4 = arith.constant 0 : index
    %c0_5 = arith.constant 0 : index
    %4 = vector.load %arg4[%c0_4, %c0_5] : memref<40x1xf32, #tpu.memory_space<vmem>>, vector<40x1xf32>
    %5 = vector.broadcast %4 : vector<40x1xf32> to vector<40x128xf32>
    %6 = arith.addf %3, %5 : vector<40x128xf32>
    %cst_6 = arith.constant 0.000000e+00 : f32
    %7 = vector.broadcast %cst_6 : f32 to vector<40x128xf32>
    %8 = arith.maximumf %6, %7 : vector<40x128xf32>
    %c0_i32 = arith.constant 0 : i32
    %9 = arith.cmpi eq, %arg1, %c0_i32 : i32
    %10 = arith.extui %9 : i1 to i32
    %c0_i32_7 = arith.constant 0 : i32
    %11 = arith.cmpi ne, %10, %c0_i32_7 : i32
    scf.if %11 {
      %c0_11 = arith.constant 0 : index
      %c0_12 = arith.constant 0 : index
      %18 = vector.load %arg6[%c0_11, %c0_12] : memref<40x128xf32, #tpu.memory_space<vmem>>, vector<40x128xf32>
      tpu.vector_store %arg6[%c0_11, %c0_12], %8 {strides = array<i32>} : memref<40x128xf32, #tpu.memory_space<vmem>>, vector<40x128xf32>,
    } else {
    }
    %c0_i32_8 = arith.constant 0 : i32
    %12 = arith.cmpi sgt, %arg1, %c0_i32_8 : i32
    %13 = arith.extui %12 : i1 to i32
    %c0_i32_9 = arith.constant 0 : i32
    %14 = arith.cmpi ne, %13, %c0_i32_9 : i32
    scf.if %14 {
      %c0_11 = arith.constant 0 : index
      %c0_12 = arith.constant 0 : index
      %18 = vector.load %arg6[%c0_11, %c0_12] : memref<40x128xf32, #tpu.memory_space<vmem>>, vector<40x128xf32>
      %19 = arith.maximumf %18, %8 : vector<40x128xf32>
      %c0_13 = arith.constant 0 : index
      %c0_14 = arith.constant 0 : index
      %20 = vector.load %arg6[%c0_13, %c0_14] : memref<40x128xf32, #tpu.memory_space<vmem>>, vector<40x128xf32>
      tpu.vector_store %arg6[%c0_13, %c0_14], %19 {strides = array<i32>} : memref<40x128xf32, #tpu.memory_space<vmem>>, vector<40x128xf32>,
    } else {
    }
    %c3_i32 = arith.constant 3 : i32
    %15 = arith.cmpi eq, %arg1, %c3_i32 : i32
    %16 = arith.extui %15 : i1 to i32
    %c0_i32_10 = arith.constant 0 : i32
    %17 = arith.cmpi ne, %16, %c0_i32_10 : i32
    scf.if %17 {
      %c0_11 = arith.constant 0 : index
      %c0_12 = arith.constant 0 : index
      %18 = vector.load %arg6[%c0_11, %c0_12] : memref<40x128xf32, #tpu.memory_space<vmem>>, vector<40x128xf32>
      %19 = arith.truncf %18 : vector<40x128xf32> to vector<40x128xbf16>
      %c0_13 = arith.constant 0 : index
      %c0_14 = arith.constant 0 : index
      %20 = vector.load %arg5[%c0_13, %c0_14] : memref<40x128xbf16, #tpu.memory_space<vmem>>, vector<40x128xbf16>
      tpu.vector_store %arg5[%c0_13, %c0_14], %19 {strides = array<i32>} : memref<40x128xbf16, #tpu.memory_space<vmem>>, vector<40x128xbf16>,
    } else {
    }
    return
  }
  func.func @transform_0(%arg0: i32, %arg1: i32) -> (i32, i32, i32) {
    %c0_i32 = arith.constant 0 : i32
    %c0_i32_0 = arith.constant 0 : i32
    return %arg1, %c0_i32, %arg0 : i32, i32, i32
  }
  func.func @transform_1(%arg0: i32, %arg1: i32) -> (i32, i32) {
    %c0_i32 = arith.constant 0 : i32
    %c0_i32_0 = arith.constant 0 : i32
    %c0_i32_1 = arith.constant 0 : i32
    return %c0_i32, %c0_i32_0 : i32, i32
  }
  func.func @transform_2(%arg0: i32, %arg1: i32) -> (i32, i32) {
    %c0_i32 = arith.constant 0 : i32
    %c0_i32_0 = arith.constant 0 : i32
    %c0_i32_1 = arith.constant 0 : i32
    return %c0_i32, %c0_i32_0 : i32, i32
  }
  func.func @transform_3(%arg0: i32, %arg1: i32) -> (i32, i32) {
    %c0_i32 = arith.constant 0 : i32
    %c0_i32_0 = arith.constant 0 : i32
    return %c0_i32, %arg0 : i32, i32
  }
}

module attributes {stable_mosaic.version = 11 : i64} {
  func.func @_conv_act_kernel(%arg0: i32, %arg1: memref<1000x128xbf16, #tpu.memory_space<vmem>>, %arg2: memref<20x1000xbf16, #tpu.memory_space<vmem>>, %arg3: memref<20x1xf32, #tpu.memory_space<vmem>>, %arg4: memref<20x128xbf16, #tpu.memory_space<vmem>>) attributes {dimension_semantics = [#tpu.dimension_semantics<parallel>], iteration_bounds = array<i64: 1>, scalar_prefetch = 0 : i64, scratch_operands = 0 : i64, tpu.core_type = #tpu.core_type<tc>, window_params = [{transform_indices = @transform_0, window_bounds = array<i64: 1000, 128>}, {pipeline_mode = #tpu.pipeline_mode<synchronous>, transform_indices = @transform_1, window_bounds = array<i64: 20, 1000>}, {pipeline_mode = #tpu.pipeline_mode<synchronous>, transform_indices = @transform_2, window_bounds = array<i64: 20, 1>}, {transform_indices = @transform_3, window_bounds = array<i64: 20, 128>}]} {
    %c0 = arith.constant 0 : index
    %c0_0 = arith.constant 0 : index
    %0 = vector.load %arg2[%c0, %c0_0] : memref<20x1000xbf16, #tpu.memory_space<vmem>>, vector<20x1000xbf16>
    %c0_1 = arith.constant 0 : index
    %c0_2 = arith.constant 0 : index
    %1 = vector.load %arg1[%c0_1, %c0_2] : memref<1000x128xbf16, #tpu.memory_space<vmem>>, vector<1000x128xbf16>
    %cst = arith.constant dense<0.000000e+00> : vector<20x128xf32>
    %2 = tpu.matmul %0, %1, %cst {dimension_numbers = #tpu.dot_dimension_numbers<[1], [0], [0], [1], [0, 0, 1, 1], [], []>} : vector<20x1000xbf16>, vector<1000x128xbf16>, vector<20x128xf32> -> vector<20x128xf32>
    %c0_3 = arith.constant 0 : index
    %c0_4 = arith.constant 0 : index
    %3 = vector.load %arg3[%c0_3, %c0_4] : memref<20x1xf32, #tpu.memory_space<vmem>>, vector<20x1xf32>
    %4 = vector.broadcast %3 : vector<20x1xf32> to vector<20x128xf32>
    %5 = arith.addf %2, %4 : vector<20x128xf32>
    %cst_5 = arith.constant 0.000000e+00 : f32
    %6 = vector.broadcast %cst_5 : f32 to vector<20x128xf32>
    %7 = arith.maximumf %5, %6 : vector<20x128xf32>
    %8 = arith.truncf %7 : vector<20x128xf32> to vector<20x128xbf16>
    %c0_6 = arith.constant 0 : index
    %c0_7 = arith.constant 0 : index
    %9 = vector.load %arg4[%c0_6, %c0_7] : memref<20x128xbf16, #tpu.memory_space<vmem>>, vector<20x128xbf16>
    tpu.vector_store %arg4[%c0_6, %c0_7], %8 {strides = array<i32>} : memref<20x128xbf16, #tpu.memory_space<vmem>>, vector<20x128xbf16>,
    return
  }
  func.func @transform_0(%arg0: i32) -> (i32, i32) {
    %c0_i32 = arith.constant 0 : i32
    %c0_i32_0 = arith.constant 0 : i32
    return %c0_i32, %arg0 : i32, i32
  }
  func.func @transform_1(%arg0: i32) -> (i32, i32) {
    %c0_i32 = arith.constant 0 : i32
    %c0_i32_0 = arith.constant 0 : i32
    %c0_i32_1 = arith.constant 0 : i32
    return %c0_i32, %c0_i32_0 : i32, i32
  }
  func.func @transform_2(%arg0: i32) -> (i32, i32) {
    %c0_i32 = arith.constant 0 : i32
    %c0_i32_0 = arith.constant 0 : i32
    %c0_i32_1 = arith.constant 0 : i32
    return %c0_i32, %c0_i32_0 : i32, i32
  }
  func.func @transform_3(%arg0: i32) -> (i32, i32) {
    %c0_i32 = arith.constant 0 : i32
    %c0_i32_0 = arith.constant 0 : i32
    return %c0_i32, %arg0 : i32, i32
  }
}

module attributes {stable_mosaic.version = 11 : i64} {
  func.func @_attn_gate_kernel(%arg0: i32, %arg1: memref<500x128xbf16, #tpu.memory_space<vmem>>, %arg2: memref<20x500xbf16, #tpu.memory_space<vmem>>, %arg3: memref<20x1xf32, #tpu.memory_space<vmem>>, %arg4: memref<20x128xbf16, #tpu.memory_space<vmem>>, %arg5: memref<20x128xbf16, #tpu.memory_space<vmem>>) attributes {dimension_semantics = [#tpu.dimension_semantics<parallel>], iteration_bounds = array<i64: 1>, scalar_prefetch = 0 : i64, scratch_operands = 0 : i64, tpu.core_type = #tpu.core_type<tc>, window_params = [{transform_indices = @transform_0, window_bounds = array<i64: 500, 128>}, {pipeline_mode = #tpu.pipeline_mode<synchronous>, transform_indices = @transform_1, window_bounds = array<i64: 20, 500>}, {pipeline_mode = #tpu.pipeline_mode<synchronous>, transform_indices = @transform_2, window_bounds = array<i64: 20, 1>}, {transform_indices = @transform_3, window_bounds = array<i64: 20, 128>}, {transform_indices = @transform_4, window_bounds = array<i64: 20, 128>}]} {
    %c0 = arith.constant 0 : index
    %c0_0 = arith.constant 0 : index
    %0 = vector.load %arg2[%c0, %c0_0] : memref<20x500xbf16, #tpu.memory_space<vmem>>, vector<20x500xbf16>
    %c0_1 = arith.constant 0 : index
    %c0_2 = arith.constant 0 : index
    %1 = vector.load %arg1[%c0_1, %c0_2] : memref<500x128xbf16, #tpu.memory_space<vmem>>, vector<500x128xbf16>
    %cst = arith.constant dense<0.000000e+00> : vector<20x128xf32>
    %2 = tpu.matmul %0, %1, %cst {dimension_numbers = #tpu.dot_dimension_numbers<[1], [0], [0], [1], [0, 0, 1, 1], [], []>} : vector<20x500xbf16>, vector<500x128xbf16>, vector<20x128xf32> -> vector<20x128xf32>
    %c0_3 = arith.constant 0 : index
    %c0_4 = arith.constant 0 : index
    %3 = vector.load %arg3[%c0_3, %c0_4] : memref<20x1xf32, #tpu.memory_space<vmem>>, vector<20x1xf32>
    %4 = vector.broadcast %3 : vector<20x1xf32> to vector<20x128xf32>
    %5 = arith.addf %2, %4 : vector<20x128xf32>
    %6 = arith.negf %5 : vector<20x128xf32>
    %7 = math.exp %6 : vector<20x128xf32>
    %cst_5 = arith.constant 1.000000e+00 : f32
    %8 = vector.broadcast %cst_5 : f32 to vector<20x128xf32>
    %9 = arith.addf %8, %7 : vector<20x128xf32>
    %10 = arith.divf %8, %9 : vector<20x128xf32>
    %c0_6 = arith.constant 0 : index
    %c0_7 = arith.constant 0 : index
    %11 = vector.load %arg4[%c0_6, %c0_7] : memref<20x128xbf16, #tpu.memory_space<vmem>>, vector<20x128xbf16>
    %12 = arith.extf %11 : vector<20x128xbf16> to vector<20x128xf32>
    %13 = arith.mulf %12, %10 : vector<20x128xf32>
    %14 = arith.truncf %13 : vector<20x128xf32> to vector<20x128xbf16>
    %c0_8 = arith.constant 0 : index
    %c0_9 = arith.constant 0 : index
    %15 = vector.load %arg5[%c0_8, %c0_9] : memref<20x128xbf16, #tpu.memory_space<vmem>>, vector<20x128xbf16>
    tpu.vector_store %arg5[%c0_8, %c0_9], %14 {strides = array<i32>} : memref<20x128xbf16, #tpu.memory_space<vmem>>, vector<20x128xbf16>,
    return
  }
  func.func @transform_0(%arg0: i32) -> (i32, i32) {
    %c0_i32 = arith.constant 0 : i32
    %c0_i32_0 = arith.constant 0 : i32
    return %c0_i32, %arg0 : i32, i32
  }
  func.func @transform_1(%arg0: i32) -> (i32, i32) {
    %c0_i32 = arith.constant 0 : i32
    %c0_i32_0 = arith.constant 0 : i32
    %c0_i32_1 = arith.constant 0 : i32
    return %c0_i32, %c0_i32_0 : i32, i32
  }
  func.func @transform_2(%arg0: i32) -> (i32, i32) {
    %c0_i32 = arith.constant 0 : i32
    %c0_i32_0 = arith.constant 0 : i32
    %c0_i32_1 = arith.constant 0 : i32
    return %c0_i32, %c0_i32_0 : i32, i32
  }
  func.func @transform_3(%arg0: i32) -> (i32, i32) {
    %c0_i32 = arith.constant 0 : i32
    %c0_i32_0 = arith.constant 0 : i32
    return %c0_i32, %arg0 : i32, i32
  }
  func.func @transform_4(%arg0: i32) -> (i32, i32) {
    %c0_i32 = arith.constant 0 : i32
    %c0_i32_0 = arith.constant 0 : i32
    return %c0_i32, %arg0 : i32, i32
  }
}

module attributes {stable_mosaic.version = 11 : i64} {
  func.func @_conv_act_kernel(%arg0: i32, %arg1: memref<500x128xbf16, #tpu.memory_space<vmem>>, %arg2: memref<10x500xbf16, #tpu.memory_space<vmem>>, %arg3: memref<10x1xf32, #tpu.memory_space<vmem>>, %arg4: memref<10x128xbf16, #tpu.memory_space<vmem>>) attributes {dimension_semantics = [#tpu.dimension_semantics<parallel>], iteration_bounds = array<i64: 1>, scalar_prefetch = 0 : i64, scratch_operands = 0 : i64, tpu.core_type = #tpu.core_type<tc>, window_params = [{transform_indices = @transform_0, window_bounds = array<i64: 500, 128>}, {pipeline_mode = #tpu.pipeline_mode<synchronous>, transform_indices = @transform_1, window_bounds = array<i64: 10, 500>}, {pipeline_mode = #tpu.pipeline_mode<synchronous>, transform_indices = @transform_2, window_bounds = array<i64: 10, 1>}, {transform_indices = @transform_3, window_bounds = array<i64: 10, 128>}]} {
    %c0 = arith.constant 0 : index
    %c0_0 = arith.constant 0 : index
    %0 = vector.load %arg2[%c0, %c0_0] : memref<10x500xbf16, #tpu.memory_space<vmem>>, vector<10x500xbf16>
    %c0_1 = arith.constant 0 : index
    %c0_2 = arith.constant 0 : index
    %1 = vector.load %arg1[%c0_1, %c0_2] : memref<500x128xbf16, #tpu.memory_space<vmem>>, vector<500x128xbf16>
    %cst = arith.constant dense<0.000000e+00> : vector<10x128xf32>
    %2 = tpu.matmul %0, %1, %cst {dimension_numbers = #tpu.dot_dimension_numbers<[1], [0], [0], [1], [0, 0, 1, 1], [], []>} : vector<10x500xbf16>, vector<500x128xbf16>, vector<10x128xf32> -> vector<10x128xf32>
    %c0_3 = arith.constant 0 : index
    %c0_4 = arith.constant 0 : index
    %3 = vector.load %arg3[%c0_3, %c0_4] : memref<10x1xf32, #tpu.memory_space<vmem>>, vector<10x1xf32>
    %4 = vector.broadcast %3 : vector<10x1xf32> to vector<10x128xf32>
    %5 = arith.addf %2, %4 : vector<10x128xf32>
    %cst_5 = arith.constant 0.000000e+00 : f32
    %6 = vector.broadcast %cst_5 : f32 to vector<10x128xf32>
    %7 = arith.maximumf %5, %6 : vector<10x128xf32>
    %8 = arith.truncf %7 : vector<10x128xf32> to vector<10x128xbf16>
    %c0_6 = arith.constant 0 : index
    %c0_7 = arith.constant 0 : index
    %9 = vector.load %arg4[%c0_6, %c0_7] : memref<10x128xbf16, #tpu.memory_space<vmem>>, vector<10x128xbf16>
    tpu.vector_store %arg4[%c0_6, %c0_7], %8 {strides = array<i32>} : memref<10x128xbf16, #tpu.memory_space<vmem>>, vector<10x128xbf16>,
    return
  }
  func.func @transform_0(%arg0: i32) -> (i32, i32) {
    %c0_i32 = arith.constant 0 : i32
    %c0_i32_0 = arith.constant 0 : i32
    return %c0_i32, %arg0 : i32, i32
  }
  func.func @transform_1(%arg0: i32) -> (i32, i32) {
    %c0_i32 = arith.constant 0 : i32
    %c0_i32_0 = arith.constant 0 : i32
    %c0_i32_1 = arith.constant 0 : i32
    return %c0_i32, %c0_i32_0 : i32, i32
  }
  func.func @transform_2(%arg0: i32) -> (i32, i32) {
    %c0_i32 = arith.constant 0 : i32
    %c0_i32_0 = arith.constant 0 : i32
    %c0_i32_1 = arith.constant 0 : i32
    return %c0_i32, %c0_i32_0 : i32, i32
  }
  func.func @transform_3(%arg0: i32) -> (i32, i32) {
    %c0_i32 = arith.constant 0 : i32
    %c0_i32_0 = arith.constant 0 : i32
    return %c0_i32, %arg0 : i32, i32
  }
}

module attributes {stable_mosaic.version = 11 : i64} {
  func.func @_conv_relu_pool_kernel(%arg0: i32, %arg1: i32, %arg2: memref<1x216x128xbf16, #tpu.memory_space<vmem>>, %arg3: memref<48x216xbf16, #tpu.memory_space<vmem>>, %arg4: memref<48x1xf32, #tpu.memory_space<vmem>>, %arg5: memref<48x128xbf16, #tpu.memory_space<vmem>>, %arg6: memref<48x128xf32, #tpu.memory_space<vmem>>) attributes {dimension_semantics = [#tpu.dimension_semantics<parallel>, #tpu.dimension_semantics<arbitrary>], iteration_bounds = array<i64: 1, 4>, scalar_prefetch = 0 : i64, scratch_operands = 1 : i64, tpu.core_type = #tpu.core_type<tc>, window_params = [{transform_indices = @transform_0, window_bounds = array<i64: 1, 216, 128>}, {pipeline_mode = #tpu.pipeline_mode<synchronous>, transform_indices = @transform_1, window_bounds = array<i64: 48, 216>}, {pipeline_mode = #tpu.pipeline_mode<synchronous>, transform_indices = @transform_2, window_bounds = array<i64: 48, 1>}, {transform_indices = @transform_3, window_bounds = array<i64: 48, 128>}]} {
    %c0 = arith.constant 0 : index
    %c0_0 = arith.constant 0 : index
    %0 = vector.load %arg3[%c0, %c0_0] : memref<48x216xbf16, #tpu.memory_space<vmem>>, vector<48x216xbf16>
    %c0_1 = arith.constant 0 : index
    %c0_2 = arith.constant 0 : index
    %c0_3 = arith.constant 0 : index
    %1 = vector.load %arg2[%c0_1, %c0_2, %c0_3] : memref<1x216x128xbf16, #tpu.memory_space<vmem>>, vector<1x216x128xbf16>
    %2 = vector.shape_cast %1 : vector<1x216x128xbf16> to vector<216x128xbf16>
    %cst = arith.constant dense<0.000000e+00> : vector<48x128xf32>
    %3 = tpu.matmul %0, %2, %cst {dimension_numbers = #tpu.dot_dimension_numbers<[1], [0], [0], [1], [0, 0, 1, 1], [], []>} : vector<48x216xbf16>, vector<216x128xbf16>, vector<48x128xf32> -> vector<48x128xf32>
    %c0_4 = arith.constant 0 : index
    %c0_5 = arith.constant 0 : index
    %4 = vector.load %arg4[%c0_4, %c0_5] : memref<48x1xf32, #tpu.memory_space<vmem>>, vector<48x1xf32>
    %5 = vector.broadcast %4 : vector<48x1xf32> to vector<48x128xf32>
    %6 = arith.addf %3, %5 : vector<48x128xf32>
    %cst_6 = arith.constant 0.000000e+00 : f32
    %7 = vector.broadcast %cst_6 : f32 to vector<48x128xf32>
    %8 = arith.maximumf %6, %7 : vector<48x128xf32>
    %c0_i32 = arith.constant 0 : i32
    %9 = arith.cmpi eq, %arg1, %c0_i32 : i32
    %10 = arith.extui %9 : i1 to i32
    %c0_i32_7 = arith.constant 0 : i32
    %11 = arith.cmpi ne, %10, %c0_i32_7 : i32
    scf.if %11 {
      %c0_11 = arith.constant 0 : index
      %c0_12 = arith.constant 0 : index
      %18 = vector.load %arg6[%c0_11, %c0_12] : memref<48x128xf32, #tpu.memory_space<vmem>>, vector<48x128xf32>
      tpu.vector_store %arg6[%c0_11, %c0_12], %8 {strides = array<i32>} : memref<48x128xf32, #tpu.memory_space<vmem>>, vector<48x128xf32>,
    } else {
    }
    %c0_i32_8 = arith.constant 0 : i32
    %12 = arith.cmpi sgt, %arg1, %c0_i32_8 : i32
    %13 = arith.extui %12 : i1 to i32
    %c0_i32_9 = arith.constant 0 : i32
    %14 = arith.cmpi ne, %13, %c0_i32_9 : i32
    scf.if %14 {
      %c0_11 = arith.constant 0 : index
      %c0_12 = arith.constant 0 : index
      %18 = vector.load %arg6[%c0_11, %c0_12] : memref<48x128xf32, #tpu.memory_space<vmem>>, vector<48x128xf32>
      %19 = arith.maximumf %18, %8 : vector<48x128xf32>
      %c0_13 = arith.constant 0 : index
      %c0_14 = arith.constant 0 : index
      %20 = vector.load %arg6[%c0_13, %c0_14] : memref<48x128xf32, #tpu.memory_space<vmem>>, vector<48x128xf32>
      tpu.vector_store %arg6[%c0_13, %c0_14], %19 {strides = array<i32>} : memref<48x128xf32, #tpu.memory_space<vmem>>, vector<48x128xf32>,
    } else {
    }
    %c3_i32 = arith.constant 3 : i32
    %15 = arith.cmpi eq, %arg1, %c3_i32 : i32
    %16 = arith.extui %15 : i1 to i32
    %c0_i32_10 = arith.constant 0 : i32
    %17 = arith.cmpi ne, %16, %c0_i32_10 : i32
    scf.if %17 {
      %c0_11 = arith.constant 0 : index
      %c0_12 = arith.constant 0 : index
      %18 = vector.load %arg6[%c0_11, %c0_12] : memref<48x128xf32, #tpu.memory_space<vmem>>, vector<48x128xf32>
      %19 = arith.truncf %18 : vector<48x128xf32> to vector<48x128xbf16>
      %c0_13 = arith.constant 0 : index
      %c0_14 = arith.constant 0 : index
      %20 = vector.load %arg5[%c0_13, %c0_14] : memref<48x128xbf16, #tpu.memory_space<vmem>>, vector<48x128xbf16>
      tpu.vector_store %arg5[%c0_13, %c0_14], %19 {strides = array<i32>} : memref<48x128xbf16, #tpu.memory_space<vmem>>, vector<48x128xbf16>,
    } else {
    }
    return
  }
  func.func @transform_0(%arg0: i32, %arg1: i32) -> (i32, i32, i32) {
    %c0_i32 = arith.constant 0 : i32
    %c0_i32_0 = arith.constant 0 : i32
    return %arg1, %c0_i32, %arg0 : i32, i32, i32
  }
  func.func @transform_1(%arg0: i32, %arg1: i32) -> (i32, i32) {
    %c0_i32 = arith.constant 0 : i32
    %c0_i32_0 = arith.constant 0 : i32
    %c0_i32_1 = arith.constant 0 : i32
    return %c0_i32, %c0_i32_0 : i32, i32
  }
  func.func @transform_2(%arg0: i32, %arg1: i32) -> (i32, i32) {
    %c0_i32 = arith.constant 0 : i32
    %c0_i32_0 = arith.constant 0 : i32
    %c0_i32_1 = arith.constant 0 : i32
    return %c0_i32, %c0_i32_0 : i32, i32
  }
  func.func @transform_3(%arg0: i32, %arg1: i32) -> (i32, i32) {
    %c0_i32 = arith.constant 0 : i32
    %c0_i32_0 = arith.constant 0 : i32
    return %c0_i32, %arg0 : i32, i32
  }
}

module attributes {stable_mosaic.version = 11 : i64} {
  func.func @_conv_act_kernel(%arg0: i32, %arg1: memref<432x128xbf16, #tpu.memory_space<vmem>>, %arg2: memref<24x432xbf16, #tpu.memory_space<vmem>>, %arg3: memref<24x1xf32, #tpu.memory_space<vmem>>, %arg4: memref<24x128xbf16, #tpu.memory_space<vmem>>) attributes {dimension_semantics = [#tpu.dimension_semantics<parallel>], iteration_bounds = array<i64: 1>, scalar_prefetch = 0 : i64, scratch_operands = 0 : i64, tpu.core_type = #tpu.core_type<tc>, window_params = [{transform_indices = @transform_0, window_bounds = array<i64: 432, 128>}, {pipeline_mode = #tpu.pipeline_mode<synchronous>, transform_indices = @transform_1, window_bounds = array<i64: 24, 432>}, {pipeline_mode = #tpu.pipeline_mode<synchronous>, transform_indices = @transform_2, window_bounds = array<i64: 24, 1>}, {transform_indices = @transform_3, window_bounds = array<i64: 24, 128>}]} {
    %c0 = arith.constant 0 : index
    %c0_0 = arith.constant 0 : index
    %0 = vector.load %arg2[%c0, %c0_0] : memref<24x432xbf16, #tpu.memory_space<vmem>>, vector<24x432xbf16>
    %c0_1 = arith.constant 0 : index
    %c0_2 = arith.constant 0 : index
    %1 = vector.load %arg1[%c0_1, %c0_2] : memref<432x128xbf16, #tpu.memory_space<vmem>>, vector<432x128xbf16>
    %cst = arith.constant dense<0.000000e+00> : vector<24x128xf32>
    %2 = tpu.matmul %0, %1, %cst {dimension_numbers = #tpu.dot_dimension_numbers<[1], [0], [0], [1], [0, 0, 1, 1], [], []>} : vector<24x432xbf16>, vector<432x128xbf16>, vector<24x128xf32> -> vector<24x128xf32>
    %c0_3 = arith.constant 0 : index
    %c0_4 = arith.constant 0 : index
    %3 = vector.load %arg3[%c0_3, %c0_4] : memref<24x1xf32, #tpu.memory_space<vmem>>, vector<24x1xf32>
    %4 = vector.broadcast %3 : vector<24x1xf32> to vector<24x128xf32>
    %5 = arith.addf %2, %4 : vector<24x128xf32>
    %cst_5 = arith.constant 0.000000e+00 : f32
    %6 = vector.broadcast %cst_5 : f32 to vector<24x128xf32>
    %7 = arith.maximumf %5, %6 : vector<24x128xf32>
    %8 = arith.truncf %7 : vector<24x128xf32> to vector<24x128xbf16>
    %c0_6 = arith.constant 0 : index
    %c0_7 = arith.constant 0 : index
    %9 = vector.load %arg4[%c0_6, %c0_7] : memref<24x128xbf16, #tpu.memory_space<vmem>>, vector<24x128xbf16>
    tpu.vector_store %arg4[%c0_6, %c0_7], %8 {strides = array<i32>} : memref<24x128xbf16, #tpu.memory_space<vmem>>, vector<24x128xbf16>,
    return
  }
  func.func @transform_0(%arg0: i32) -> (i32, i32) {
    %c0_i32 = arith.constant 0 : i32
    %c0_i32_0 = arith.constant 0 : i32
    return %c0_i32, %arg0 : i32, i32
  }
  func.func @transform_1(%arg0: i32) -> (i32, i32) {
    %c0_i32 = arith.constant 0 : i32
    %c0_i32_0 = arith.constant 0 : i32
    %c0_i32_1 = arith.constant 0 : i32
    return %c0_i32, %c0_i32_0 : i32, i32
  }
  func.func @transform_2(%arg0: i32) -> (i32, i32) {
    %c0_i32 = arith.constant 0 : i32
    %c0_i32_0 = arith.constant 0 : i32
    %c0_i32_1 = arith.constant 0 : i32
    return %c0_i32, %c0_i32_0 : i32, i32
  }
  func.func @transform_3(%arg0: i32) -> (i32, i32) {
    %c0_i32 = arith.constant 0 : i32
    %c0_i32_0 = arith.constant 0 : i32
    return %c0_i32, %arg0 : i32, i32
  }
}

module attributes {stable_mosaic.version = 11 : i64} {
  func.func @_attn_gate_kernel(%arg0: i32, %arg1: memref<216x128xbf16, #tpu.memory_space<vmem>>, %arg2: memref<24x216xbf16, #tpu.memory_space<vmem>>, %arg3: memref<24x1xf32, #tpu.memory_space<vmem>>, %arg4: memref<24x128xbf16, #tpu.memory_space<vmem>>, %arg5: memref<24x128xbf16, #tpu.memory_space<vmem>>) attributes {dimension_semantics = [#tpu.dimension_semantics<parallel>], iteration_bounds = array<i64: 1>, scalar_prefetch = 0 : i64, scratch_operands = 0 : i64, tpu.core_type = #tpu.core_type<tc>, window_params = [{transform_indices = @transform_0, window_bounds = array<i64: 216, 128>}, {pipeline_mode = #tpu.pipeline_mode<synchronous>, transform_indices = @transform_1, window_bounds = array<i64: 24, 216>}, {pipeline_mode = #tpu.pipeline_mode<synchronous>, transform_indices = @transform_2, window_bounds = array<i64: 24, 1>}, {transform_indices = @transform_3, window_bounds = array<i64: 24, 128>}, {transform_indices = @transform_4, window_bounds = array<i64: 24, 128>}]} {
    %c0 = arith.constant 0 : index
    %c0_0 = arith.constant 0 : index
    %0 = vector.load %arg2[%c0, %c0_0] : memref<24x216xbf16, #tpu.memory_space<vmem>>, vector<24x216xbf16>
    %c0_1 = arith.constant 0 : index
    %c0_2 = arith.constant 0 : index
    %1 = vector.load %arg1[%c0_1, %c0_2] : memref<216x128xbf16, #tpu.memory_space<vmem>>, vector<216x128xbf16>
    %cst = arith.constant dense<0.000000e+00> : vector<24x128xf32>
    %2 = tpu.matmul %0, %1, %cst {dimension_numbers = #tpu.dot_dimension_numbers<[1], [0], [0], [1], [0, 0, 1, 1], [], []>} : vector<24x216xbf16>, vector<216x128xbf16>, vector<24x128xf32> -> vector<24x128xf32>
    %c0_3 = arith.constant 0 : index
    %c0_4 = arith.constant 0 : index
    %3 = vector.load %arg3[%c0_3, %c0_4] : memref<24x1xf32, #tpu.memory_space<vmem>>, vector<24x1xf32>
    %4 = vector.broadcast %3 : vector<24x1xf32> to vector<24x128xf32>
    %5 = arith.addf %2, %4 : vector<24x128xf32>
    %6 = arith.negf %5 : vector<24x128xf32>
    %7 = math.exp %6 : vector<24x128xf32>
    %cst_5 = arith.constant 1.000000e+00 : f32
    %8 = vector.broadcast %cst_5 : f32 to vector<24x128xf32>
    %9 = arith.addf %8, %7 : vector<24x128xf32>
    %10 = arith.divf %8, %9 : vector<24x128xf32>
    %c0_6 = arith.constant 0 : index
    %c0_7 = arith.constant 0 : index
    %11 = vector.load %arg4[%c0_6, %c0_7] : memref<24x128xbf16, #tpu.memory_space<vmem>>, vector<24x128xbf16>
    %12 = arith.extf %11 : vector<24x128xbf16> to vector<24x128xf32>
    %13 = arith.mulf %12, %10 : vector<24x128xf32>
    %14 = arith.truncf %13 : vector<24x128xf32> to vector<24x128xbf16>
    %c0_8 = arith.constant 0 : index
    %c0_9 = arith.constant 0 : index
    %15 = vector.load %arg5[%c0_8, %c0_9] : memref<24x128xbf16, #tpu.memory_space<vmem>>, vector<24x128xbf16>
    tpu.vector_store %arg5[%c0_8, %c0_9], %14 {strides = array<i32>} : memref<24x128xbf16, #tpu.memory_space<vmem>>, vector<24x128xbf16>,
    return
  }
  func.func @transform_0(%arg0: i32) -> (i32, i32) {
    %c0_i32 = arith.constant 0 : i32
    %c0_i32_0 = arith.constant 0 : i32
    return %c0_i32, %arg0 : i32, i32
  }
  func.func @transform_1(%arg0: i32) -> (i32, i32) {
    %c0_i32 = arith.constant 0 : i32
    %c0_i32_0 = arith.constant 0 : i32
    %c0_i32_1 = arith.constant 0 : i32
    return %c0_i32, %c0_i32_0 : i32, i32
  }
  func.func @transform_2(%arg0: i32) -> (i32, i32) {
    %c0_i32 = arith.constant 0 : i32
    %c0_i32_0 = arith.constant 0 : i32
    %c0_i32_1 = arith.constant 0 : i32
    return %c0_i32, %c0_i32_0 : i32, i32
  }
  func.func @transform_3(%arg0: i32) -> (i32, i32) {
    %c0_i32 = arith.constant 0 : i32
    %c0_i32_0 = arith.constant 0 : i32
    return %c0_i32, %arg0 : i32, i32
  }
  func.func @transform_4(%arg0: i32) -> (i32, i32) {
    %c0_i32 = arith.constant 0 : i32
    %c0_i32_0 = arith.constant 0 : i32
    return %c0_i32, %arg0 : i32, i32
  }
}

module attributes {stable_mosaic.version = 11 : i64} {
  func.func @_conv_act_kernel(%arg0: i32, %arg1: memref<216x128xbf16, #tpu.memory_space<vmem>>, %arg2: memref<12x216xbf16, #tpu.memory_space<vmem>>, %arg3: memref<12x1xf32, #tpu.memory_space<vmem>>, %arg4: memref<12x128xbf16, #tpu.memory_space<vmem>>) attributes {dimension_semantics = [#tpu.dimension_semantics<parallel>], iteration_bounds = array<i64: 1>, scalar_prefetch = 0 : i64, scratch_operands = 0 : i64, tpu.core_type = #tpu.core_type<tc>, window_params = [{transform_indices = @transform_0, window_bounds = array<i64: 216, 128>}, {pipeline_mode = #tpu.pipeline_mode<synchronous>, transform_indices = @transform_1, window_bounds = array<i64: 12, 216>}, {pipeline_mode = #tpu.pipeline_mode<synchronous>, transform_indices = @transform_2, window_bounds = array<i64: 12, 1>}, {transform_indices = @transform_3, window_bounds = array<i64: 12, 128>}]} {
    %c0 = arith.constant 0 : index
    %c0_0 = arith.constant 0 : index
    %0 = vector.load %arg2[%c0, %c0_0] : memref<12x216xbf16, #tpu.memory_space<vmem>>, vector<12x216xbf16>
    %c0_1 = arith.constant 0 : index
    %c0_2 = arith.constant 0 : index
    %1 = vector.load %arg1[%c0_1, %c0_2] : memref<216x128xbf16, #tpu.memory_space<vmem>>, vector<216x128xbf16>
    %cst = arith.constant dense<0.000000e+00> : vector<12x128xf32>
    %2 = tpu.matmul %0, %1, %cst {dimension_numbers = #tpu.dot_dimension_numbers<[1], [0], [0], [1], [0, 0, 1, 1], [], []>} : vector<12x216xbf16>, vector<216x128xbf16>, vector<12x128xf32> -> vector<12x128xf32>
    %c0_3 = arith.constant 0 : index
    %c0_4 = arith.constant 0 : index
    %3 = vector.load %arg3[%c0_3, %c0_4] : memref<12x1xf32, #tpu.memory_space<vmem>>, vector<12x1xf32>
    %4 = vector.broadcast %3 : vector<12x1xf32> to vector<12x128xf32>
    %5 = arith.addf %2, %4 : vector<12x128xf32>
    %cst_5 = arith.constant 0.000000e+00 : f32
    %6 = vector.broadcast %cst_5 : f32 to vector<12x128xf32>
    %7 = arith.maximumf %5, %6 : vector<12x128xf32>
    %8 = arith.truncf %7 : vector<12x128xf32> to vector<12x128xbf16>
    %c0_6 = arith.constant 0 : index
    %c0_7 = arith.constant 0 : index
    %9 = vector.load %arg4[%c0_6, %c0_7] : memref<12x128xbf16, #tpu.memory_space<vmem>>, vector<12x128xbf16>
    tpu.vector_store %arg4[%c0_6, %c0_7], %8 {strides = array<i32>} : memref<12x128xbf16, #tpu.memory_space<vmem>>, vector<12x128xbf16>,
    return
  }
  func.func @transform_0(%arg0: i32) -> (i32, i32) {
    %c0_i32 = arith.constant 0 : i32
    %c0_i32_0 = arith.constant 0 : i32
    return %c0_i32, %arg0 : i32, i32
  }
  func.func @transform_1(%arg0: i32) -> (i32, i32) {
    %c0_i32 = arith.constant 0 : i32
    %c0_i32_0 = arith.constant 0 : i32
    %c0_i32_1 = arith.constant 0 : i32
    return %c0_i32, %c0_i32_0 : i32, i32
  }
  func.func @transform_2(%arg0: i32) -> (i32, i32) {
    %c0_i32 = arith.constant 0 : i32
    %c0_i32_0 = arith.constant 0 : i32
    %c0_i32_1 = arith.constant 0 : i32
    return %c0_i32, %c0_i32_0 : i32, i32
  }
  func.func @transform_3(%arg0: i32) -> (i32, i32) {
    %c0_i32 = arith.constant 0 : i32
    %c0_i32_0 = arith.constant 0 : i32
    return %c0_i32, %arg0 : i32, i32
  }
}

module attributes {stable_mosaic.version = 11 : i64} {
  func.func @_conv_act_kernel(%arg0: i32, %arg1: memref<30x128xbf16, #tpu.memory_space<vmem>>, %arg2: memref<1x30xbf16, #tpu.memory_space<vmem>>, %arg3: memref<1x1xf32, #tpu.memory_space<vmem>>, %arg4: memref<1x128xf32, #tpu.memory_space<vmem>>) attributes {dimension_semantics = [#tpu.dimension_semantics<parallel>], iteration_bounds = array<i64: 1>, scalar_prefetch = 0 : i64, scratch_operands = 0 : i64, tpu.core_type = #tpu.core_type<tc>, window_params = [{transform_indices = @transform_0, window_bounds = array<i64: 30, 128>}, {pipeline_mode = #tpu.pipeline_mode<synchronous>, transform_indices = @transform_1, window_bounds = array<i64: 1, 30>}, {pipeline_mode = #tpu.pipeline_mode<synchronous>, transform_indices = @transform_2, window_bounds = array<i64: 1, 1>}, {transform_indices = @transform_3, window_bounds = array<i64: 1, 128>}]} {
    %c0 = arith.constant 0 : index
    %c0_0 = arith.constant 0 : index
    %0 = vector.load %arg2[%c0, %c0_0] : memref<1x30xbf16, #tpu.memory_space<vmem>>, vector<1x30xbf16>
    %c0_1 = arith.constant 0 : index
    %c0_2 = arith.constant 0 : index
    %1 = vector.load %arg1[%c0_1, %c0_2] : memref<30x128xbf16, #tpu.memory_space<vmem>>, vector<30x128xbf16>
    %cst = arith.constant dense<0.000000e+00> : vector<1x128xf32>
    %2 = tpu.matmul %0, %1, %cst {dimension_numbers = #tpu.dot_dimension_numbers<[1], [0], [0], [1], [0, 0, 1, 1], [], []>} : vector<1x30xbf16>, vector<30x128xbf16>, vector<1x128xf32> -> vector<1x128xf32>
    %c0_3 = arith.constant 0 : index
    %c0_4 = arith.constant 0 : index
    %3 = vector.load %arg3[%c0_3, %c0_4] : memref<1x1xf32, #tpu.memory_space<vmem>>, vector<1x1xf32>
    %4 = vector.broadcast %3 : vector<1x1xf32> to vector<1x128xf32>
    %5 = arith.addf %2, %4 : vector<1x128xf32>
    %c0_5 = arith.constant 0 : index
    %c0_6 = arith.constant 0 : index
    %6 = vector.load %arg4[%c0_5, %c0_6] : memref<1x128xf32, #tpu.memory_space<vmem>>, vector<1x128xf32>
    tpu.vector_store %arg4[%c0_5, %c0_6], %5 {strides = array<i32>} : memref<1x128xf32, #tpu.memory_space<vmem>>, vector<1x128xf32>,
    return
  }
  func.func @transform_0(%arg0: i32) -> (i32, i32) {
    %c0_i32 = arith.constant 0 : i32
    %c0_i32_0 = arith.constant 0 : i32
    return %c0_i32, %arg0 : i32, i32
  }
  func.func @transform_1(%arg0: i32) -> (i32, i32) {
    %c0_i32 = arith.constant 0 : i32
    %c0_i32_0 = arith.constant 0 : i32
    %c0_i32_1 = arith.constant 0 : i32
    return %c0_i32, %c0_i32_0 : i32, i32
  }
  func.func @transform_2(%arg0: i32) -> (i32, i32) {
    %c0_i32 = arith.constant 0 : i32
    %c0_i32_0 = arith.constant 0 : i32
    %c0_i32_1 = arith.constant 0 : i32
    return %c0_i32, %c0_i32_0 : i32, i32
  }
  func.func @transform_3(%arg0: i32) -> (i32, i32) {
    %c0_i32 = arith.constant 0 : i32
    %c0_i32_0 = arith.constant 0 : i32
    return %c0_i32, %arg0 : i32, i32
  }
}

</mosaic_0001>

<bundles_post_ra>
// kernel: attention_mcnn_forward.14
= control target key start
LH: loop header
LB: loop body
LE: loop exit
PB: predicated region body
PF: predicated region fallthrough
CT: control target
= control target key end

     0   :  { %s890_s12 = smov 0   ;;  %s892_s13 = smov 0   ;;  %s1012_s0 = inlined_call_operand.vmem [shape: bf16[4,243,128], index: 0, kind: input, shape index: {}]   ;;  %s1013_s1 = inlined_call_operand.vmem [shape: bf16[60,243], index: 1, kind: input, shape index: {}]   ;;  %s1014_s2 = inlined_call_operand.vmem [shape: f32[60,1], index: 2, kind: input, shape index: {}]   ;;  %s1015_s3 = inlined_call_operand.vmem [shape: bf16[60,128], index: 3, kind: output, shape index: {}]  }
   0x1   :  { %s894_s14 = smov 0  }
   0x2 LB: > { %s22_s15 = sadd.s32 1, %s862_s13  ;;  %p662_p0 = scmp.ge.s32.totalorder %s866_s14, 1  ;;  %s866_s14 = sphi %s894_s14, %s13_s14   ;;  %s862_s13 = sphi %s892_s13, %s1017_s13   ;;  %s858_s12 = sphi %s890_s12, %s1016_s12  }
   0x3   : > { %p23_p1 = scmp.ge.s32.totalorder %s22_s15, 4  ;;  %p154_p2 = scmp.lt.s32.totalorder %s866_s14, 5 }
   0x5   : > { %s1019_s15 = smov (%p23_p1, %s22_s15), 0  ;;  %p155_p3 = pnand %p662_p0, %p154_p2 }
   0x6   : > { %p180_p4 = scmp.lt.s32.totalorder (!%p155_p3), %s858_s12, 3  ;;  %v834_v0 = vld [vmem:[%s1013_s1 + $0x4] ss:$8 sps:$4 sm:$0xff] (!%p155_p3)   ;;  %vm409_vm0 = vcmask (!%p155_p3), 941056   ;;  %v868_v2 = vmov (!%p155_p3), 0   ;;  %v234_v3 = vld [vmem:[%s1014_s2 + $0x10] sm:$0xff] (!%p155_p3) }
   0x7   : > { %158 = sbr.rel (%p155_p3) target bundleno = 304 (0x130), region = 32  ;;  %688 = vmatprep.mubr.msk.bf16.mxu0 (!%p155_p3), %vm409_vm0, %v834_v0  ;;  %v837_v1 = vld [vmem:[%s1013_s1 + $0x24] ss:$8 sps:$4 sm:$0xff] (!%p155_p3)   ;;  %815 = vset.pattern.permute.xlu1 (!%p155_p3), %v868_v2  ;;  %v235_v6 = vld [vmem:[%s1014_s2 + $0x18] sm:$0xff] (!%p155_p3)  ;;  %vm422_vm1 = vcmask (!%p155_p3), 1040384   ;;  %vm423_vm2 = vcmask (!%p155_p3), 1041408  }
   0x8   : > { %814 = vset.pattern.permute.xlu0 (!%p155_p3), %v868_v2  ;;  %690 = vmatprep.mubr.msk.bf16.mxu1 (!%p155_p3), %vm409_vm0, %v837_v1  ;;  %v232_v4 = vld [vmem:[%s1014_s2] sm:$0xff] (!%p155_p3)  ;;  %v233_v16 = vld [vmem:[%s1014_s2 + $0x8] sm:$0xff] (!%p155_p3)  ;;  %v869_v19 = vmov (!%p155_p3), 65535   ;;  %v239_v22 = vld [vmem:[%s1014_s2 + $0x38] sm:$0xf] (!%p155_p3)  ;;  %p692_p5 = scmp.ne.s32.totalorder (!%p155_p3), %s858_s12, 0 }
   0x9   : > { %252 = vperm.xlu1 (!%p155_p3), %815, %v234_v3   ;;  %242 = vperm.xlu0 (!%p155_p3), %814, %v232_v4   ;;  %v237_v18 = vld [vmem:[%s1014_s2 + $0x28] sm:$0xff] (!%p155_p3)  ;;  %v424_v20 = vsel (!%p155_p3), %vm422_vm1, 4294967295, %v869_v19  ;;  %v236_v21 = vld [vmem:[%s1014_s2 + $0x20] sm:$0xff] (!%p155_p3)  ;;  %v238_v27 = vld [vmem:[%s1014_s2 + $0x30] sm:$0xff] (!%p155_p3) }
   0xa   : > { %v425_v26 = vsel (!%p155_p3), %vm423_vm2, %v424_v20, 0  ;;  %v832_v31 = vld [vmem:[%s1013_s1] ss:$8 sps:$4 sm:$0xff] (!%p155_p3)   ;;  %v838_v33 = vld [vmem:[%s1013_s1 + $0x14] ss:$8 sps:$4 sm:$0xff] (!%p155_p3)  }
   0xb   : > { %v835_v32 = vld [vmem:[%s1013_s1 + $0x20] ss:$8 sps:$4 sm:$0xff] (!%p155_p3)   ;;  %v840_v34 = vld [vmem:[%s1013_s1 + $0x34] ss:$8 sps:$4 sm:$0x3f] (!%p155_p3)  }
   0xc   : > { %v842_v35 = vld [vmem:[%s1013_s1 + $0x10] ss:$8 sps:$4 sm:$0xff] (!%p155_p3)  }
   0xd   : > { %257 = vperm.xlu1 (!%p155_p3), %815, %v235_v6   ;;  %247 = vperm.xlu0 (!%p155_p3), %814, %v233_v16   ;;  %v843_v36 = vld [vmem:[%s1013_s1 + $0x30] ss:$8 sps:$4 sm:$0x3f] (!%p155_p3)  }
   0xe   : > { %s181_s18 = scalar_select %p180_p4, %s858_s12, 3 }
  0x10   : > { %s787_s21 = smul.u32 124, %s181_s18 }
  0x11   : > { %267 = vperm.xlu1 %815, %v237_v18   ;;  %262 = vperm.xlu0 %814, %v236_v21  }
  0x12   : > { %s926_s26 = scalar_lea.vmem %s1012_s0, %s787_s21 }
  0x13   : > { %v816_v5 = vld [vmem:[%s926_s26 + $0x40] sm:$0xff]   ;;  %v818_v8 = vld [vmem:[%s926_s26 + $0x48] sm:$0xff]   ;;  %v820_v10 = vld [vmem:[%s926_s26 + $0x50] sm:$0xff]  }
  0x14   : > { %v817_v7 = vld [vmem:[%s926_s26] sm:$0xff]   ;;  %731 = vmatprep.subr.bf16.mxu0 %v816_v5  ;;  %771 = vmatprep.subr.bf16.mxu1 %v816_v5  ;;  %v819_v9 = vld [vmem:[%s926_s26 + $0x8] sm:$0xff]   ;;  %v821_v11 = vld [vmem:[%s926_s26 + $0x10] sm:$0xff]  }
  0x15   : > { %732 = vmatpush3.bf16.msra.mxu0 %v817_v7  ;;  %779 = vmatpush3.bf16.msra.mxu1 %v817_v7  ;;  %v822_v12 = vld [vmem:[%s926_s26 + $0x58] sm:$0xff]   ;;  %v824_v14 = vld [vmem:[%s926_s26 + $0x60] sm:$0xff]   ;;  %v826_v17 = vld [vmem:[%s926_s26 + $0x68] sm:$0xff]  }
  0x16   : > { %733 = vmatprep.subr.bf16.mxu0 %v818_v8  ;;  %772 = vmatprep.subr.bf16.mxu1 %v818_v8  ;;  %v823_v13 = vld [vmem:[%s926_s26 + $0x18] sm:$0xff]   ;;  %v825_v15 = vld [vmem:[%s926_s26 + $0x20] sm:$0xff]   ;;  %v827_v23 = vld [vmem:[%s926_s26 + $0x28] sm:$0xff]  }
  0x17   : > { %v828_v24 = vld [vmem:[%s926_s26 + $0x70] sm:$0xff]   ;;  %v830_v25 = vld [vmem:[%s926_s26 + $0x78] ss:$0 sps:$4 sm:$0x33]   ;;  %277 = vperm.xlu1 %815, %v239_v22   ;;  %272 = vperm.xlu0 %814, %v238_v27  }
  0x18   : > { %v829_v28 = vld [vmem:[%s926_s26 + $0x30] sm:$0xff]   ;;  %v427_v29 = vand.u32 %v830_v25, %v425_v26  ;;  %v831_v30 = vld [vmem:[%s926_s26 + $0x38] sm:$0xff]  }
  0x19   : > { %734 = vmatpush3.bf16.msra.mxu0 %v819_v9  ;;  %780 = vmatpush3.bf16.msra.mxu1 %v819_v9 }
  0x1a   : > { %735 = vmatprep.subr.bf16.mxu0 %v820_v10  ;;  %773 = vmatprep.subr.bf16.mxu1 %v820_v10 }
  0x1d   : > { %736 = vmatpush3.bf16.msra.mxu0 %v821_v11  ;;  %781 = vmatpush3.bf16.msra.mxu1 %v821_v11 }
  0x1e   : > { %737 = vmatprep.subr.bf16.mxu0 %v822_v12  ;;  %774 = vmatprep.subr.bf16.mxu1 %v822_v12 }
  0x21   : > { %738 = vmatpush3.bf16.msra.mxu0 %v823_v13  ;;  %782 = vmatpush3.bf16.msra.mxu1 %v823_v13 }
  0x22   : > { %739 = vmatprep.subr.bf16.mxu0 %v824_v14  ;;  %775 = vmatprep.subr.bf16.mxu1 %v824_v14 }
  0x25   : > { %740 = vmatpush3.bf16.msra.mxu0 %v825_v15  ;;  %783 = vmatpush3.bf16.msra.mxu1 %v825_v15 }
  0x26   : > { %741 = vmatprep.subr.bf16.mxu0 %v826_v17  ;;  %776 = vmatprep.subr.bf16.mxu1 %v826_v17 }
  0x29   : > { %742 = vmatpush3.bf16.msra.mxu0 %v827_v23  ;;  %784 = vmatpush3.bf16.msra.mxu1 %v827_v23 }
  0x2a   : > { %743 = vmatprep.subr.bf16.mxu0 %v828_v24  ;;  %777 = vmatprep.subr.bf16.mxu1 %v828_v24 }
  0x2d   : > { %744 = vmatpush3.bf16.msra.mxu0 %v829_v28  ;;  %785 = vmatpush3.bf16.msra.mxu1 %v829_v28 }
  0x2e   : > { %745 = vmatprep.subr.bf16.mxu0 %v427_v29  ;;  %778 = vmatprep.subr.bf16.mxu1 %v427_v29 }
  0x31   : > { %746 = vmatpush3.bf16.msra.mxu0 %v831_v30  ;;  %786 = vmatpush3.bf16.msra.mxu1 %v831_v30 }
  0x34   : > { %462 = vmatmul.mubr.bf16.vlgmr.msra.gmra.mrb[0].mxu0 %v832_v31  ;;  %478 = vmatmul.mubr.bf16.vlgmr.msra.gmra.mrb[0].mxu1 %v835_v32 }
  0x35   : > { %689 = vmatprep.mubr.msk.bf16.mxu0 %vm409_vm0, %v838_v33  ;;  %691 = vmatprep.mubr.msk.bf16.mxu1 %vm409_vm0, %v840_v34 }
  0x3c   : > { %470 = vmatmul.mubr.bf16.gmra.mrb[4].mxu0 %v842_v35  ;;  %486 = vmatmul.mubr.bf16.gmra.mrb[4].mxu1 %v843_v36 }
  0x88   : > { %v243_v37 = vpop.permute.xlu0 %242  ;;  %v253_v38 = vpop.permute.xlu1 %252 }
  0x8c   : > { %v248_v39 = vpop.permute.xlu0 %247  ;;  %v258_v40 = vpop.permute.xlu1 %257 }
  0x90   : > { %v263_v41 = vpop.permute.xlu0 %262  ;;  %v268_v56 = vpop.permute.xlu1 %267 }
  0x96   : > { %v273_v61 = vpop.permute.xlu0 %272  ;;  %v278_v14 = vpop.permute.xlu1 %277 }
 0x107   : > { %v747_v42 = vpop.f32.mrb[0].mxu0  ;;  %v759_v43 = vpop.f32.mrb[0].mxu1 }
 0x108   : > { %v748_v44 = vpop.f32.mrb[1].mxu0  ;;  %v760_v45 = vpop.f32.mrb[1].mxu1 }
 0x109   : > { %v749_v46 = vadd.f32 %v748_v44, %v747_v42  ;;  %v761_v47 = vadd.f32 %v760_v45, %v759_v43  ;;  %v750_v48 = vpop.f32.mrb[2].mxu0  ;;  %v762_v49 = vpop.f32.mrb[2].mxu1 }
 0x10a   : > { %v751_v50 = vpop.f32.mrb[3].mxu0  ;;  %v763_v51 = vpop.f32.mrb[3].mxu1 }
 0x10b   : > { %v464_v52 = vadd.f32 %v749_v46, %v243_v37  ;;  %v480_v53 = vadd.f32 %v761_v47, %v263_v41  ;;  %v752_v54 = vadd.f32 %v751_v50, %v750_v48  ;;  %v764_v55 = vadd.f32 %v763_v51, %v762_v49 }
 0x10d   : > { %v494_v57 = vmax.f32 %v464_v52, 0.0  ;;  %v498_v58 = vmax.f32 %v480_v53, 0.0  ;;  %v467_v59 = vadd.f32 %v752_v54, %v248_v39  ;;  %v483_v60 = vadd.f32 %v764_v55, %v268_v56 }
 0x10f   : > { %v495_v62 = vmax.f32 %v467_v59, 0.0  ;;  %v499_v63 = vmax.f32 %v483_v60, 0.0  ;;  %v753_v0 = vpop.f32.mrb[4].mxu0  ;;  %v765_v1 = vpop.f32.mrb[4].mxu1  ;;  %506 = vst [vmem:[#allocation2] sm:$0xff] (!%p692_p5), %v494_v57  ;;  %510 = vst [vmem:[#allocation2 + $0x20] sm:$0xff] (!%p692_p5), %v498_v58 }
 0x110   : > { %v754_v2 = vpop.f32.mrb[5].mxu0  ;;  %v766_v3 = vpop.f32.mrb[5].mxu1 }
 0x111   : > { %v755_v4 = vadd.f32 %v754_v2, %v753_v0  ;;  %v767_v5 = vadd.f32 %v766_v3, %v765_v1  ;;  %v756_v6 = vpop.f32.mrb[6].mxu0  ;;  %v768_v7 = vpop.f32.mrb[6].mxu1  ;;  %505 = sbr.rel (%p692_p5) target bundleno = 282 (0x11a), region = 36  ;;  %507 = vst [vmem:[#allocation2 + $0x8] sm:$0xff] (!%p692_p5), %v495_v62  ;;  %511 = vst [vmem:[#allocation2 + $0x28] sm:$0xff] (!%p692_p5), %v499_v63 }
 0x112   : > { %v757_v8 = vpop.f32.mrb[7].mxu0  ;;  %v769_v9 = vpop.f32.mrb[7].mxu1 }
 0x113   : > { %v472_v10 = vadd.f32 %v755_v4, %v253_v38  ;;  %v488_v11 = vadd.f32 %v767_v5, %v273_v61  ;;  %v758_v12 = vadd.f32 %v757_v8, %v756_v6  ;;  %v770_v13 = vadd.f32 %v769_v9, %v768_v7 }
 0x115   : > { %v496_v15 = vmax.f32 %v472_v10, 0.0  ;;  %v500_v16 = vmax.f32 %v488_v11, 0.0  ;;  %v475_v17 = vadd.f32 %v758_v12, %v258_v40  ;;  %v491_v18 = vadd.f32 %v770_v13, %v278_v14 }
 0x117   : > { %v497_v19 = vmax.f32 %v475_v17, 0.0  ;;  %v501_v20 = vmax.f32 %v491_v18, 0.0  ;;  %508 = vst [vmem:[#allocation2 + $0x10] sm:$0xff] (!%p692_p5), %v496_v15  ;;  %512 = vst [vmem:[#allocation2 + $0x30] sm:$0xff] (!%p692_p5), %v500_v16 }
 0x119   : > { %509 = vst [vmem:[#allocation2 + $0x18] sm:$0xff] %v497_v19  ;;  %513 = vst [vmem:[#allocation2 + $0x38] sm:$0xf] %v501_v20 }
 0x11a PF: > { %p693_p6 = scmp.le.s32.totalorder %s858_s12, 0 }
 0x11b   : > { %v518_v21 = vld [vmem:[#allocation2] sm:$0xff] (!%p693_p6)  ;;  %v519_v22 = vld [vmem:[#allocation2 + $0x8] sm:$0xff] (!%p693_p6) }
 0x11c   : > { %517 = sbr.rel (%p693_p6) target bundleno = 293 (0x125), region = 40  ;;  %v526_v24 = vmax.f32 (!%p693_p6), %v518_v21, %v494_v57  ;;  %v527_v25 = vmax.f32 (!%p693_p6), %v519_v22, %v495_v62  ;;  %v522_v28 = vld [vmem:[#allocation2 + $0x20] sm:$0xff] (!%p693_p6)  ;;  %v523_v29 = vld [vmem:[#allocation2 + $0x28] sm:$0xff] (!%p693_p6) }
 0x11d   : > { %v530_v31 = vmax.f32 (!%p693_p6), %v522_v28, %v498_v58  ;;  %v531_v32 = vmax.f32 (!%p693_p6), %v523_v29, %v499_v63 }
 0x11e   : > { %534 = vst [vmem:[#allocation2] sm:$0xff] (!%p693_p6), %v526_v24  ;;  %535 = vst [vmem:[#allocation2 + $0x8] sm:$0xff] (!%p693_p6), %v527_v25 }
 0x11f   : > { %538 = vst [vmem:[#allocation2 + $0x20] sm:$0xff] (!%p693_p6), %v530_v31  ;;  %539 = vst [vmem:[#allocation2 + $0x28] sm:$0xff] (!%p693_p6), %v531_v32 }
 0x120   : > { %v520_v23 = vld [vmem:[#allocation2 + $0x10] sm:$0xff] (!%p693_p6)  ;;  %v521_v27 = vld [vmem:[#allocation2 + $0x18] sm:$0xff] (!%p693_p6) }
 0x121   : > { %v528_v26 = vmax.f32 (!%p693_p6), %v520_v23, %v496_v15  ;;  %v529_v30 = vmax.f32 (!%p693_p6), %v521_v27, %v497_v19  ;;  %v524_v33 = vld [vmem:[#allocation2 + $0x30] sm:$0xff] (!%p693_p6)  ;;  %v525_v34 = vld [vmem:[#allocation2 + $0x38] sm:$0xf] (!%p693_p6) }
 0x122   : > { %v532_v35 = vmax.f32 (!%p693_p6), %v524_v33, %v500_v16  ;;  %v533_v36 = vmax.f32 (!%p693_p6), %v525_v34, %v501_v20 }
 0x123   : > { %536 = vst [vmem:[#allocation2 + $0x10] sm:$0xff] %v528_v26  ;;  %537 = vst [vmem:[#allocation2 + $0x18] sm:$0xff] %v529_v30 }
 0x124   : > { %540 = vst [vmem:[#allocation2 + $0x30] sm:$0xff] %v532_v35  ;;  %541 = vst [vmem:[#allocation2 + $0x38] sm:$0xf] %v533_v36 }
 0x125 PF: > { %p694_p7 = scmp.ne.s32.totalorder %s858_s12, 3 }
 0x127   : > { %545 = sbr.rel (%p694_p7) target bundleno = 304 (0x130), region = 44  ;;  %v546_v37 = vld [vmem:[#allocation2] sm:$0xff] (!%p694_p7)  ;;  %v547_v38 = vld [vmem:[#allocation2 + $0x8] sm:$0xff] (!%p694_p7) }
 0x128   : > { %v717_v40 = vpack.c.bf16 (!%p694_p7), %v547_v38, %v546_v37  ;;  %v550_v42 = vld [vmem:[#allocation2 + $0x20] sm:$0xff] (!%p694_p7)  ;;  %v551_v43 = vld [vmem:[#allocation2 + $0x28] sm:$0xff] (!%p694_p7) }
 0x129   : > { %v727_v45 = vpack.c.bf16 (!%p694_p7), %v551_v43, %v550_v42 }
 0x12a   : > { %718 = vst [vmem:[%s1015_s3] sm:$0xff] (!%p694_p7), %v717_v40  }
 0x12b   : > { %v552_v46 = vld [vmem:[#allocation2 + $0x30] sm:$0xff] (!%p694_p7)  ;;  %v553_v47 = vld [vmem:[#allocation2 + $0x38] sm:$0xf] (!%p694_p7)  ;;  %730 = vst [vmem:[%s1015_s3 + $0x10] sm:$0xff] (!%p694_p7), %v727_v45  }
 0x12c   : > { %v548_v39 = vld [vmem:[#allocation2 + $0x10] sm:$0xff] (!%p694_p7)  ;;  %v549_v41 = vld [vmem:[#allocation2 + $0x18] sm:$0xff] (!%p694_p7)  ;;  %v712_v48 = vpack.c.bf16 (!%p694_p7), %v552_v46, %v552_v46  ;;  %v713_v49 = vpack.c.bf16 (!%p694_p7), %v553_v47, %v553_v47 }
 0x12d   : > { %v722_v44 = vpack.c.bf16 (!%p694_p7), %v549_v41, %v548_v39 }
 0x12e   : > { %592 = vst [vmem:[%s1015_s3 + $0x18] sm:$0xf] %v712_v48  ;;  %593 = vst [vmem:[%s1015_s3 + $0x1c] sm:$0x3] %v713_v49 }
 0x12f   : > { %729 = vst [vmem:[%s1015_s3 + $0x8] sm:$0xff] %v722_v44  }
 0x130 PF: > { %s13_s14 = sadd.s32 1, %s866_s14   ;;  %s1016_s12 = smov %s862_s13 }
 0x131   : > { %p10_p8 = scmp.ge.s32.totalorder %s13_s14, 6   ;;  %s1017_s13 = smov %s1019_s15 }
 0x133   :  { %12 = sbr.rel (!%p10_p8) target bundleno = 2 (0x2), region = 74 }

// kernel: attention_mcnn_forward.15
= control target key start
LH: loop header
LB: loop body
LE: loop exit
PB: predicated region body
PF: predicated region fallthrough
CT: control target
= control target key end

     0   :  { %s1349_s12 = smov 0   ;;  %s1351_s13 = smov 0   ;;  %s1497_s0 = inlined_call_operand.vmem [shape: bf16[4,784,128], index: 0, kind: input, shape index: {}]   ;;  %s1498_s1 = inlined_call_operand.vmem [shape: bf16[32,784], index: 1, kind: input, shape index: {}]   ;;  %s1499_s2 = inlined_call_operand.vmem [shape: f32[32,1], index: 2, kind: input, shape index: {}]   ;;  %s1500_s3 = inlined_call_operand.vmem [shape: bf16[32,128], index: 3, kind: output, shape index: {}]  }
   0x1   :  { %s1353_s14 = smov 0  }
   0x2 LB: > { %s22_s15 = sadd.s32 1, %s1322_s13  ;;  %p1022_p0 = scmp.ge.s32.totalorder %s1326_s14, 1  ;;  %s1326_s14 = sphi %s1353_s14, %s13_s14   ;;  %s1322_s13 = sphi %s1351_s13, %s1502_s13   ;;  %s1318_s12 = sphi %s1349_s12, %s1501_s12  }
   0x3   : > { %p23_p1 = scmp.ge.s32.totalorder %s22_s15, 4  ;;  %p154_p2 = scmp.lt.s32.totalorder %s1326_s14, 5 }
   0x5   : > { %s1504_s15 = smov (%p23_p1, %s22_s15), 0  ;;  %p155_p3 = pnand %p1022_p0, %p154_p2 }
   0x6   : > { %p180_p4 = scmp.lt.s32.totalorder (!%p155_p3), %s1318_s12, 3  ;;  %v1268_v0 = vld [vmem:[%s1498_s1 + $0x4] ss:$28 sps:$4 sm:$0xff] (!%p155_p3)   ;;  %v1273_v1 = vld [vmem:[%s1498_s1 + $0xc] ss:$28 sps:$4 sm:$0xff] (!%p155_p3)   ;;  %v1328_v2 = vmov (!%p155_p3), 0  }
   0x7   : > { %158 = sbr.rel (%p155_p3) target bundleno = 336 (0x150), region = 32  ;;  %1233 = vset.pattern.permute.xlu0 (!%p155_p3), %v1328_v2  ;;  %1234 = vset.pattern.permute.xlu1 (!%p155_p3), %v1328_v2  ;;  %v1266_v32 = vld [vmem:[%s1498_s1] ss:$28 sps:$4 sm:$0xff] (!%p155_p3)   ;;  %v1271_v36 = vld [vmem:[%s1498_s1 + $0x8] ss:$28 sps:$4 sm:$0xff] (!%p155_p3)   ;;  %vm695_vm0 = vcmask (!%p155_p3), 130048  }
   0x8   : > { %734 = vmatprep.mubr.bf16.mxu0 (!%p155_p3), %v1268_v0  ;;  %783 = vmatprep.mubr.bf16.mxu1 (!%p155_p3), %v1273_v1  ;;  %v1283_v34 = vld [vmem:[%s1498_s1 + $0x3c] ss:$28 sps:$4 sm:$0xff] (!%p155_p3)   ;;  %v1288_v38 = vld [vmem:[%s1498_s1 + $0x44] ss:$28 sps:$4 sm:$0xff] (!%p155_p3)   ;;  %v1298_v46 = vld [vmem:[%s1498_s1 + $0x14] ss:$28 sps:$4 sm:$0xff] (!%p155_p3)  }
   0x9   : > { %v1286_v44 = vld [vmem:[%s1498_s1 + $0x38] ss:$28 sps:$4 sm:$0xff] (!%p155_p3)   ;;  %v1290_v45 = vld [vmem:[%s1498_s1 + $0x40] ss:$28 sps:$4 sm:$0xff] (!%p155_p3)   ;;  %v1300_v55 = vld [vmem:[%s1498_s1 + $0x50] ss:$28 sps:$4 sm:$0xff] (!%p155_p3)  }
   0xa   : > { %v1299_v54 = vld [vmem:[%s1498_s1 + $0x18] ss:$28 sps:$4 sm:$0xff] (!%p155_p3)   ;;  %v307_v58 = vld [vmem:[%s1499_s2] sm:$0xff] (!%p155_p3)  ;;  %v308_v60 = vld [vmem:[%s1499_s2 + $0x8] sm:$0xff] (!%p155_p3)  ;;  %p1089_p5 = scmp.ne.s32.totalorder (!%p155_p3), %s1318_s12, 0 }
   0xb   : > { %v309_v59 = vld [vmem:[%s1499_s2 + $0x10] sm:$0xff] (!%p155_p3)  ;;  %313 = vperm.xlu0 (!%p155_p3), %1233, %v307_v58   ;;  %v310_v61 = vld [vmem:[%s1499_s2 + $0x18] sm:$0xff] (!%p155_p3)  ;;  %v1301_v2 = vld [vmem:[%s1498_s1 + $0x4c] ss:$28 sps:$4 sm:$0xff] (!%p155_p3)  }
   0xc   : > { %323 = vperm.xlu1 (!%p155_p3), %1234, %v309_v59   ;;  %v1296_v1 = vld [vmem:[%s1498_s1 + $0x10] ss:$28 sps:$4 sm:$0xff] (!%p155_p3)  }
   0xe   : > { %s181_s18 = scalar_select %p180_p4, %s1318_s12, 3 }
   0xf   : > { %318 = vperm.xlu0 %1233, %v308_v60  }
  0x10   : > { %s1207_s21 = smul.u32 392, %s181_s18  ;;  %328 = vperm.xlu1 %1234, %v310_v61  }
  0x12   : > { %s1380_s24 = scalar_lea.vmem %s1497_s0, %s1207_s21 }
  0x13   : > { %v1235_v3 = vld [vmem:[%s1380_s24 + $0x40] sm:$0xff]   ;;  %v1239_v7 = vld [vmem:[%s1380_s24 + $0x48] sm:$0xff]   ;;  %v1243_v11 = vld [vmem:[%s1380_s24 + $0x50] sm:$0xff]  }
  0x14   : > { %v1236_v4 = vld [vmem:[%s1380_s24] sm:$0xff]   ;;  %1114 = vmatprep.subr.bf16.mxu0 %v1235_v3  ;;  %v1240_v8 = vld [vmem:[%s1380_s24 + $0x8] sm:$0xff]   ;;  %v1244_v12 = vld [vmem:[%s1380_s24 + $0x10] sm:$0xff]  }
  0x15   : > { %v1237_v5 = vld [vmem:[%s1380_s24 + $0xc0] sm:$0xff]   ;;  %1115 = vmatpush3.bf16.msra.mxu0 %v1236_v4  ;;  %v1241_v9 = vld [vmem:[%s1380_s24 + $0xc8] sm:$0xff]   ;;  %v1245_v13 = vld [vmem:[%s1380_s24 + $0xd0] sm:$0xff]  }
  0x16   : > { %v1238_v6 = vld [vmem:[%s1380_s24 + $0x80] sm:$0xff]   ;;  %1142 = vmatprep.subr.bf16.mxu1 %v1237_v5  ;;  %1116 = vmatprep.subr.bf16.mxu0 %v1239_v7  ;;  %v1242_v10 = vld [vmem:[%s1380_s24 + $0x88] sm:$0xff]   ;;  %v1246_v14 = vld [vmem:[%s1380_s24 + $0x90] sm:$0xff]  }
  0x17   : > { %1143 = vmatpush3.bf16.msra.mxu1 %v1238_v6  ;;  %v1247_v15 = vld [vmem:[%s1380_s24 + $0x58] sm:$0xff]   ;;  %v1251_v19 = vld [vmem:[%s1380_s24 + $0x60] sm:$0xff]   ;;  %v1255_v23 = vld [vmem:[%s1380_s24 + $0x68] sm:$0xff]  }
  0x18   : > { %1144 = vmatprep.subr.bf16.mxu1 %v1241_v9  ;;  %v1248_v16 = vld [vmem:[%s1380_s24 + $0x18] sm:$0xff]   ;;  %v1252_v20 = vld [vmem:[%s1380_s24 + $0x20] sm:$0xff]   ;;  %v1256_v24 = vld [vmem:[%s1380_s24 + $0x28] sm:$0xff]  }
  0x19   : > { %1117 = vmatpush3.bf16.msra.mxu0 %v1240_v8  ;;  %v1249_v17 = vld [vmem:[%s1380_s24 + $0xd8] sm:$0xff]   ;;  %v1253_v21 = vld [vmem:[%s1380_s24 + $0xe0] sm:$0xff]   ;;  %v1257_v25 = vld [vmem:[%s1380_s24 + $0xe8] sm:$0xff]  }
  0x1a   : > { %1118 = vmatprep.subr.bf16.mxu0 %v1243_v11  ;;  %v1250_v18 = vld [vmem:[%s1380_s24 + $0x98] sm:$0xff]   ;;  %v1254_v22 = vld [vmem:[%s1380_s24 + $0xa0] sm:$0xff]   ;;  %v1258_v26 = vld [vmem:[%s1380_s24 + $0xa8] sm:$0xff]  }
  0x1b   : > { %1145 = vmatpush3.bf16.msra.mxu1 %v1242_v10  ;;  %v1259_v27 = vld [vmem:[%s1380_s24 + $0x70] sm:$0xff]   ;;  %v1263_v31 = vld [vmem:[%s1380_s24 + $0x78] sm:$0xff]   ;;  %v1270_v39 = vld [vmem:[%s1380_s24 + $0x140] sm:$0xff]  }
  0x1c   : > { %1146 = vmatprep.subr.bf16.mxu1 %v1245_v13  ;;  %v1260_v28 = vld [vmem:[%s1380_s24 + $0x30] sm:$0xff]   ;;  %v1264_v33 = vld [vmem:[%s1380_s24 + $0x38] sm:$0xff]   ;;  %v1274_v40 = vld [vmem:[%s1380_s24 + $0x100] sm:$0xff]  }
  0x1d   : > { %1119 = vmatpush3.bf16.msra.mxu0 %v1244_v12  ;;  %v1261_v29 = vld [vmem:[%s1380_s24 + $0xf0] sm:$0xff]   ;;  %v1265_v35 = vld [vmem:[%s1380_s24 + $0xf8] sm:$0xff]   ;;  %v1275_v41 = vld [vmem:[%s1380_s24 + $0x148] sm:$0xff]  }
  0x1e   : > { %1120 = vmatprep.subr.bf16.mxu0 %v1247_v15  ;;  %v1262_v30 = vld [vmem:[%s1380_s24 + $0xb0] sm:$0xff]   ;;  %v1269_v37 = vld [vmem:[%s1380_s24 + $0xb8] sm:$0xff]   ;;  %v1276_v42 = vld [vmem:[%s1380_s24 + $0x108] sm:$0xff]  }
  0x1f   : > { %1147 = vmatpush3.bf16.msra.mxu1 %v1246_v14  ;;  %v1277_v43 = vld [vmem:[%s1380_s24 + $0x150] sm:$0xff]   ;;  %v1279_v48 = vld [vmem:[%s1380_s24 + $0x158] sm:$0xff]   ;;  %v1281_v50 = vld [vmem:[%s1380_s24 + $0x160] sm:$0xff]  }
  0x20   : > { %1148 = vmatprep.subr.bf16.mxu1 %v1249_v17  ;;  %v1278_v47 = vld [vmem:[%s1380_s24 + $0x110] sm:$0xff]   ;;  %v1280_v49 = vld [vmem:[%s1380_s24 + $0x118] sm:$0xff]   ;;  %v1293_v51 = vld [vmem:[%s1380_s24 + $0x180] sm:$0xff]  }
  0x21   : > { %1121 = vmatpush3.bf16.msra.mxu0 %v1248_v16  ;;  %v1282_v52 = vld [vmem:[%s1380_s24 + $0x120] sm:$0xff]   ;;  %v1285_v53 = vld [vmem:[%s1380_s24 + $0x168] sm:$0xff]   ;;  %v1291_v57 = vld [vmem:[%s1380_s24 + $0x170] sm:$0xff]  }
  0x22   : > { %1122 = vmatprep.subr.bf16.mxu0 %v1251_v19  ;;  %v1287_v56 = vld [vmem:[%s1380_s24 + $0x128] sm:$0xff]   ;;  %v1292_v62 = vld [vmem:[%s1380_s24 + $0x130] sm:$0xff]   ;;  %v1294_v63 = vld [vmem:[%s1380_s24 + $0x178] sm:$0xff]  }
  0x23   : > { %1149 = vmatpush3.bf16.msra.mxu1 %v1250_v18  ;;  %v1295_v0 = vld [vmem:[%s1380_s24 + $0x138] sm:$0xff]   ;;  %v1303_v3 = vld [vmem:[%s1498_s1 + $0x48] ss:$28 sps:$4 sm:$0xff]  }
  0x24   : > { %1150 = vmatprep.subr.bf16.mxu1 %v1253_v21 }
  0x25   : > { %1123 = vmatpush3.bf16.msra.mxu0 %v1252_v20 }
  0x26   : > { %1124 = vmatprep.subr.bf16.mxu0 %v1255_v23 }
  0x27   : > { %1151 = vmatpush3.bf16.msra.mxu1 %v1254_v22 }
  0x28   : > { %1152 = vmatprep.subr.bf16.mxu1 %v1257_v25 }
  0x29   : > { %1125 = vmatpush3.bf16.msra.mxu0 %v1256_v24 }
  0x2a   : > { %1126 = vmatprep.subr.bf16.mxu0 %v1259_v27 }
  0x2b   : > { %1153 = vmatpush3.bf16.msra.mxu1 %v1258_v26 }
  0x2c   : > { %1154 = vmatprep.subr.bf16.mxu1 %v1261_v29 }
  0x2d   : > { %1127 = vmatpush3.bf16.msra.mxu0 %v1260_v28 }
  0x2e   : > { %1128 = vmatprep.subr.bf16.mxu0 %v1263_v31 }
  0x2f   : > { %1155 = vmatpush3.bf16.msra.mxu1 %v1262_v30 }
  0x30   : > { %1156 = vmatprep.subr.bf16.mxu1 %v1265_v35 }
  0x31   : > { %1129 = vmatpush3.bf16.msra.mxu0 %v1264_v33 }
  0x32   : > { %1170 = vmatprep.subr.bf16.mxu0 %v1270_v39 }
  0x33   : > { %1157 = vmatpush3.bf16.msra.mxu1 %v1269_v37 }
  0x34   : > { %735 = vmatmul.mubr.bf16.vlgmr.msra.gmra.mrb[0].mxu0 %v1266_v32  ;;  %1201 = vmatprep.subr.bf16.mxu1 %v1293_v51 }
  0x35   : > { %1171 = vmatpush3.bf16.msra.mxu0 %v1274_v40  ;;  %742 = vmatprep.mubr.bf16.mxu0 %v1283_v34 }
  0x36   : > { %784 = vmatmul.mubr.bf16.vlgmr.msra.gmra.mrb[0].mxu1 %v1271_v36  ;;  %1172 = vmatprep.subr.bf16.mxu0 %v1275_v41 }
  0x37   : > { %791 = vmatprep.mubr.bf16.mxu1 %v1288_v38  ;;  %1202 = vmatpush3.bf16.msra.mxu1 %v1293_v51 }
  0x39   : > { %1173 = vmatpush3.bf16.msra.mxu0 %v1276_v42 }
  0x3a   : > { %1174 = vmatprep.subr.bf16.mxu0 %v1277_v43 }
  0x3c   : > { %743 = vmatmul.mubr.bf16.gmra.mrb[4].mxu0 %v1286_v44 }
  0x3d   : > { %1175 = vmatpush3.bf16.msra.mxu0 %v1278_v47  ;;  %832 = vmatprep.mubr.bf16.mxu0 %v1298_v46 }
  0x3e   : > { %1176 = vmatprep.subr.bf16.mxu0 %v1279_v48  ;;  %792 = vmatmul.mubr.bf16.gmra.mrb[4].mxu1 %v1290_v45 }
  0x3f   : > { %1203 = vmatprep.mubr.msk.bf16.mxu1 %vm695_vm0, %v1299_v54 }
  0x41   : > { %1177 = vmatpush3.bf16.msra.mxu0 %v1280_v49 }
  0x42   : > { %1178 = vmatprep.subr.bf16.mxu0 %v1281_v50 }
  0x45   : > { %1179 = vmatpush3.bf16.msra.mxu0 %v1282_v52 }
  0x46   : > { %1180 = vmatprep.subr.bf16.mxu0 %v1285_v53  ;;  %1204 = vmatmul.mubr.msk.bf16.vlgmr.msra.gmra.mrb[8].mxu1 %vm695_vm0, %v1300_v55 }
  0x49   : > { %1181 = vmatpush3.bf16.msra.mxu0 %v1287_v56 }
  0x4a   : > { %1182 = vmatprep.subr.bf16.mxu0 %v1291_v57 }
  0x4d   : > { %1183 = vmatpush3.bf16.msra.mxu0 %v1292_v62 }
  0x4e   : > { %1184 = vmatprep.subr.bf16.mxu0 %v1294_v63 }
  0x51   : > { %1185 = vmatpush3.bf16.msra.mxu0 %v1295_v0 }
  0x54   : > { %833 = vmatmul.mubr.bf16.vlgmr.msra.gmra.mrb[8].mxu0 %v1296_v1 }
  0x55   : > { %840 = vmatprep.mubr.bf16.mxu0 %v1301_v2 }
  0x5c   : > { %841 = vmatmul.mubr.bf16.gmra.mrb[12].mxu0 %v1303_v3 }
  0x8a   : > { %v314_v4 = vpop.permute.xlu0 %313 }
  0x8b   : > { %v324_v6 = vpop.permute.xlu1 %323 }
  0x8e   : > { %v319_v8 = vpop.permute.xlu0 %318 }
  0x8f   : > { %v329_v25 = vpop.permute.xlu1 %328 }
 0x107   : > { %v1130_v5 = vpop.f32.mrb[0].mxu0 }
 0x108   : > { %v1131_v7 = vpop.f32.mrb[1].mxu0 }
 0x109   : > { %v1132_v9 = vadd.f32 %v1131_v7, %v1130_v5  ;;  %v1133_v10 = vpop.f32.mrb[2].mxu0  ;;  %v1158_v11 = vpop.f32.mrb[0].mxu1 }
 0x10a   : > { %v1134_v12 = vpop.f32.mrb[3].mxu0  ;;  %v1159_v13 = vpop.f32.mrb[1].mxu1 }
 0x10b   : > { %v737_v14 = vadd.f32 %v1132_v9, %v314_v4  ;;  %v1135_v15 = vadd.f32 %v1134_v12, %v1133_v10  ;;  %v1160_v16 = vadd.f32 %v1159_v13, %v1158_v11  ;;  %v1161_v17 = vpop.f32.mrb[2].mxu1 }
 0x10c   : > { %v1162_v18 = vpop.f32.mrb[3].mxu1 }
 0x10d   : > { %v786_v19 = vadd.f32 %v1160_v16, %v737_v14  ;;  %v740_v20 = vadd.f32 %v1135_v15, %v319_v8  ;;  %v1163_v21 = vadd.f32 %v1162_v18, %v1161_v17 }
 0x10f   : > { %v789_v22 = vadd.f32 %v1163_v21, %v740_v20  ;;  %v1136_v23 = vpop.f32.mrb[4].mxu0 }
 0x110   : > { %v1137_v24 = vpop.f32.mrb[5].mxu0 }
 0x111   : > { %v1138_v26 = vadd.f32 %v1137_v24, %v1136_v23  ;;  %v1139_v27 = vpop.f32.mrb[6].mxu0  ;;  %v1164_v28 = vpop.f32.mrb[4].mxu1 }
 0x112   : > { %v1140_v29 = vpop.f32.mrb[7].mxu0  ;;  %v1165_v30 = vpop.f32.mrb[5].mxu1 }
 0x113   : > { %v745_v31 = vadd.f32 %v1138_v26, %v324_v6  ;;  %v1141_v32 = vadd.f32 %v1140_v29, %v1139_v27  ;;  %v1166_v33 = vadd.f32 %v1165_v30, %v1164_v28  ;;  %v1167_v34 = vpop.f32.mrb[6].mxu1 }
 0x114   : > { %v1168_v35 = vpop.f32.mrb[7].mxu1 }
 0x115   : > { %v794_v36 = vadd.f32 %v1166_v33, %v745_v31  ;;  %v748_v37 = vadd.f32 %v1141_v32, %v329_v25  ;;  %v1169_v38 = vadd.f32 %v1168_v35, %v1167_v34 }
 0x117   : > { %v797_v39 = vadd.f32 %v1169_v38, %v748_v37 }
 0x119   : > { %v1205_v40 = vpop.f32.mrb[8].mxu1 }
 0x11a   : > { %v883_v41 = vpop.f32.mrb[9].mxu1 }
 0x11b   : > { %v1206_v42 = vpop.f32.mrb[10].mxu1 }
 0x11c   : > { %v886_v43 = vpop.f32.mrb[11].mxu1 }
 0x127   : > { %v1186_v44 = vpop.f32.mrb[8].mxu0 }
 0x128   : > { %v1187_v45 = vpop.f32.mrb[9].mxu0 }
 0x129   : > { %v1188_v46 = vadd.f32 %v1187_v45, %v1186_v44  ;;  %v1189_v47 = vpop.f32.mrb[10].mxu0 }
 0x12a   : > { %v1190_v48 = vpop.f32.mrb[11].mxu0 }
 0x12b   : > { %v1191_v49 = vadd.f32 %v1190_v48, %v1189_v47  ;;  %v835_v50 = vadd.f32 %v1188_v46, %v786_v19 }
 0x12d   : > { %v884_v51 = vadd.f32 %v883_v41, %v835_v50  ;;  %v838_v52 = vadd.f32 %v1191_v49, %v789_v22 }
 0x12f   : > { %v898_v53 = vmax.f32 %v884_v51, 0.0  ;;  %v887_v54 = vadd.f32 %v886_v43, %v838_v52  ;;  %v1192_v55 = vpop.f32.mrb[12].mxu0 }
 0x130   : > { %v1193_v56 = vpop.f32.mrb[13].mxu0 }
 0x131   : > { %v899_v57 = vmax.f32 %v887_v54, 0.0  ;;  %v1194_v58 = vadd.f32 %v1193_v56, %v1192_v55  ;;  %v1195_v59 = vpop.f32.mrb[14].mxu0  ;;  %906 = vst [vmem:[#allocation2] sm:$0xff] (!%p1089_p5), %v898_v53 }
 0x132   : > { %v1196_v60 = vpop.f32.mrb[15].mxu0 }
 0x133   : > { %v843_v61 = vadd.f32 %v1194_v58, %v794_v36  ;;  %v1197_v62 = vadd.f32 %v1196_v60, %v1195_v59  ;;  %905 = sbr.rel (%p1089_p5) target bundleno = 316 (0x13c), region = 36  ;;  %907 = vst [vmem:[#allocation2 + $0x8] sm:$0xff] (!%p1089_p5), %v899_v57 }
 0x135   : > { %v892_v63 = vadd.f32 %v1205_v40, %v843_v61  ;;  %v846_v0 = vadd.f32 %v1197_v62, %v797_v39 }
 0x137   : > { %v900_v1 = vmax.f32 %v892_v63, 0.0  ;;  %v895_v2 = vadd.f32 %v1206_v42, %v846_v0 }
 0x139   : > { %v901_v3 = vmax.f32 %v895_v2, 0.0  ;;  %908 = vst [vmem:[#allocation2 + $0x10] sm:$0xff] (!%p1089_p5), %v900_v1 }
 0x13b   : > { %909 = vst [vmem:[#allocation2 + $0x18] sm:$0xff] %v901_v3 }
 0x13c PF: > { %p1090_p6 = scmp.le.s32.totalorder %s1318_s12, 0 }
 0x13d   : > { %v914_v4 = vld [vmem:[#allocation2] sm:$0xff] (!%p1090_p6)  ;;  %v915_v5 = vld [vmem:[#allocation2 + $0x8] sm:$0xff] (!%p1090_p6) }
 0x13e   : > { %913 = sbr.rel (%p1090_p6) target bundleno = 326 (0x146), region = 40  ;;  %v918_v7 = vmax.f32 (!%p1090_p6), %v914_v4, %v898_v53  ;;  %v919_v8 = vmax.f32 (!%p1090_p6), %v915_v5, %v899_v57 }
 0x140   : > { %922 = vst [vmem:[#allocation2] sm:$0xff] (!%p1090_p6), %v918_v7  ;;  %923 = vst [vmem:[#allocation2 + $0x8] sm:$0xff] (!%p1090_p6), %v919_v8 }
 0x142   : > { %v916_v6 = vld [vmem:[#allocation2 + $0x10] sm:$0xff] (!%p1090_p6)  ;;  %v917_v10 = vld [vmem:[#allocation2 + $0x18] sm:$0xff] (!%p1090_p6) }
 0x143   : > { %v920_v9 = vmax.f32 (!%p1090_p6), %v916_v6, %v900_v1  ;;  %v921_v11 = vmax.f32 (!%p1090_p6), %v917_v10, %v901_v3 }
 0x145   : > { %924 = vst [vmem:[#allocation2 + $0x10] sm:$0xff] %v920_v9  ;;  %925 = vst [vmem:[#allocation2 + $0x18] sm:$0xff] %v921_v11 }
 0x146 PF: > { %p1091_p7 = scmp.ne.s32.totalorder %s1318_s12, 3 }
 0x148   : > { %929 = sbr.rel (%p1091_p7) target bundleno = 336 (0x150), region = 44  ;;  %v930_v12 = vld [vmem:[#allocation2] sm:$0xff] (!%p1091_p7)  ;;  %v931_v13 = vld [vmem:[#allocation2 + $0x8] sm:$0xff] (!%p1091_p7) }
 0x149   : > { %v1106_v15 = vpack.c.bf16 (!%p1091_p7), %v931_v13, %v930_v12 }
 0x14b   : > { %1107 = vst [vmem:[%s1500_s3] sm:$0xff] (!%p1091_p7), %v1106_v15  }
 0x14c   : > { %v932_v14 = vld [vmem:[#allocation2 + $0x10] sm:$0xff] (!%p1091_p7)  ;;  %v933_v16 = vld [vmem:[#allocation2 + $0x18] sm:$0xff] (!%p1091_p7) }
 0x14d   : > { %v1111_v17 = vpack.c.bf16 (!%p1091_p7), %v933_v16, %v932_v14 }
 0x14f   : > { %1113 = vst [vmem:[%s1500_s3 + $0x8] sm:$0xff] %v1111_v17  }
 0x150 PF: > { %s13_s14 = sadd.s32 1, %s1326_s14   ;;  %s1501_s12 = smov %s1322_s13 }
 0x151   : > { %p10_p8 = scmp.ge.s32.totalorder %s13_s14, 6   ;;  %s1502_s13 = smov %s1504_s15 }
 0x153   :  { %12 = sbr.rel (!%p10_p8) target bundleno = 2 (0x2), region = 74 }

// kernel: attention_mcnn_forward.16
= control target key start
LH: loop header
LB: loop body
LE: loop exit
PB: predicated region body
PF: predicated region fallthrough
CT: control target
= control target key end

     0   :  { %v1582_v1 = vmov 0   ;;  %vm1584_vm0 = vmmov 0   ;;  %vm890_vm1 = vcmask 261120   ;;  %s1947_s0 = inlined_call_operand.vmem [shape: bf16[1568,128], index: 0, kind: input, shape index: {}]   ;;  %s1948_s1 = inlined_call_operand.vmem [shape: bf16[16,1568], index: 1, kind: input, shape index: {}]   ;;  %s1949_s2 = inlined_call_operand.vmem [shape: f32[16,1], index: 2, kind: input, shape index: {}]   ;;  %s1950_s3 = inlined_call_operand.vmem [shape: bf16[16,128], index: 3, kind: output, shape index: {}]  }
   0x1   :  { %v1465_v0 = vld [vmem:[%s1947_s0 + $0x40] sm:$0xff]   ;;  %1464 = vset.pattern.permute.xlu0 %v1582_v1  ;;  %v1469_v5 = vld [vmem:[%s1947_s0 + $0x48] sm:$0xff]   ;;  %v1473_v9 = vld [vmem:[%s1947_s0 + $0x50] sm:$0xff]  }
   0x2   :  { %v1466_v2 = vld [vmem:[%s1947_s0] sm:$0xff]   ;;  %1318 = vmatprep.subr.bf16.mxu0 %v1465_v0  ;;  %v1470_v6 = vld [vmem:[%s1947_s0 + $0x8] sm:$0xff]   ;;  %v1474_v10 = vld [vmem:[%s1947_s0 + $0x10] sm:$0xff]  }
   0x3   :  { %v1467_v3 = vld [vmem:[%s1947_s0 + $0xc0] sm:$0xff]   ;;  %1319 = vmatpush3.bf16.msra.mxu0 %v1466_v2  ;;  %v1471_v7 = vld [vmem:[%s1947_s0 + $0xc8] sm:$0xff]   ;;  %v1475_v11 = vld [vmem:[%s1947_s0 + $0xd0] sm:$0xff]  }
   0x4   :  { %v1468_v4 = vld [vmem:[%s1947_s0 + $0x80] sm:$0xff]   ;;  %1340 = vmatprep.subr.bf16.mxu1 %v1467_v3  ;;  %1320 = vmatprep.subr.bf16.mxu0 %v1469_v5  ;;  %v1472_v8 = vld [vmem:[%s1947_s0 + $0x88] sm:$0xff]   ;;  %v1476_v12 = vld [vmem:[%s1947_s0 + $0x90] sm:$0xff]  }
   0x5   :  { %1341 = vmatpush3.bf16.msra.mxu1 %v1468_v4  ;;  %v1477_v13 = vld [vmem:[%s1947_s0 + $0x58] sm:$0xff]   ;;  %v1481_v17 = vld [vmem:[%s1947_s0 + $0x60] sm:$0xff]   ;;  %v1485_v21 = vld [vmem:[%s1947_s0 + $0x68] sm:$0xff]  }
   0x6   :  { %1342 = vmatprep.subr.bf16.mxu1 %v1471_v7  ;;  %v1478_v14 = vld [vmem:[%s1947_s0 + $0x18] sm:$0xff]   ;;  %v1482_v18 = vld [vmem:[%s1947_s0 + $0x20] sm:$0xff]   ;;  %v1486_v22 = vld [vmem:[%s1947_s0 + $0x28] sm:$0xff]  }
   0x7   :  { %1321 = vmatpush3.bf16.msra.mxu0 %v1470_v6  ;;  %v1479_v15 = vld [vmem:[%s1947_s0 + $0xd8] sm:$0xff]   ;;  %v1483_v19 = vld [vmem:[%s1947_s0 + $0xe0] sm:$0xff]   ;;  %v1487_v23 = vld [vmem:[%s1947_s0 + $0xe8] sm:$0xff]  }
   0x8   :  { %1322 = vmatprep.subr.bf16.mxu0 %v1473_v9  ;;  %v1480_v16 = vld [vmem:[%s1947_s0 + $0x98] sm:$0xff]   ;;  %v1484_v20 = vld [vmem:[%s1947_s0 + $0xa0] sm:$0xff]   ;;  %v1488_v24 = vld [vmem:[%s1947_s0 + $0xa8] sm:$0xff]  }
   0x9   :  { %1343 = vmatpush3.bf16.msra.mxu1 %v1472_v8  ;;  %v1489_v25 = vld [vmem:[%s1947_s0 + $0x70] sm:$0xff]   ;;  %v1493_v29 = vld [vmem:[%s1947_s0 + $0x78] sm:$0xff]   ;;  %v1500_v35 = vld [vmem:[%s1947_s0 + $0x140] sm:$0xff]  }
   0xa   :  { %1344 = vmatprep.subr.bf16.mxu1 %v1475_v11  ;;  %v1490_v26 = vld [vmem:[%s1947_s0 + $0x30] sm:$0xff]   ;;  %v1494_v30 = vld [vmem:[%s1947_s0 + $0x38] sm:$0xff]   ;;  %v1503_v37 = vld [vmem:[%s1948_s1 + $0xc] ss:$52 sps:$4 sm:$0xff]  }
   0xb   :  { %1323 = vmatpush3.bf16.msra.mxu0 %v1474_v10  ;;  %v1491_v27 = vld [vmem:[%s1947_s0 + $0xf0] sm:$0xff]   ;;  %v1495_v31 = vld [vmem:[%s1947_s0 + $0xf8] sm:$0xff]   ;;  %v1504_v38 = vld [vmem:[%s1947_s0 + $0x100] sm:$0xff]   ;;  %967 = vmatprep.mubr.bf16.mxu1 %v1503_v37 }
   0xc   :  { %1324 = vmatprep.subr.bf16.mxu0 %v1477_v13  ;;  %v1492_v28 = vld [vmem:[%s1947_s0 + $0xb0] sm:$0xff]   ;;  %v1496_v32 = vld [vmem:[%s1947_s0 + $0xb8] sm:$0xff]   ;;  %v1505_v39 = vld [vmem:[%s1947_s0 + $0x1c0] sm:$0xff]  }
   0xd   :  { %1345 = vmatpush3.bf16.msra.mxu1 %v1476_v12  ;;  %v1497_v33 = vld [vmem:[%s1948_s1] ss:$52 sps:$4 sm:$0xff]   ;;  %v1499_v34 = vld [vmem:[%s1948_s1 + $0x4] ss:$52 sps:$4 sm:$0xff]   ;;  %v1501_v36 = vld [vmem:[%s1948_s1 + $0x8] ss:$52 sps:$4 sm:$0xff]  }
   0xe   :  { %1346 = vmatprep.subr.bf16.mxu1 %v1479_v15  ;;  %926 = vmatprep.mubr.bf16.mxu0 %v1499_v34  ;;  %v1506_v40 = vld [vmem:[%s1947_s0 + $0x180] sm:$0xff]   ;;  %v1507_v41 = vld [vmem:[%s1947_s0 + $0x148] sm:$0xff]   ;;  %v1511_v45 = vld [vmem:[%s1947_s0 + $0x150] sm:$0xff]  }
   0xf   :  { %1325 = vmatpush3.bf16.msra.mxu0 %v1478_v14  ;;  %v1508_v42 = vld [vmem:[%s1947_s0 + $0x108] sm:$0xff]   ;;  %v1512_v46 = vld [vmem:[%s1947_s0 + $0x110] sm:$0xff]   ;;  %v1515_v49 = vld [vmem:[%s1947_s0 + $0x158] sm:$0xff]  }
  0x10   :  { %1326 = vmatprep.subr.bf16.mxu0 %v1481_v17  ;;  %v1509_v43 = vld [vmem:[%s1947_s0 + $0x1c8] sm:$0xff]   ;;  %v1513_v47 = vld [vmem:[%s1947_s0 + $0x1d0] sm:$0xff]   ;;  %v1516_v50 = vld [vmem:[%s1947_s0 + $0x118] sm:$0xff]  }
  0x11   :  { %1347 = vmatpush3.bf16.msra.mxu1 %v1480_v16  ;;  %v1510_v44 = vld [vmem:[%s1947_s0 + $0x188] sm:$0xff]   ;;  %v1514_v48 = vld [vmem:[%s1947_s0 + $0x190] sm:$0xff]   ;;  %v1517_v51 = vld [vmem:[%s1947_s0 + $0x1d8] sm:$0xff]  }
  0x12   :  { %1348 = vmatprep.subr.bf16.mxu1 %v1483_v19  ;;  %v1518_v52 = vld [vmem:[%s1947_s0 + $0x198] sm:$0xff]   ;;  %v1519_v53 = vld [vmem:[%s1947_s0 + $0x160] sm:$0xff]   ;;  %v1523_v57 = vld [vmem:[%s1947_s0 + $0x168] sm:$0xff]  }
  0x13   :  { %1327 = vmatpush3.bf16.msra.mxu0 %v1482_v18  ;;  %v1520_v54 = vld [vmem:[%s1947_s0 + $0x120] sm:$0xff]   ;;  %v1524_v58 = vld [vmem:[%s1947_s0 + $0x128] sm:$0xff]   ;;  %v1527_v61 = vld [vmem:[%s1947_s0 + $0x170] sm:$0xff]  }
  0x14   :  { %1328 = vmatprep.subr.bf16.mxu0 %v1485_v21  ;;  %v1521_v55 = vld [vmem:[%s1947_s0 + $0x1e0] sm:$0xff]   ;;  %v1525_v59 = vld [vmem:[%s1947_s0 + $0x1e8] sm:$0xff]   ;;  %v1528_v62 = vld [vmem:[%s1947_s0 + $0x130] sm:$0xff]  }
  0x15   :  { %1349 = vmatpush3.bf16.msra.mxu1 %v1484_v20  ;;  %v1522_v56 = vld [vmem:[%s1947_s0 + $0x1a0] sm:$0xff]   ;;  %v1526_v60 = vld [vmem:[%s1947_s0 + $0x1a8] sm:$0xff]   ;;  %v1529_v63 = vld [vmem:[%s1947_s0 + $0x1f0] sm:$0xff]  }
  0x16   :  { %1350 = vmatprep.subr.bf16.mxu1 %v1487_v23  ;;  %v1530_v0 = vld [vmem:[%s1947_s0 + $0x1b0] sm:$0xff]   ;;  %v1531_v1 = vld [vmem:[%s1947_s0 + $0x178] sm:$0xff]   ;;  %v1538_v7 = vld [vmem:[%s1947_s0 + $0x240] sm:$0xff]  }
  0x17   :  { %1329 = vmatpush3.bf16.msra.mxu0 %v1486_v22  ;;  %v1532_v2 = vld [vmem:[%s1947_s0 + $0x138] sm:$0xff]   ;;  %v1535_v5 = vld [vmem:[%s1948_s1 + $0x10] ss:$52 sps:$4 sm:$0xff]   ;;  %v1537_v6 = vld [vmem:[%s1948_s1 + $0x14] ss:$52 sps:$4 sm:$0xff]  }
  0x18   :  { %1330 = vmatprep.subr.bf16.mxu0 %v1489_v25  ;;  %v1533_v3 = vld [vmem:[%s1947_s0 + $0x1f8] sm:$0xff]   ;;  %v1542_v10 = vld [vmem:[%s1947_s0 + $0x200] sm:$0xff]   ;;  %v1545_v13 = vld [vmem:[%s1947_s0 + $0x248] sm:$0xff]  }
  0x19   :  { %1351 = vmatpush3.bf16.msra.mxu1 %v1488_v24  ;;  %v1534_v4 = vld [vmem:[%s1947_s0 + $0x1b8] sm:$0xff]   ;;  %v1543_v11 = vld [vmem:[%s1947_s0 + $0x2c0] sm:$0xff]   ;;  %v1546_v14 = vld [vmem:[%s1947_s0 + $0x208] sm:$0xff]  }
  0x1a   :  { %1352 = vmatprep.subr.bf16.mxu1 %v1491_v27  ;;  %v1539_v8 = vld [vmem:[%s1948_s1 + $0x18] ss:$52 sps:$4 sm:$0xff]   ;;  %v1541_v9 = vld [vmem:[%s1948_s1 + $0x1c] ss:$52 sps:$4 sm:$0xff]   ;;  %v1544_v12 = vld [vmem:[%s1947_s0 + $0x280] sm:$0xff]  }
  0x1b   :  { %1331 = vmatpush3.bf16.msra.mxu0 %v1490_v26  ;;  %v1547_v15 = vld [vmem:[%s1947_s0 + $0x2c8] sm:$0xff]   ;;  %v1549_v17 = vld [vmem:[%s1947_s0 + $0x250] sm:$0xff]   ;;  %v1553_v21 = vld [vmem:[%s1947_s0 + $0x258] sm:$0xff]  }
  0x1c   :  { %1332 = vmatprep.subr.bf16.mxu0 %v1493_v29  ;;  %v1548_v16 = vld [vmem:[%s1947_s0 + $0x288] sm:$0xff]   ;;  %v1550_v18 = vld [vmem:[%s1947_s0 + $0x210] sm:$0xff]   ;;  %v1554_v22 = vld [vmem:[%s1947_s0 + $0x218] sm:$0xff]  }
  0x1d   :  { %1353 = vmatpush3.bf16.msra.mxu1 %v1492_v28  ;;  %v1551_v19 = vld [vmem:[%s1947_s0 + $0x2d0] sm:$0xff]   ;;  %v1555_v23 = vld [vmem:[%s1947_s0 + $0x2d8] sm:$0xff]   ;;  %v1557_v25 = vld [vmem:[%s1947_s0 + $0x260] sm:$0xff]  }
  0x1e   :  { %1354 = vmatprep.subr.bf16.mxu1 %v1495_v31  ;;  %v1552_v20 = vld [vmem:[%s1947_s0 + $0x290] sm:$0xff]   ;;  %v1556_v24 = vld [vmem:[%s1947_s0 + $0x298] sm:$0xff]   ;;  %v1558_v26 = vld [vmem:[%s1947_s0 + $0x220] sm:$0xff]  }
  0x1f   :  { %1333 = vmatpush3.bf16.msra.mxu0 %v1494_v30  ;;  %v1559_v27 = vld [vmem:[%s1947_s0 + $0x2e0] sm:$0xff]   ;;  %v1561_v29 = vld [vmem:[%s1947_s0 + $0x268] sm:$0xff]   ;;  %v1566_v34 = vld [vmem:[%s1947_s0 + $0x230] sm:$0xff]  }
  0x20   :  { %1362 = vmatprep.subr.bf16.mxu0 %v1500_v35  ;;  %v1560_v28 = vld [vmem:[%s1947_s0 + $0x2a0] sm:$0xff]   ;;  %v1562_v30 = vld [vmem:[%s1947_s0 + $0x228] sm:$0xff]   ;;  %v1567_v35 = vld [vmem:[%s1947_s0 + $0x2f0] sm:$0xff]  }
  0x21   :  { %1355 = vmatpush3.bf16.msra.mxu1 %v1496_v32  ;;  %v1563_v31 = vld [vmem:[%s1947_s0 + $0x2e8] sm:$0xff]   ;;  %v1569_v37 = vld [vmem:[%s1947_s0 + $0x278] sm:$0xff]  }
  0x22   :  { %927 = vmatmul.mubr.bf16.vlgmr.msra.gmra.mrb[0].mxu0 %v1497_v33  ;;  %1384 = vmatprep.subr.bf16.mxu1 %v1505_v39  ;;  %v1564_v32 = vld [vmem:[%s1947_s0 + $0x2a8] sm:$0xff]   ;;  %v1565_v33 = vld [vmem:[%s1947_s0 + $0x270] sm:$0xff]   ;;  %v1571_v39 = vld [vmem:[%s1947_s0 + $0x2f8] sm:$0xff]  }
  0x23   :  { %1363 = vmatpush3.bf16.msra.mxu0 %v1504_v38  ;;  %1008 = vmatprep.mubr.bf16.mxu0 %v1537_v6  ;;  %v1570_v38 = vld [vmem:[%s1947_s0 + $0x238] sm:$0xff]  }
  0x24   :  { %968 = vmatmul.mubr.bf16.vlgmr.msra.gmra.mrb[0].mxu1 %v1501_v36  ;;  %1364 = vmatprep.subr.bf16.mxu0 %v1507_v41  ;;  %v1568_v36 = vld [vmem:[%s1947_s0 + $0x2b0] sm:$0xff]  }
  0x25   :  { %1385 = vmatpush3.bf16.msra.mxu1 %v1506_v40  ;;  %1049 = vmatprep.mubr.bf16.mxu1 %v1541_v9  ;;  %v1572_v40 = vld [vmem:[%s1947_s0 + $0x2b8] sm:$0xff]   ;;  %v1573_v41 = vld [vmem:[%s1948_s1 + $0x20] ss:$52 sps:$4 sm:$0xff]  }
  0x26   :  { %1386 = vmatprep.subr.bf16.mxu1 %v1509_v43  ;;  %v1583_v43 = vmov 0.0  }
  0x27   :  { %1365 = vmatpush3.bf16.msra.mxu0 %v1508_v42  ;;  %v1575_v42 = vld [vmem:[%s1948_s1 + $0x24] ss:$52 sps:$4 sm:$0xff]  }
  0x28   :  { %1366 = vmatprep.subr.bf16.mxu0 %v1511_v45  ;;  %v1578_v45 = vld [vmem:[%s1948_s1 + $0x2c] ss:$52 sps:$4 sm:$0xff]  }
  0x29   :  { %1387 = vmatpush3.bf16.msra.mxu1 %v1510_v44  ;;  %v1576_v44 = vld [vmem:[%s1948_s1 + $0x28] ss:$52 sps:$4 sm:$0xff]  }
  0x2a   :  { %1388 = vmatprep.subr.bf16.mxu1 %v1513_v47  ;;  %v1580_v47 = vld [vmem:[%s1947_s0 + $0x308] sm:$0xff]  }
  0x2b   :  { %1367 = vmatpush3.bf16.msra.mxu0 %v1512_v46  ;;  %v1579_v46 = vld [vmem:[%s1947_s0 + $0x300] sm:$0xff]  }
  0x2c   :  { %1368 = vmatprep.subr.bf16.mxu0 %v1515_v49  ;;  %v1581_v49 = vld [vmem:[%s1948_s1 + $0x30] ss:$52 sps:$4 sm:$0xff]  }
  0x2d   :  { %1389 = vmatpush3.bf16.msra.mxu1 %v1514_v48  ;;  %v225_v48 = vld [vmem:[%s1949_s2] sm:$0xff] }
  0x2e   :  { %1390 = vmatprep.subr.bf16.mxu1 %v1517_v51  ;;  %229 = vperm.xlu0 %1464, %v225_v48  }
  0x2f   :  { %1369 = vmatpush3.bf16.msra.mxu0 %v1516_v50  ;;  %v226_v50 = vld [vmem:[%s1949_s2 + $0x8] sm:$0xff] }
  0x30   :  { %1370 = vmatprep.subr.bf16.mxu0 %v1519_v53 }
  0x31   :  { %1391 = vmatpush3.bf16.msra.mxu1 %v1518_v52 }
  0x32   :  { %1392 = vmatprep.subr.bf16.mxu1 %v1521_v55  ;;  %234 = vperm.xlu0 %1464, %v226_v50  }
  0x33   :  { %1371 = vmatpush3.bf16.msra.mxu0 %v1520_v54 }
  0x34   :  { %1372 = vmatprep.subr.bf16.mxu0 %v1523_v57 }
  0x35   :  { %1393 = vmatpush3.bf16.msra.mxu1 %v1522_v56 }
  0x36   :  { %1394 = vmatprep.subr.bf16.mxu1 %v1525_v59 }
  0x37   :  { %1373 = vmatpush3.bf16.msra.mxu0 %v1524_v58 }
  0x38   :  { %1374 = vmatprep.subr.bf16.mxu0 %v1527_v61 }
  0x39   :  { %1395 = vmatpush3.bf16.msra.mxu1 %v1526_v60 }
  0x3a   :  { %1396 = vmatprep.subr.bf16.mxu1 %v1529_v63 }
  0x3b   :  { %1375 = vmatpush3.bf16.msra.mxu0 %v1528_v62 }
  0x3c   :  { %1376 = vmatprep.subr.bf16.mxu0 %v1531_v1 }
  0x3d   :  { %1397 = vmatpush3.bf16.msra.mxu1 %v1530_v0 }
  0x3e   :  { %1398 = vmatprep.subr.bf16.mxu1 %v1533_v3 }
  0x3f   :  { %1377 = vmatpush3.bf16.msra.mxu0 %v1532_v2 }
  0x40   :  { %1406 = vmatprep.subr.bf16.mxu0 %v1538_v7 }
  0x41   :  { %1399 = vmatpush3.bf16.msra.mxu1 %v1534_v4 }
  0x42   :  { %1009 = vmatmul.mubr.bf16.vlgmr.msra.gmra.mrb[4].mxu0 %v1535_v5  ;;  %1428 = vmatprep.subr.bf16.mxu1 %v1543_v11 }
  0x43   :  { %1407 = vmatpush3.bf16.msra.mxu0 %v1542_v10  ;;  %1090 = vmatprep.mubr.bf16.mxu0 %v1575_v42 }
  0x44   :  { %1050 = vmatmul.mubr.bf16.vlgmr.msra.gmra.mrb[4].mxu1 %v1539_v8  ;;  %1408 = vmatprep.subr.bf16.mxu0 %v1545_v13 }
  0x45   :  { %1429 = vmatpush3.bf16.msra.mxu1 %v1544_v12  ;;  %1131 = vmatprep.mubr.bf16.mxu1 %v1578_v45 }
  0x46   :  { %1430 = vmatprep.subr.bf16.mxu1 %v1547_v15 }
  0x47   :  { %1409 = vmatpush3.bf16.msra.mxu0 %v1546_v14 }
  0x48   :  { %1410 = vmatprep.subr.bf16.mxu0 %v1549_v17 }
  0x49   :  { %1431 = vmatpush3.bf16.msra.mxu1 %v1548_v16 }
  0x4a   :  { %1432 = vmatprep.subr.bf16.mxu1 %v1551_v19 }
  0x4b   :  { %1411 = vmatpush3.bf16.msra.mxu0 %v1550_v18 }
  0x4c   :  { %1412 = vmatprep.subr.bf16.mxu0 %v1553_v21 }
  0x4d   :  { %1433 = vmatpush3.bf16.msra.mxu1 %v1552_v20 }
  0x4e   :  { %1434 = vmatprep.subr.bf16.mxu1 %v1555_v23 }
  0x4f   :  { %1413 = vmatpush3.bf16.msra.mxu0 %v1554_v22 }
  0x50   :  { %1414 = vmatprep.subr.bf16.mxu0 %v1557_v25 }
  0x51   :  { %1435 = vmatpush3.bf16.msra.mxu1 %v1556_v24 }
  0x52   :  { %1436 = vmatprep.subr.bf16.mxu1 %v1559_v27 }
  0x53   :  { %1415 = vmatpush3.bf16.msra.mxu0 %v1558_v26 }
  0x54   :  { %1416 = vmatprep.subr.bf16.mxu0 %v1561_v29 }
  0x55   :  { %1437 = vmatpush3.bf16.msra.mxu1 %v1560_v28 }
  0x56   :  { %1438 = vmatprep.subr.bf16.mxu1 %v1563_v31 }
  0x57   :  { %1417 = vmatpush3.bf16.msra.mxu0 %v1562_v30 }
  0x58   :  { %1418 = vmatprep.subr.bf16.mxu0 %v1565_v33 }
  0x59   :  { %1439 = vmatpush3.bf16.msra.mxu1 %v1564_v32 }
  0x5a   :  { %1440 = vmatprep.subr.bf16.mxu1 %v1567_v35 }
  0x5b   :  { %1419 = vmatpush3.bf16.msra.mxu0 %v1566_v34 }
  0x5c   :  { %1420 = vmatprep.subr.bf16.mxu0 %v1569_v37 }
  0x5d   :  { %1441 = vmatpush3.bf16.msra.mxu1 %v1568_v36 }
  0x5e   :  { %1442 = vmatprep.subr.bf16.mxu1 %v1571_v39 }
  0x5f   :  { %1421 = vmatpush3.bf16.msra.mxu0 %v1570_v38 }
  0x60   :  { %1453 = vmatprep.subr.bf16.mxu0 %v1583_v43 }
  0x61   :  { %1443 = vmatpush3.bf16.msra.mxu1 %v1572_v40 }
  0x62   :  { %1091 = vmatmul.mubr.bf16.vlgmr.msra.gmra.mrb[8].mxu0 %v1573_v41 }
  0x63   :  { %1454 = vmatpush3.bf16.msra.mxu0 %v1579_v46  ;;  %1457 = vmatprep.mubr.msk.bf16.mxu0 %vm1584_vm0, %v1583_v43 }
  0x64   :  { %1132 = vmatmul.mubr.bf16.vlgmr.msra.gmra.mrb[8].mxu1 %v1576_v44  ;;  %1455 = vmatprep.subr.bf16.mxu0 %v1583_v43 }
  0x67   :  { %1456 = vmatpush3.bf16.msra.mxu0 %v1580_v47 }
  0x6a   :  { %1458 = vmatmul.mubr.msk.bf16.vlgmr.msra.gmra.mrb[12].mxu0 %vm890_vm1, %v1581_v49 }
  0xad   :  { %v230_v51 = vpop.permute.xlu0 %229 }
  0xb1   :  { %v235_v54 = vpop.permute.xlu0 %234 }
  0xf5   :  { %v1334_v52 = vpop.f32.mrb[0].mxu0 }
  0xf6   :  { %v1335_v53 = vpop.f32.mrb[1].mxu0 }
  0xf7   :  { %v1336_v55 = vadd.f32 %v1335_v53, %v1334_v52  ;;  %v1337_v56 = vpop.f32.mrb[2].mxu0  ;;  %v1356_v57 = vpop.f32.mrb[0].mxu1 }
  0xf8   :  { %v1338_v58 = vpop.f32.mrb[3].mxu0  ;;  %v1357_v59 = vpop.f32.mrb[1].mxu1 }
  0xf9   :  { %v929_v60 = vadd.f32 %v1336_v55, %v230_v51  ;;  %v1339_v61 = vadd.f32 %v1338_v58, %v1337_v56  ;;  %v1358_v62 = vadd.f32 %v1357_v59, %v1356_v57  ;;  %v1359_v63 = vpop.f32.mrb[2].mxu1 }
  0xfa   :  { %v1360_v0 = vpop.f32.mrb[3].mxu1 }
  0xfb   :  { %v970_v1 = vadd.f32 %v1358_v62, %v929_v60  ;;  %v932_v2 = vadd.f32 %v1339_v61, %v235_v54  ;;  %v1361_v3 = vadd.f32 %v1360_v0, %v1359_v63 }
  0xfd   :  { %v973_v4 = vadd.f32 %v1361_v3, %v932_v2 }
 0x115   :  { %v1378_v5 = vpop.f32.mrb[4].mxu0 }
 0x116   :  { %v1379_v6 = vpop.f32.mrb[5].mxu0 }
 0x117   :  { %v1380_v7 = vadd.f32 %v1379_v6, %v1378_v5  ;;  %v1381_v8 = vpop.f32.mrb[6].mxu0  ;;  %v1400_v9 = vpop.f32.mrb[4].mxu1 }
 0x118   :  { %v1382_v10 = vpop.f32.mrb[7].mxu0  ;;  %v1401_v13 = vpop.f32.mrb[5].mxu1 }
 0x119   :  { %v1011_v11 = vadd.f32 %v1380_v7, %v970_v1  ;;  %v1383_v12 = vadd.f32 %v1382_v10, %v1381_v8  ;;  %v1402_v14 = vadd.f32 %v1401_v13, %v1400_v9  ;;  %v1403_v15 = vpop.f32.mrb[6].mxu1 }
 0x11a   :  { %v1404_v17 = vpop.f32.mrb[7].mxu1 }
 0x11b   :  { %v1014_v16 = vadd.f32 %v1383_v12, %v973_v4  ;;  %v1052_v18 = vadd.f32 %v1402_v14, %v1011_v11  ;;  %v1405_v19 = vadd.f32 %v1404_v17, %v1403_v15 }
 0x11d   :  { %v1055_v20 = vadd.f32 %v1405_v19, %v1014_v16 }
 0x135   :  { %v1422_v21 = vpop.f32.mrb[8].mxu0 }
 0x136   :  { %v1423_v22 = vpop.f32.mrb[9].mxu0 }
 0x137   :  { %v1444_v23 = vpop.f32.mrb[8].mxu1  ;;  %v1424_v24 = vadd.f32 %v1423_v22, %v1422_v21  ;;  %v1425_v25 = vpop.f32.mrb[10].mxu0 }
 0x138   :  { %v1445_v26 = vpop.f32.mrb[9].mxu1  ;;  %v1426_v28 = vpop.f32.mrb[11].mxu0 }
 0x139   :  { %v1446_v27 = vadd.f32 %v1445_v26, %v1444_v23  ;;  %v1447_v29 = vpop.f32.mrb[10].mxu1  ;;  %v1093_v30 = vadd.f32 %v1424_v24, %v1052_v18  ;;  %v1427_v31 = vadd.f32 %v1426_v28, %v1425_v25 }
 0x13a   :  { %v1448_v32 = vpop.f32.mrb[11].mxu1 }
 0x13b   :  { %v1449_v33 = vadd.f32 %v1448_v32, %v1447_v29  ;;  %v1096_v34 = vadd.f32 %v1427_v31, %v1055_v20  ;;  %v1134_v35 = vadd.f32 %v1446_v27, %v1093_v30 }
 0x13d   :  { %v1174_v36 = vpop.f32.mrb[12].mxu0  ;;  %v1137_v37 = vadd.f32 %v1449_v33, %v1096_v34 }
 0x13e   :  { %v1175_v38 = vadd.f32 %v1174_v36, %v1134_v35  ;;  %v1459_v39 = vpop.f32.mrb[13].mxu0 }
 0x13f   :  { %v1177_v40 = vpop.f32.mrb[14].mxu0 }
 0x140   :  { %v1178_v41 = vadd.f32 %v1177_v40, %v1137_v37  ;;  %v1460_v42 = vpop.f32.mrb[15].mxu0  ;;  %v1181_v43 = vmax.f32 %v1175_v38, 0.0 }
 0x142   :  { %v1182_v44 = vmax.f32 %v1178_v41, 0.0 }
 0x144   :  { %v1316_v45 = vpack.c.bf16 %v1182_v44, %v1181_v43 }
 0x146   :  { %1317 = vst [vmem:[%s1950_s3] sm:$0xff] %v1316_v45  }

// kernel: attention_mcnn_forward.17
= control target key start
LH: loop header
LB: loop body
LE: loop exit
PB: predicated region body
PF: predicated region fallthrough
CT: control target
= control target key end

     0   :  { %v882_v1 = vmov 0   ;;  %v883_v39 = vmov 0.0   ;;  %vm884_vm0 = vmmov 0   ;;  %vm465_vm1 = vcmask 130048   ;;  %s1090_s0 = inlined_call_operand.vmem [shape: bf16[784,128], index: 0, kind: input, shape index: {}]   ;;  %s1091_s1 = inlined_call_operand.vmem [shape: bf16[16,784], index: 1, kind: input, shape index: {}]   ;;  %s1092_s2 = inlined_call_operand.vmem [shape: f32[16,1], index: 2, kind: input, shape index: {}]   ;;  %s1093_s3 = inlined_call_operand.vmem [shape: bf16[16,128], index: 3, kind: input, shape index: {}]   ;;  %s1094_s4 = inlined_call_operand.vmem [shape: bf16[16,128], index: 4, kind: output, shape index: {}]  }
   0x1   :  { %v815_v0 = vld [vmem:[%s1090_s0 + $0x40] sm:$0xff]   ;;  %814 = vset.pattern.permute.xlu0 %v882_v1  ;;  %v819_v5 = vld [vmem:[%s1090_s0 + $0x48] sm:$0xff]   ;;  %v823_v9 = vld [vmem:[%s1090_s0 + $0x50] sm:$0xff]  }
   0x2   :  { %v816_v2 = vld [vmem:[%s1090_s0] sm:$0xff]   ;;  %737 = vmatprep.subr.bf16.mxu0 %v815_v0  ;;  %v820_v6 = vld [vmem:[%s1090_s0 + $0x8] sm:$0xff]   ;;  %v824_v10 = vld [vmem:[%s1090_s0 + $0x10] sm:$0xff]  }
   0x3   :  { %v817_v3 = vld [vmem:[%s1090_s0 + $0xc0] sm:$0xff]   ;;  %738 = vmatpush3.bf16.msra.mxu0 %v816_v2  ;;  %v821_v7 = vld [vmem:[%s1090_s0 + $0xc8] sm:$0xff]   ;;  %v825_v11 = vld [vmem:[%s1090_s0 + $0xd0] sm:$0xff]  }
   0x4   :  { %v818_v4 = vld [vmem:[%s1090_s0 + $0x80] sm:$0xff]   ;;  %759 = vmatprep.subr.bf16.mxu1 %v817_v3  ;;  %739 = vmatprep.subr.bf16.mxu0 %v819_v5  ;;  %v822_v8 = vld [vmem:[%s1090_s0 + $0x88] sm:$0xff]   ;;  %v826_v12 = vld [vmem:[%s1090_s0 + $0x90] sm:$0xff]  }
   0x5   :  { %760 = vmatpush3.bf16.msra.mxu1 %v818_v4  ;;  %v827_v13 = vld [vmem:[%s1090_s0 + $0x58] sm:$0xff]   ;;  %v831_v17 = vld [vmem:[%s1090_s0 + $0x60] sm:$0xff]   ;;  %v835_v21 = vld [vmem:[%s1090_s0 + $0x68] sm:$0xff]  }
   0x6   :  { %761 = vmatprep.subr.bf16.mxu1 %v821_v7  ;;  %v828_v14 = vld [vmem:[%s1090_s0 + $0x18] sm:$0xff]   ;;  %v832_v18 = vld [vmem:[%s1090_s0 + $0x20] sm:$0xff]   ;;  %v836_v22 = vld [vmem:[%s1090_s0 + $0x28] sm:$0xff]  }
   0x7   :  { %740 = vmatpush3.bf16.msra.mxu0 %v820_v6  ;;  %v829_v15 = vld [vmem:[%s1090_s0 + $0xd8] sm:$0xff]   ;;  %v833_v19 = vld [vmem:[%s1090_s0 + $0xe0] sm:$0xff]   ;;  %v837_v23 = vld [vmem:[%s1090_s0 + $0xe8] sm:$0xff]  }
   0x8   :  { %741 = vmatprep.subr.bf16.mxu0 %v823_v9  ;;  %v830_v16 = vld [vmem:[%s1090_s0 + $0x98] sm:$0xff]   ;;  %v834_v20 = vld [vmem:[%s1090_s0 + $0xa0] sm:$0xff]   ;;  %v838_v24 = vld [vmem:[%s1090_s0 + $0xa8] sm:$0xff]  }
   0x9   :  { %762 = vmatpush3.bf16.msra.mxu1 %v822_v8  ;;  %v839_v25 = vld [vmem:[%s1090_s0 + $0x70] sm:$0xff]   ;;  %v843_v29 = vld [vmem:[%s1090_s0 + $0x78] sm:$0xff]   ;;  %v848_v33 = vld [vmem:[%s1091_s1 + $0x4] ss:$28 sps:$4 sm:$0xff]  }
   0xa   :  { %763 = vmatprep.subr.bf16.mxu1 %v825_v11  ;;  %v840_v26 = vld [vmem:[%s1090_s0 + $0x30] sm:$0xff]   ;;  %v844_v30 = vld [vmem:[%s1090_s0 + $0x38] sm:$0xff]   ;;  %501 = vmatprep.mubr.bf16.mxu0 %v848_v33  ;;  %v850_v35 = vld [vmem:[%s1090_s0 + $0x140] sm:$0xff]  }
   0xb   :  { %742 = vmatpush3.bf16.msra.mxu0 %v824_v10  ;;  %v841_v27 = vld [vmem:[%s1090_s0 + $0xf0] sm:$0xff]   ;;  %v845_v31 = vld [vmem:[%s1090_s0 + $0xf8] sm:$0xff]   ;;  %v851_v36 = vld [vmem:[%s1091_s1 + $0x8] ss:$28 sps:$4 sm:$0xff]  }
   0xc   :  { %743 = vmatprep.subr.bf16.mxu0 %v827_v13  ;;  %v842_v28 = vld [vmem:[%s1090_s0 + $0xb0] sm:$0xff]   ;;  %v846_v32 = vld [vmem:[%s1091_s1] ss:$28 sps:$4 sm:$0xff]   ;;  %v853_v37 = vld [vmem:[%s1091_s1 + $0xc] ss:$28 sps:$4 sm:$0xff]  }
   0xd   :  { %764 = vmatpush3.bf16.msra.mxu1 %v826_v12  ;;  %v849_v34 = vld [vmem:[%s1090_s0 + $0xb8] sm:$0xff]   ;;  %v854_v38 = vld [vmem:[%s1090_s0 + $0x100] sm:$0xff]   ;;  %542 = vmatprep.mubr.bf16.mxu1 %v853_v37  ;;  %v855_v40 = vld [vmem:[%s1090_s0 + $0x148] sm:$0xff]  }
   0xe   :  { %765 = vmatprep.subr.bf16.mxu1 %v829_v15  ;;  %v856_v41 = vld [vmem:[%s1090_s0 + $0x108] sm:$0xff]   ;;  %v857_v42 = vld [vmem:[%s1090_s0 + $0x150] sm:$0xff]   ;;  %v859_v44 = vld [vmem:[%s1090_s0 + $0x158] sm:$0xff]  }
   0xf   :  { %744 = vmatpush3.bf16.msra.mxu0 %v828_v14  ;;  %v858_v43 = vld [vmem:[%s1090_s0 + $0x110] sm:$0xff]   ;;  %v860_v45 = vld [vmem:[%s1090_s0 + $0x118] sm:$0xff]   ;;  %v861_v46 = vld [vmem:[%s1090_s0 + $0x160] sm:$0xff]  }
  0x10   :  { %745 = vmatprep.subr.bf16.mxu0 %v831_v17  ;;  %v862_v47 = vld [vmem:[%s1090_s0 + $0x120] sm:$0xff]   ;;  %v863_v48 = vld [vmem:[%s1090_s0 + $0x168] sm:$0xff]   ;;  %v872_v50 = vld [vmem:[%s1091_s1 + $0x14] ss:$28 sps:$4 sm:$0xff]  }
  0x11   :  { %766 = vmatpush3.bf16.msra.mxu1 %v830_v16  ;;  %v869_v49 = vld [vmem:[%s1090_s0 + $0x180] sm:$0xff]   ;;  %v873_v51 = vld [vmem:[%s1091_s1 + $0x18] ss:$28 sps:$4 sm:$0xff]   ;;  %v864_v52 = vld [vmem:[%s1090_s0 + $0x128] sm:$0xff]  }
  0x12   :  { %767 = vmatprep.subr.bf16.mxu1 %v833_v19  ;;  %v124_v53 = vld [vmem:[%s1092_s2] sm:$0xff]  ;;  %v865_v54 = vld [vmem:[%s1090_s0 + $0x170] sm:$0xff]   ;;  %v125_v55 = vld [vmem:[%s1092_s2 + $0x8] sm:$0xff] }
  0x13   :  { %746 = vmatpush3.bf16.msra.mxu0 %v832_v18  ;;  %128 = vperm.xlu0 %814, %v124_v53   ;;  %v866_v56 = vld [vmem:[%s1090_s0 + $0x130] sm:$0xff]   ;;  %v867_v57 = vld [vmem:[%s1090_s0 + $0x178] sm:$0xff]  }
  0x14   :  { %747 = vmatprep.subr.bf16.mxu0 %v835_v21  ;;  %v868_v58 = vld [vmem:[%s1090_s0 + $0x138] sm:$0xff]   ;;  %v870_v59 = vld [vmem:[%s1091_s1 + $0x10] ss:$28 sps:$4 sm:$0xff]  }
  0x15   :  { %768 = vmatpush3.bf16.msra.mxu1 %v834_v20 }
  0x16   :  { %769 = vmatprep.subr.bf16.mxu1 %v837_v23 }
  0x17   :  { %748 = vmatpush3.bf16.msra.mxu0 %v836_v22  ;;  %133 = vperm.xlu0 %814, %v125_v55  }
  0x18   :  { %749 = vmatprep.subr.bf16.mxu0 %v839_v25 }
  0x19   :  { %770 = vmatpush3.bf16.msra.mxu1 %v838_v24 }
  0x1a   :  { %771 = vmatprep.subr.bf16.mxu1 %v841_v27 }
  0x1b   :  { %750 = vmatpush3.bf16.msra.mxu0 %v840_v26 }
  0x1c   :  { %751 = vmatprep.subr.bf16.mxu0 %v843_v29 }
  0x1d   :  { %772 = vmatpush3.bf16.msra.mxu1 %v842_v28 }
  0x1e   :  { %773 = vmatprep.subr.bf16.mxu1 %v845_v31 }
  0x1f   :  { %752 = vmatpush3.bf16.msra.mxu0 %v844_v30 }
  0x20   :  { %781 = vmatprep.subr.bf16.mxu0 %v850_v35 }
  0x21   :  { %774 = vmatpush3.bf16.msra.mxu1 %v849_v34  ;;  %v729_v34 = vld [vmem:[%s1093_s3] sm:$0xff]  }
  0x22   :  { %502 = vmatmul.mubr.bf16.vlgmr.msra.gmra.mrb[0].mxu0 %v846_v32  ;;  %805 = vmatprep.subr.bf16.mxu1 %v883_v39  ;;  %v730_v35 = vunpack.c.l.bf16 %v729_v34 }
  0x23   :  { %782 = vmatpush3.bf16.msra.mxu0 %v854_v38  ;;  %583 = vmatprep.mubr.bf16.mxu0 %v872_v50 }
  0x24   :  { %543 = vmatmul.mubr.bf16.vlgmr.msra.gmra.mrb[0].mxu1 %v851_v36  ;;  %783 = vmatprep.subr.bf16.mxu0 %v855_v40  ;;  %v731_v36 = vunpack.c.h.bf16 %v729_v34 }
  0x25   :  { %807 = vmatprep.mubr.msk.bf16.mxu1 %vm884_vm0, %v883_v39  ;;  %806 = vmatpush3.bf16.msra.mxu1 %v869_v49 }
  0x27   :  { %784 = vmatpush3.bf16.msra.mxu0 %v856_v41 }
  0x28   :  { %785 = vmatprep.subr.bf16.mxu0 %v857_v42 }
  0x2b   :  { %786 = vmatpush3.bf16.msra.mxu0 %v858_v43 }
  0x2c   :  { %787 = vmatprep.subr.bf16.mxu0 %v859_v44  ;;  %808 = vmatmul.mubr.msk.bf16.vlgmr.msra.gmra.mrb[4].mxu1 %vm465_vm1, %v873_v51 }
  0x2f   :  { %788 = vmatpush3.bf16.msra.mxu0 %v860_v45 }
  0x30   :  { %789 = vmatprep.subr.bf16.mxu0 %v861_v46 }
  0x33   :  { %790 = vmatpush3.bf16.msra.mxu0 %v862_v47 }
  0x34   :  { %791 = vmatprep.subr.bf16.mxu0 %v863_v48 }
  0x37   :  { %792 = vmatpush3.bf16.msra.mxu0 %v864_v52 }
  0x38   :  { %793 = vmatprep.subr.bf16.mxu0 %v865_v54 }
  0x3b   :  { %794 = vmatpush3.bf16.msra.mxu0 %v866_v56 }
  0x3c   :  { %795 = vmatprep.subr.bf16.mxu0 %v867_v57 }
  0x3f   :  { %796 = vmatpush3.bf16.msra.mxu0 %v868_v58 }
  0x42   :  { %584 = vmatmul.mubr.bf16.vlgmr.msra.gmra.mrb[4].mxu0 %v870_v59 }
  0x92   :  { %v129_v60 = vpop.permute.xlu0 %128 }
  0x96   :  { %v134_v1 = vpop.permute.xlu0 %133 }
  0xf5   :  { %v753_v61 = vpop.f32.mrb[0].mxu0 }
  0xf6   :  { %v754_v62 = vpop.f32.mrb[1].mxu0 }
  0xf7   :  { %v755_v63 = vadd.f32 %v754_v62, %v753_v61  ;;  %v756_v0 = vpop.f32.mrb[2].mxu0  ;;  %v775_v2 = vpop.f32.mrb[0].mxu1 }
  0xf8   :  { %v757_v3 = vpop.f32.mrb[3].mxu0  ;;  %v776_v6 = vpop.f32.mrb[1].mxu1 }
  0xf9   :  { %v504_v4 = vadd.f32 %v755_v63, %v129_v60  ;;  %v758_v5 = vadd.f32 %v757_v3, %v756_v0  ;;  %v777_v7 = vadd.f32 %v776_v6, %v775_v2  ;;  %v778_v8 = vpop.f32.mrb[2].mxu1 }
  0xfa   :  { %v779_v10 = vpop.f32.mrb[3].mxu1 }
  0xfb   :  { %v507_v9 = vadd.f32 %v758_v5, %v134_v1  ;;  %v545_v11 = vadd.f32 %v777_v7, %v504_v4  ;;  %v780_v12 = vadd.f32 %v779_v10, %v778_v8 }
  0xfd   :  { %v548_v13 = vadd.f32 %v780_v12, %v507_v9 }
  0xff   :  { %v626_v14 = vpop.f32.mrb[4].mxu1 }
 0x100   :  { %v809_v15 = vpop.f32.mrb[5].mxu1 }
 0x101   :  { %v629_v16 = vpop.f32.mrb[6].mxu1 }
 0x102   :  { %v810_v17 = vpop.f32.mrb[7].mxu1 }
 0x115   :  { %v797_v18 = vpop.f32.mrb[4].mxu0 }
 0x116   :  { %v798_v19 = vpop.f32.mrb[5].mxu0 }
 0x117   :  { %v799_v20 = vadd.f32 %v798_v19, %v797_v18  ;;  %v800_v21 = vpop.f32.mrb[6].mxu0 }
 0x118   :  { %v801_v22 = vpop.f32.mrb[7].mxu0 }
 0x119   :  { %v586_v23 = vadd.f32 %v799_v20, %v545_v11  ;;  %v802_v24 = vadd.f32 %v801_v22, %v800_v21 }
 0x11b   :  { %v627_v25 = vadd.f32 %v626_v14, %v586_v23  ;;  %v589_v26 = vadd.f32 %v802_v24, %v548_v13 }
 0x11d   :  { %v722_v27 = vmul.f32 -1.442695, %v627_v25  ;;  %v630_v28 = vadd.f32 %v629_v16, %v589_v26 }
 0x11f   :  { %874 = vpow2.f32 %v722_v27  ;;  %v723_v29 = vmul.f32 -1.442695, %v630_v28 }
 0x121   :  { %876 = vpow2.f32 %v723_v29 }
 0x129   :  { %v875_v30 = vpop.eup %874 }
 0x12a   :  { %v639_v31 = vadd.f32 1.0, %v875_v30 }
 0x12b   :  { %v877_v32 = vpop.eup %876 }
 0x12c   :  { %878 = vrcp.f32 %v639_v31  ;;  %v640_v33 = vadd.f32 1.0, %v877_v32 }
 0x12e   :  { %880 = vrcp.f32 %v640_v33 }
 0x136   :  { %v879_v37 = vpop.eup %878 }
 0x137   :  { %v649_v39 = vmul.f32 %v879_v37, %v730_v35 }
 0x138   :  { %v881_v38 = vpop.eup %880 }
 0x139   :  { %v650_v40 = vmul.f32 %v881_v38, %v731_v36 }
 0x13b   :  { %v735_v41 = vpack.c.bf16 %v650_v40, %v649_v39 }
 0x13d   :  { %736 = vst [vmem:[%s1094_s4] sm:$0xff] %v735_v41  }

// kernel: attention_mcnn_forward.18
= control target key start
LH: loop header
LB: loop body
LE: loop exit
PB: predicated region body
PF: predicated region fallthrough
CT: control target
= control target key end

     0   :  { %v803_v1 = vmov 0   ;;  %v804_v42 = vmov 0.0   ;;  %vm805_vm0 = vmmov 0   ;;  %vm441_vm1 = vcmask 130048   ;;  %s991_s0 = inlined_call_operand.vmem [shape: bf16[784,128], index: 0, kind: input, shape index: {}]   ;;  %s992_s1 = inlined_call_operand.vmem [shape: bf16[8,784], index: 1, kind: input, shape index: {}]   ;;  %s993_s2 = inlined_call_operand.vmem [shape: f32[8,1], index: 2, kind: input, shape index: {}]   ;;  %s994_s3 = inlined_call_operand.vmem [shape: bf16[8,128], index: 3, kind: output, shape index: {}]  }
   0x1   :  { %v747_v0 = vld [vmem:[%s991_s0 + $0x40] sm:$0xff]   ;;  %746 = vset.pattern.permute.xlu0 %v803_v1  ;;  %v751_v5 = vld [vmem:[%s991_s0 + $0x48] sm:$0xff]   ;;  %v755_v9 = vld [vmem:[%s991_s0 + $0x50] sm:$0xff]  }
   0x2   :  { %v748_v2 = vld [vmem:[%s991_s0] sm:$0xff]   ;;  %669 = vmatprep.subr.bf16.mxu0 %v747_v0  ;;  %v752_v6 = vld [vmem:[%s991_s0 + $0x8] sm:$0xff]   ;;  %v756_v10 = vld [vmem:[%s991_s0 + $0x10] sm:$0xff]  }
   0x3   :  { %v749_v3 = vld [vmem:[%s991_s0 + $0xc0] sm:$0xff]   ;;  %670 = vmatpush3.bf16.msra.mxu0 %v748_v2  ;;  %v753_v7 = vld [vmem:[%s991_s0 + $0xc8] sm:$0xff]   ;;  %v757_v11 = vld [vmem:[%s991_s0 + $0xd0] sm:$0xff]  }
   0x4   :  { %v750_v4 = vld [vmem:[%s991_s0 + $0x80] sm:$0xff]   ;;  %691 = vmatprep.subr.bf16.mxu1 %v749_v3  ;;  %671 = vmatprep.subr.bf16.mxu0 %v751_v5  ;;  %v754_v8 = vld [vmem:[%s991_s0 + $0x88] sm:$0xff]   ;;  %v758_v12 = vld [vmem:[%s991_s0 + $0x90] sm:$0xff]  }
   0x5   :  { %692 = vmatpush3.bf16.msra.mxu1 %v750_v4  ;;  %v759_v13 = vld [vmem:[%s991_s0 + $0x58] sm:$0xff]   ;;  %v763_v17 = vld [vmem:[%s991_s0 + $0x60] sm:$0xff]   ;;  %v767_v21 = vld [vmem:[%s991_s0 + $0x68] sm:$0xff]  }
   0x6   :  { %693 = vmatprep.subr.bf16.mxu1 %v753_v7  ;;  %v760_v14 = vld [vmem:[%s991_s0 + $0x18] sm:$0xff]   ;;  %v764_v18 = vld [vmem:[%s991_s0 + $0x20] sm:$0xff]   ;;  %v768_v22 = vld [vmem:[%s991_s0 + $0x28] sm:$0xff]  }
   0x7   :  { %672 = vmatpush3.bf16.msra.mxu0 %v752_v6  ;;  %v761_v15 = vld [vmem:[%s991_s0 + $0xd8] sm:$0xff]   ;;  %v765_v19 = vld [vmem:[%s991_s0 + $0xe0] sm:$0xff]   ;;  %v769_v23 = vld [vmem:[%s991_s0 + $0xe8] sm:$0xff]  }
   0x8   :  { %673 = vmatprep.subr.bf16.mxu0 %v755_v9  ;;  %v762_v16 = vld [vmem:[%s991_s0 + $0x98] sm:$0xff]   ;;  %v766_v20 = vld [vmem:[%s991_s0 + $0xa0] sm:$0xff]   ;;  %v770_v24 = vld [vmem:[%s991_s0 + $0xa8] sm:$0xff]  }
   0x9   :  { %694 = vmatpush3.bf16.msra.mxu1 %v754_v8  ;;  %v771_v25 = vld [vmem:[%s991_s0 + $0x70] sm:$0xff]   ;;  %v775_v29 = vld [vmem:[%s991_s0 + $0x78] sm:$0xff]   ;;  %v15_v32 = vld [vmem:[%s992_s1] sm:$0xff] }
   0xa   :  { %695 = vmatprep.subr.bf16.mxu1 %v757_v11  ;;  %v772_v26 = vld [vmem:[%s991_s0 + $0x30] sm:$0xff]   ;;  %v776_v30 = vld [vmem:[%s991_s0 + $0x38] sm:$0xff]   ;;  %v612_v33 = vcombine.low %v15_v32, %v15_v32  ;;  %v613_v34 = vcombine.high %v15_v32, %v15_v32  ;;  %v782_v36 = vld [vmem:[%s991_s0 + $0x140] sm:$0xff]  }
   0xb   :  { %674 = vmatpush3.bf16.msra.mxu0 %v756_v10  ;;  %v773_v27 = vld [vmem:[%s991_s0 + $0xf0] sm:$0xff]   ;;  %v777_v31 = vld [vmem:[%s991_s0 + $0xf8] sm:$0xff]   ;;  %v16_v37 = vld [vmem:[%s992_s1 + $0x8] sm:$0xff] }
   0xc   :  { %675 = vmatprep.subr.bf16.mxu0 %v759_v13  ;;  %v774_v28 = vld [vmem:[%s991_s0 + $0xb0] sm:$0xff]   ;;  %v781_v35 = vld [vmem:[%s991_s0 + $0xb8] sm:$0xff]   ;;  %477 = vmatprep.mubr.bf16.mxu0 %v613_v34  ;;  %v614_v38 = vcombine.low %v16_v37, %v16_v37  ;;  %v615_v39 = vcombine.high %v16_v37, %v16_v37  ;;  %v785_v40 = vld [vmem:[%s991_s0 + $0x100] sm:$0xff]  }
   0xd   :  { %696 = vmatpush3.bf16.msra.mxu1 %v758_v12  ;;  %v786_v41 = vld [vmem:[%s991_s0 + $0x148] sm:$0xff]   ;;  %v788_v44 = vld [vmem:[%s991_s0 + $0x150] sm:$0xff]   ;;  %v790_v46 = vld [vmem:[%s991_s0 + $0x158] sm:$0xff]  }
   0xe   :  { %697 = vmatprep.subr.bf16.mxu1 %v761_v15  ;;  %517 = vmatprep.mubr.bf16.mxu1 %v615_v39  ;;  %v787_v43 = vld [vmem:[%s991_s0 + $0x108] sm:$0xff]   ;;  %v789_v45 = vld [vmem:[%s991_s0 + $0x110] sm:$0xff]   ;;  %v791_v47 = vld [vmem:[%s991_s0 + $0x118] sm:$0xff]  }
   0xf   :  { %676 = vmatpush3.bf16.msra.mxu0 %v760_v14  ;;  %v792_v48 = vld [vmem:[%s991_s0 + $0x160] sm:$0xff]   ;;  %v794_v50 = vld [vmem:[%s991_s0 + $0x168] sm:$0xff]   ;;  %v17_v52 = vld [vmem:[%s992_s1 + $0x10] sm:$0xff] }
  0x10   :  { %677 = vmatprep.subr.bf16.mxu0 %v763_v17  ;;  %v793_v49 = vld [vmem:[%s991_s0 + $0x120] sm:$0xff]   ;;  %v780_v54 = vld [vmem:[%s992_s1 + $0x18] ss:$0 sps:$4 sm:$0xff]   ;;  %v617_v55 = vcombine.high %v17_v52, %v17_v52  ;;  %v795_v56 = vld [vmem:[%s991_s0 + $0x128] sm:$0xff]   ;;  %v616_v61 = vcombine.low %v17_v52, %v17_v52 }
  0x11   :  { %698 = vmatpush3.bf16.msra.mxu1 %v762_v16  ;;  %v800_v51 = vld [vmem:[%s991_s0 + $0x180] sm:$0xff]   ;;  %v796_v57 = vld [vmem:[%s991_s0 + $0x170] sm:$0xff]   ;;  %v798_v59 = vld [vmem:[%s991_s0 + $0x178] sm:$0xff]  }
  0x12   :  { %699 = vmatprep.subr.bf16.mxu1 %v765_v19  ;;  %v117_v53 = vld [vmem:[%s993_s2] sm:$0xff]  ;;  %v797_v58 = vld [vmem:[%s991_s0 + $0x130] sm:$0xff]   ;;  %v799_v60 = vld [vmem:[%s991_s0 + $0x138] sm:$0xff]  }
  0x13   :  { %678 = vmatpush3.bf16.msra.mxu0 %v764_v18  ;;  %120 = vperm.xlu0 %746, %v117_v53  }
  0x14   :  { %679 = vmatprep.subr.bf16.mxu0 %v767_v21 }
  0x15   :  { %700 = vmatpush3.bf16.msra.mxu1 %v766_v20 }
  0x16   :  { %701 = vmatprep.subr.bf16.mxu1 %v769_v23 }
  0x17   :  { %680 = vmatpush3.bf16.msra.mxu0 %v768_v22 }
  0x18   :  { %681 = vmatprep.subr.bf16.mxu0 %v771_v25 }
  0x19   :  { %702 = vmatpush3.bf16.msra.mxu1 %v770_v24 }
  0x1a   :  { %703 = vmatprep.subr.bf16.mxu1 %v773_v27 }
  0x1b   :  { %682 = vmatpush3.bf16.msra.mxu0 %v772_v26 }
  0x1c   :  { %683 = vmatprep.subr.bf16.mxu0 %v775_v29 }
  0x1d   :  { %704 = vmatpush3.bf16.msra.mxu1 %v774_v28 }
  0x1e   :  { %705 = vmatprep.subr.bf16.mxu1 %v777_v31 }
  0x1f   :  { %684 = vmatpush3.bf16.msra.mxu0 %v776_v30 }
  0x20   :  { %713 = vmatprep.subr.bf16.mxu0 %v782_v36 }
  0x21   :  { %706 = vmatpush3.bf16.msra.mxu1 %v781_v35 }
  0x22   :  { %478 = vmatmul.mubr.bf16.vlgmr.msra.gmra.mrb[0].mxu0 %v612_v33  ;;  %737 = vmatprep.subr.bf16.mxu1 %v804_v42 }
  0x23   :  { %714 = vmatpush3.bf16.msra.mxu0 %v785_v40  ;;  %557 = vmatprep.mubr.bf16.mxu0 %v617_v55 }
  0x24   :  { %518 = vmatmul.mubr.bf16.vlgmr.msra.gmra.mrb[0].mxu1 %v614_v38  ;;  %715 = vmatprep.subr.bf16.mxu0 %v786_v41 }
  0x25   :  { %739 = vmatprep.mubr.msk.bf16.mxu1 %vm805_vm0, %v804_v42  ;;  %738 = vmatpush3.bf16.msra.mxu1 %v800_v51 }
  0x27   :  { %716 = vmatpush3.bf16.msra.mxu0 %v787_v43 }
  0x28   :  { %717 = vmatprep.subr.bf16.mxu0 %v788_v44 }
  0x2b   :  { %718 = vmatpush3.bf16.msra.mxu0 %v789_v45 }
  0x2c   :  { %719 = vmatprep.subr.bf16.mxu0 %v790_v46  ;;  %740 = vmatmul.mubr.msk.bf16.vlgmr.msra.gmra.mrb[4].mxu1 %vm441_vm1, %v780_v54 }
  0x2f   :  { %720 = vmatpush3.bf16.msra.mxu0 %v791_v47 }
  0x30   :  { %721 = vmatprep.subr.bf16.mxu0 %v792_v48 }
  0x33   :  { %722 = vmatpush3.bf16.msra.mxu0 %v793_v49 }
  0x34   :  { %723 = vmatprep.subr.bf16.mxu0 %v794_v50 }
  0x37   :  { %724 = vmatpush3.bf16.msra.mxu0 %v795_v56 }
  0x38   :  { %725 = vmatprep.subr.bf16.mxu0 %v796_v57 }
  0x3b   :  { %726 = vmatpush3.bf16.msra.mxu0 %v797_v58 }
  0x3c   :  { %727 = vmatprep.subr.bf16.mxu0 %v798_v59 }
  0x3f   :  { %728 = vmatpush3.bf16.msra.mxu0 %v799_v60 }
  0x42   :  { %558 = vmatmul.mubr.bf16.vlgmr.msra.gmra.mrb[4].mxu0 %v616_v61 }
  0x92   :  { %v121_v0 = vpop.permute.xlu0 %120 }
  0xf5   :  { %v685_v62 = vpop.f32.mrb[0].mxu0 }
  0xf6   :  { %v686_v63 = vpop.f32.mrb[1].mxu0 }
  0xf7   :  { %v687_v1 = vadd.f32 %v686_v63, %v685_v62  ;;  %v688_v2 = vpop.f32.mrb[2].mxu0  ;;  %v707_v3 = vpop.f32.mrb[0].mxu1 }
  0xf8   :  { %v689_v4 = vpop.f32.mrb[3].mxu0  ;;  %v708_v6 = vpop.f32.mrb[1].mxu1 }
  0xf9   :  { %v480_v5 = vadd.f32 %v687_v1, %v121_v0  ;;  %v709_v7 = vadd.f32 %v708_v6, %v707_v3  ;;  %v710_v8 = vpop.f32.mrb[2].mxu1 }
  0xfa   :  { %v711_v9 = vpop.f32.mrb[3].mxu1 }
  0xfb   :  { %v520_v10 = vadd.f32 %v709_v7, %v480_v5 }
  0xff   :  { %v599_v11 = vpop.f32.mrb[4].mxu1 }
 0x100   :  { %v741_v12 = vpop.f32.mrb[5].mxu1 }
 0x101   :  { %v602_v13 = vpop.f32.mrb[6].mxu1 }
 0x102   :  { %v742_v14 = vpop.f32.mrb[7].mxu1 }
 0x115   :  { %v729_v15 = vpop.f32.mrb[4].mxu0 }
 0x116   :  { %v730_v16 = vpop.f32.mrb[5].mxu0 }
 0x117   :  { %v731_v17 = vadd.f32 %v730_v16, %v729_v15  ;;  %v732_v18 = vpop.f32.mrb[6].mxu0 }
 0x118   :  { %v733_v19 = vpop.f32.mrb[7].mxu0 }
 0x119   :  { %v560_v20 = vadd.f32 %v731_v17, %v520_v10 }
 0x11b   :  { %v600_v21 = vadd.f32 %v599_v11, %v560_v20 }
 0x11d   :  { %v605_v22 = vmax.f32 %v600_v21, 0.0 }
 0x11f   :  { %v606_v23 = vpack.c.bf16 %v605_v22, %v605_v22 }
 0x121   :  { %607 = vst [vmem:[%s994_s3] sm:$0xf] %v606_v23 }

// kernel: attention_mcnn_forward.19
= control target key start
LH: loop header
LB: loop body
LE: loop exit
PB: predicated region body
PF: predicated region fallthrough
CT: control target
= control target key end

     0   :  { %s1064_s12 = smov 0   ;;  %s1066_s13 = smov 0   ;;  %s1192_s0 = inlined_call_operand.vmem [shape: bf16[4,500,128], index: 0, kind: input, shape index: {}]   ;;  %s1193_s1 = inlined_call_operand.vmem [shape: bf16[40,500], index: 1, kind: input, shape index: {}]   ;;  %s1194_s2 = inlined_call_operand.vmem [shape: f32[40,1], index: 2, kind: input, shape index: {}]   ;;  %s1195_s3 = inlined_call_operand.vmem [shape: bf16[40,128], index: 3, kind: output, shape index: {}]  }
   0x1   :  { %s1068_s14 = smov 0  }
   0x2 LB: > { %s22_s15 = sadd.s32 1, %s1037_s13  ;;  %p798_p0 = scmp.ge.s32.totalorder %s1041_s14, 1  ;;  %s1041_s14 = sphi %s1068_s14, %s13_s14   ;;  %s1037_s13 = sphi %s1066_s13, %s1197_s13   ;;  %s1033_s12 = sphi %s1064_s12, %s1196_s12  }
   0x3   : > { %p23_p1 = scmp.ge.s32.totalorder %s22_s15, 4  ;;  %p154_p2 = scmp.lt.s32.totalorder %s1041_s14, 5 }
   0x5   : > { %s1199_s15 = smov (%p23_p1, %s22_s15), 0  ;;  %p155_p3 = pnand %p798_p0, %p154_p2 }
   0x6   : > { %p180_p4 = scmp.lt.s32.totalorder (!%p155_p3), %s1033_s12, 3  ;;  %v1005_v0 = vld [vmem:[%s1193_s1 + $0x4] ss:$16 sps:$4 sm:$0xff] (!%p155_p3)   ;;  %vm536_vm0 = vcmask (!%p155_p3), 949248   ;;  %v1008_v1 = vld [vmem:[%s1193_s1 + $0xc] ss:$16 sps:$4 sm:$0xff] (!%p155_p3)  }
   0x7   : > { %158 = sbr.rel (%p155_p3) target bundleno = 311 (0x137), region = 32  ;;  %v1043_v2 = vmov (!%p155_p3), 0   ;;  %582 = vmatprep.mubr.bf16.mxu0 (!%p155_p3), %v1005_v0  ;;  %844 = vmatprep.mubr.msk.bf16.mxu1 (!%p155_p3), %vm536_vm0, %v1008_v1  ;;  %v266_v3 = vld [vmem:[%s1194_s2] sm:$0xff] (!%p155_p3)  ;;  %v267_v4 = vld [vmem:[%s1194_s2 + $0x8] sm:$0xff] (!%p155_p3)  ;;  %v268_v5 = vld [vmem:[%s1194_s2 + $0x10] sm:$0xff] (!%p155_p3)  ;;  %vm546_vm1 = vcmask (!%p155_p3), 1041408  }
   0x8   : > { %969 = vset.pattern.permute.xlu0 (!%p155_p3), %v1043_v2  ;;  %970 = vset.pattern.permute.xlu1 (!%p155_p3), %v1043_v2  ;;  %v1003_v37 = vld [vmem:[%s1193_s1] ss:$16 sps:$4 sm:$0xff] (!%p155_p3)   ;;  %v1006_v40 = vld [vmem:[%s1193_s1 + $0x8] ss:$16 sps:$4 sm:$0xff] (!%p155_p3)   ;;  %v1009_v41 = vld [vmem:[%s1193_s1 + $0x24] ss:$16 sps:$4 sm:$0xff] (!%p155_p3)  }
   0x9   : > { %273 = vperm.xlu0 (!%p155_p3), %969, %v266_v3   ;;  %283 = vperm.xlu1 (!%p155_p3), %970, %v268_v5   ;;  %v270_v39 = vld [vmem:[%s1194_s2 + $0x20] sm:$0xff] (!%p155_p3)  ;;  %v269_v42 = vld [vmem:[%s1194_s2 + $0x18] sm:$0xff] (!%p155_p3)  ;;  %v202_v45 = vld [vmem:[%s1193_s1 + $0x48] sm:$0xff] (!%p155_p3)  ;;  %p847_p5 = scmp.ne.s32.totalorder (!%p155_p3), %s1033_s12, 0 }
   0xa   : > { %v1011_v43 = vld [vmem:[%s1193_s1 + $0x2c] ss:$16 sps:$4 sm:$0xff] (!%p155_p3)   ;;  %v201_v44 = vld [vmem:[%s1193_s1 + $0x40] sm:$0xff] (!%p155_p3)  ;;  %v1014_v47 = vld [vmem:[%s1193_s1 + $0x28] ss:$16 sps:$4 sm:$0xff] (!%p155_p3)   ;;  %v811_v49 = vcombine.high (!%p155_p3), %v202_v45, %v202_v45  ;;  %v810_v51 = vcombine.low (!%p155_p3), %v202_v45, %v202_v45 }
   0xb   : > { %v1013_v46 = vld [vmem:[%s1193_s1 + $0x20] ss:$16 sps:$4 sm:$0xff] (!%p155_p3)   ;;  %v809_v48 = vcombine.high (!%p155_p3), %v201_v44, %v201_v44  ;;  %v808_v50 = vcombine.low (!%p155_p3), %v201_v44, %v201_v44 }
   0xd   : > { %278 = vperm.xlu0 (!%p155_p3), %969, %v267_v4   ;;  %288 = vperm.xlu1 (!%p155_p3), %970, %v269_v42  }
   0xe   : > { %s181_s18 = scalar_select %p180_p4, %s1033_s12, 3 }
  0x10   : > { %s943_s21 = smul.u32 252, %s181_s18 }
  0x11   : > { %293 = vperm.xlu0 %969, %v270_v39  }
  0x12   : > { %s1096_s24 = scalar_lea.vmem %s1192_s0, %s943_s21 }
  0x13   : > { %v971_v6 = vld [vmem:[%s1096_s24 + $0x40] sm:$0xff]   ;;  %v975_v10 = vld [vmem:[%s1096_s24 + $0x48] sm:$0xff]   ;;  %v979_v14 = vld [vmem:[%s1096_s24 + $0x50] sm:$0xff]  }
  0x14   : > { %v972_v7 = vld [vmem:[%s1096_s24 + $0xc0] sm:$0xff]   ;;  %874 = vmatprep.subr.bf16.mxu0 %v971_v6  ;;  %v976_v11 = vld [vmem:[%s1096_s24 + $0xc8] sm:$0xff]   ;;  %v980_v15 = vld [vmem:[%s1096_s24 + $0xd0] sm:$0xff]  }
  0x15   : > { %v973_v8 = vld [vmem:[%s1096_s24] sm:$0xff]   ;;  %908 = vmatprep.subr.bf16.mxu1 %v972_v7  ;;  %v977_v12 = vld [vmem:[%s1096_s24 + $0x8] sm:$0xff]   ;;  %v981_v16 = vld [vmem:[%s1096_s24 + $0x10] sm:$0xff]  }
  0x16   : > { %v974_v9 = vld [vmem:[%s1096_s24 + $0x80] sm:$0xff]   ;;  %875 = vmatpush3.bf16.msra.mxu0 %v973_v8  ;;  %v978_v13 = vld [vmem:[%s1096_s24 + $0x88] sm:$0xff]   ;;  %v982_v17 = vld [vmem:[%s1096_s24 + $0x90] sm:$0xff]  }
  0x17   : > { %909 = vmatpush3.bf16.msra.mxu1 %v974_v9  ;;  %876 = vmatprep.subr.bf16.mxu0 %v975_v10  ;;  %v983_v18 = vld [vmem:[%s1096_s24 + $0x58] sm:$0xff]   ;;  %v987_v22 = vld [vmem:[%s1096_s24 + $0x60] sm:$0xff]   ;;  %v991_v26 = vld [vmem:[%s1096_s24 + $0x68] sm:$0xff]  }
  0x18   : > { %910 = vmatprep.subr.bf16.mxu1 %v976_v11  ;;  %v984_v19 = vld [vmem:[%s1096_s24 + $0xd8] sm:$0xff]   ;;  %v988_v23 = vld [vmem:[%s1096_s24 + $0xe0] sm:$0xff]   ;;  %v992_v27 = vld [vmem:[%s1096_s24 + $0xe8] sm:$0xff]  }
  0x19   : > { %v985_v20 = vld [vmem:[%s1096_s24 + $0x18] sm:$0xff]   ;;  %v989_v24 = vld [vmem:[%s1096_s24 + $0x20] sm:$0xff]   ;;  %v993_v28 = vld [vmem:[%s1096_s24 + $0x28] sm:$0xff]  }
  0x1a   : > { %877 = vmatpush3.bf16.msra.mxu0 %v977_v12  ;;  %v986_v21 = vld [vmem:[%s1096_s24 + $0x98] sm:$0xff]   ;;  %v990_v25 = vld [vmem:[%s1096_s24 + $0xa0] sm:$0xff]   ;;  %v994_v29 = vld [vmem:[%s1096_s24 + $0xa8] sm:$0xff]  }
  0x1b   : > { %911 = vmatpush3.bf16.msra.mxu1 %v978_v13  ;;  %878 = vmatprep.subr.bf16.mxu0 %v979_v14  ;;  %v995_v30 = vld [vmem:[%s1096_s24 + $0x70] sm:$0xff]   ;;  %v999_v34 = vld [vmem:[%s1096_s24 + $0x78] sm:$0xff]  }
  0x1c   : > { %912 = vmatprep.subr.bf16.mxu1 %v980_v15  ;;  %v996_v31 = vld [vmem:[%s1096_s24 + $0xf0] sm:$0xff]   ;;  %v1000_v35 = vld [vmem:[%s1096_s24 + $0xf8] ss:$0 sps:$4 sm:$0x33]  }
  0x1d   : > { %v997_v32 = vld [vmem:[%s1096_s24 + $0x30] sm:$0xff]   ;;  %v1001_v36 = vld [vmem:[%s1096_s24 + $0x38] sm:$0xff]  }
  0x1e   : > { %879 = vmatpush3.bf16.msra.mxu0 %v981_v16  ;;  %v998_v33 = vld [vmem:[%s1096_s24 + $0xb0] sm:$0xff]   ;;  %v1002_v38 = vld [vmem:[%s1096_s24 + $0xb8] sm:$0xff]  }
  0x1f   : > { %913 = vmatpush3.bf16.msra.mxu1 %v982_v17  ;;  %880 = vmatprep.subr.bf16.mxu0 %v983_v18 }
  0x20   : > { %914 = vmatprep.subr.bf16.mxu1 %v984_v19 }
  0x22   : > { %881 = vmatpush3.bf16.msra.mxu0 %v985_v20 }
  0x23   : > { %915 = vmatpush3.bf16.msra.mxu1 %v986_v21  ;;  %882 = vmatprep.subr.bf16.mxu0 %v987_v22 }
  0x24   : > { %916 = vmatprep.subr.bf16.mxu1 %v988_v23 }
  0x26   : > { %883 = vmatpush3.bf16.msra.mxu0 %v989_v24 }
  0x27   : > { %917 = vmatpush3.bf16.msra.mxu1 %v990_v25  ;;  %884 = vmatprep.subr.bf16.mxu0 %v991_v26 }
  0x28   : > { %918 = vmatprep.subr.bf16.mxu1 %v992_v27 }
  0x2a   : > { %885 = vmatpush3.bf16.msra.mxu0 %v993_v28 }
  0x2b   : > { %919 = vmatpush3.bf16.msra.mxu1 %v994_v29  ;;  %886 = vmatprep.subr.bf16.mxu0 %v995_v30 }
  0x2c   : > { %920 = vmatprep.subr.bf16.mxu1 %v996_v31 }
  0x2e   : > { %887 = vmatpush3.bf16.msra.mxu0 %v997_v32 }
  0x2f   : > { %921 = vmatpush3.bf16.msra.mxu1 %v998_v33  ;;  %888 = vmatprep.subr.bf16.mxu0 %v999_v34 }
  0x30   : > { %942 = vmatprep.subr.msk.bf16.mxu1 %vm546_vm1, %v1000_v35 }
  0x32   : > { %889 = vmatpush3.bf16.msra.mxu0 %v1001_v36 }
  0x33   : > { %923 = vmatpush3.bf16.msra.mxu1 %v1002_v38 }
  0x35   : > { %583 = vmatmul.mubr.bf16.vlgmr.msra.gmra.mrb[0].mxu0 %v1003_v37 }
  0x36   : > { %639 = vmatmul.mubr.bf16.vlgmr.msra.gmra.mrb[0].mxu1 %v1006_v40  ;;  %590 = vmatprep.mubr.bf16.mxu0 %v1009_v41 }
  0x37   : > { %845 = vmatprep.mubr.msk.bf16.mxu1 %vm536_vm0, %v1011_v43 }
  0x3d   : > { %591 = vmatmul.mubr.bf16.gmra.mrb[4].mxu0 %v1013_v46 }
  0x3e   : > { %647 = vmatmul.mubr.bf16.gmra.mrb[4].mxu1 %v1014_v47  ;;  %598 = vmatprep.mubr.bf16.mxu0 %v809_v48 }
  0x3f   : > { %846 = vmatprep.mubr.msk.bf16.mxu1 %vm536_vm0, %v811_v49 }
  0x45   : > { %599 = vmatmul.mubr.bf16.gmra.mrb[8].mxu0 %v808_v50 }
  0x46   : > { %655 = vmatmul.mubr.bf16.gmra.mrb[8].mxu1 %v810_v51 }
  0x88   : > { %v274_v52 = vpop.permute.xlu0 %273  ;;  %v284_v53 = vpop.permute.xlu1 %283 }
  0x8c   : > { %v279_v55 = vpop.permute.xlu0 %278  ;;  %v289_v9 = vpop.permute.xlu1 %288 }
  0x90   : > { %v294_v26 = vpop.permute.xlu0 %293 }
 0x108   : > { %v890_v54 = vpop.f32.mrb[0].mxu0 }
 0x109   : > { %v924_v56 = vpop.f32.mrb[0].mxu1  ;;  %v891_v57 = vpop.f32.mrb[1].mxu0 }
 0x10a   : > { %v892_v58 = vadd.f32 %v891_v57, %v890_v54  ;;  %v925_v59 = vpop.f32.mrb[1].mxu1  ;;  %v893_v60 = vpop.f32.mrb[2].mxu0 }
 0x10b   : > { %v926_v61 = vadd.f32 %v925_v59, %v924_v56  ;;  %v927_v62 = vpop.f32.mrb[2].mxu1  ;;  %v894_v63 = vpop.f32.mrb[3].mxu0 }
 0x10c   : > { %v585_v0 = vadd.f32 %v892_v58, %v274_v52  ;;  %v895_v1 = vadd.f32 %v894_v63, %v893_v60  ;;  %v928_v2 = vpop.f32.mrb[3].mxu1 }
 0x10d   : > { %v929_v3 = vadd.f32 %v928_v2, %v927_v62 }
 0x10e   : > { %v641_v4 = vadd.f32 %v926_v61, %v585_v0  ;;  %v588_v5 = vadd.f32 %v895_v1, %v279_v55 }
 0x110   : > { %v662_v6 = vmax.f32 %v641_v4, 0.0  ;;  %v644_v7 = vadd.f32 %v929_v3, %v588_v5  ;;  %v896_v8 = vpop.f32.mrb[4].mxu0 }
 0x111   : > { %v930_v10 = vpop.f32.mrb[4].mxu1  ;;  %v897_v11 = vpop.f32.mrb[5].mxu0 }
 0x112   : > { %v663_v12 = vmax.f32 %v644_v7, 0.0  ;;  %v898_v13 = vadd.f32 %v897_v11, %v896_v8  ;;  %v931_v14 = vpop.f32.mrb[5].mxu1  ;;  %v899_v15 = vpop.f32.mrb[6].mxu0  ;;  %671 = vst [vmem:[#allocation2] sm:$0xff] (!%p847_p5), %v662_v6 }
 0x113   : > { %v932_v16 = vadd.f32 %v931_v14, %v930_v10  ;;  %v933_v17 = vpop.f32.mrb[6].mxu1  ;;  %v900_v18 = vpop.f32.mrb[7].mxu0 }
 0x114   : > { %v593_v19 = vadd.f32 %v898_v13, %v284_v53  ;;  %v901_v20 = vadd.f32 %v900_v18, %v899_v15  ;;  %v934_v21 = vpop.f32.mrb[7].mxu1  ;;  %672 = vst [vmem:[#allocation2 + $0x8] sm:$0xff] (!%p847_p5), %v663_v12 }
 0x115   : > { %v935_v22 = vadd.f32 %v934_v21, %v933_v17 }
 0x116   : > { %v649_v23 = vadd.f32 %v932_v16, %v593_v19  ;;  %v596_v24 = vadd.f32 %v901_v20, %v289_v9 }
 0x118   : > { %v664_v25 = vmax.f32 %v649_v23, 0.0  ;;  %v652_v27 = vadd.f32 %v935_v22, %v596_v24  ;;  %v902_v28 = vpop.f32.mrb[8].mxu0 }
 0x119   : > { %v936_v29 = vpop.f32.mrb[8].mxu1  ;;  %v903_v30 = vpop.f32.mrb[9].mxu0 }
 0x11a   : > { %v665_v31 = vmax.f32 %v652_v27, 0.0  ;;  %v904_v32 = vadd.f32 %v903_v30, %v902_v28  ;;  %v937_v33 = vpop.f32.mrb[9].mxu1  ;;  %v905_v34 = vpop.f32.mrb[10].mxu0  ;;  %670 = sbr.rel (%p847_p5) target bundleno = 291 (0x123), region = 36  ;;  %673 = vst [vmem:[#allocation2 + $0x10] sm:$0xff] (!%p847_p5), %v664_v25 }
 0x11b   : > { %v938_v35 = vadd.f32 %v937_v33, %v936_v29  ;;  %v939_v36 = vpop.f32.mrb[10].mxu1  ;;  %v906_v37 = vpop.f32.mrb[11].mxu0 }
 0x11c   : > { %v601_v38 = vadd.f32 %v904_v32, %v294_v26  ;;  %v940_v39 = vpop.f32.mrb[11].mxu1  ;;  %674 = vst [vmem:[#allocation2 + $0x18] sm:$0xff] (!%p847_p5), %v665_v31 }
 0x11e   : > { %v657_v40 = vadd.f32 %v938_v35, %v601_v38 }
 0x120   : > { %v666_v41 = vmax.f32 %v657_v40, 0.0 }
 0x122   : > { %675 = vst [vmem:[#allocation2 + $0x20] sm:$0xff] %v666_v41 }
 0x123 PF: > { %p848_p6 = scmp.le.s32.totalorder %s1033_s12, 0 }
 0x124   : > { %v680_v42 = vld [vmem:[#allocation2] sm:$0xff] (!%p848_p6)  ;;  %v681_v43 = vld [vmem:[#allocation2 + $0x8] sm:$0xff] (!%p848_p6)  ;;  %v682_v44 = vld [vmem:[#allocation2 + $0x10] sm:$0xff] (!%p848_p6) }
 0x125   : > { %679 = sbr.rel (%p848_p6) target bundleno = 301 (0x12d), region = 40  ;;  %v685_v45 = vmax.f32 (!%p848_p6), %v680_v42, %v662_v6  ;;  %v686_v46 = vmax.f32 (!%p848_p6), %v681_v43, %v663_v12  ;;  %v687_v47 = vmax.f32 (!%p848_p6), %v682_v44, %v664_v25  ;;  %v683_v48 = vld [vmem:[#allocation2 + $0x18] sm:$0xff] (!%p848_p6) }
 0x126   : > { %v688_v50 = vmax.f32 (!%p848_p6), %v683_v48, %v665_v31 }
 0x127   : > { %690 = vst [vmem:[#allocation2] sm:$0xff] (!%p848_p6), %v685_v45  ;;  %691 = vst [vmem:[#allocation2 + $0x8] sm:$0xff] (!%p848_p6), %v686_v46 }
 0x128   : > { %692 = vst [vmem:[#allocation2 + $0x10] sm:$0xff] (!%p848_p6), %v687_v47  ;;  %693 = vst [vmem:[#allocation2 + $0x18] sm:$0xff] (!%p848_p6), %v688_v50 }
 0x129   : > { %v684_v49 = vld [vmem:[#allocation2 + $0x20] sm:$0xff] (!%p848_p6) }
 0x12a   : > { %v689_v51 = vmax.f32 (!%p848_p6), %v684_v49, %v666_v41 }
 0x12c   : > { %694 = vst [vmem:[#allocation2 + $0x20] sm:$0xff] %v689_v51 }
 0x12d PF: > { %p849_p7 = scmp.ne.s32.totalorder %s1033_s12, 3 }
 0x12f   : > { %698 = sbr.rel (%p849_p7) target bundleno = 311 (0x137), region = 44  ;;  %v699_v52 = vld [vmem:[#allocation2] sm:$0xff] (!%p849_p7)  ;;  %v700_v53 = vld [vmem:[#allocation2 + $0x8] sm:$0xff] (!%p849_p7) }
 0x130   : > { %v701_v54 = vld [vmem:[#allocation2 + $0x10] sm:$0xff] (!%p849_p7)  ;;  %v866_v55 = vpack.c.bf16 (!%p849_p7), %v700_v53, %v699_v52  ;;  %v702_v56 = vld [vmem:[#allocation2 + $0x18] sm:$0xff] (!%p849_p7) }
 0x131   : > { %v871_v58 = vpack.c.bf16 (!%p849_p7), %v702_v56, %v701_v54 }
 0x132   : > { %867 = vst [vmem:[%s1195_s3] sm:$0xff] (!%p849_p7), %v866_v55  }
 0x133   : > { %v703_v57 = vld [vmem:[#allocation2 + $0x20] sm:$0xff] (!%p849_p7)  ;;  %873 = vst [vmem:[%s1195_s3 + $0x8] sm:$0xff] (!%p849_p7), %v871_v58  }
 0x134   : > { %v862_v59 = vpack.c.bf16 (!%p849_p7), %v703_v57, %v703_v57 }
 0x136   : > { %729 = vst [vmem:[%s1195_s3 + $0x10] sm:$0xf] %v862_v59 }
 0x137 PF: > { %s13_s14 = sadd.s32 1, %s1041_s14   ;;  %s1196_s12 = smov %s1037_s13 }
 0x138   : > { %p10_p8 = scmp.ge.s32.totalorder %s13_s14, 6   ;;  %s1197_s13 = smov %s1199_s15 }
 0x13a   :  { %12 = sbr.rel (!%p10_p8) target bundleno = 2 (0x2), region = 74 }

// kernel: attention_mcnn_forward.20
= control target key start
LH: loop header
LB: loop body
LE: loop exit
PB: predicated region body
PF: predicated region fallthrough
CT: control target
= control target key end

     0   :  { %v1087_v1 = vmov 0   ;;  %vm611_vm0 = vcmask 850944   ;;  %vm618_vm1 = vcmask 1043456   ;;  %s1367_s0 = inlined_call_operand.vmem [shape: bf16[1000,128], index: 0, kind: input, shape index: {}]   ;;  %s1368_s1 = inlined_call_operand.vmem [shape: bf16[20,1000], index: 1, kind: input, shape index: {}]   ;;  %s1369_s2 = inlined_call_operand.vmem [shape: f32[20,1], index: 2, kind: input, shape index: {}]   ;;  %s1370_s3 = inlined_call_operand.vmem [shape: bf16[20,128], index: 3, kind: output, shape index: {}]  }
   0x1   :  { %v1016_v0 = vld [vmem:[%s1367_s0 + $0x40] sm:$0xff]   ;;  %1014 = vset.pattern.permute.xlu0 %v1087_v1  ;;  %1015 = vset.pattern.permute.xlu1 %v1087_v1  ;;  %v1020_v5 = vld [vmem:[%s1367_s0 + $0x48] sm:$0xff]   ;;  %v1024_v9 = vld [vmem:[%s1367_s0 + $0x50] sm:$0xff]  }
   0x2   :  { %v1017_v2 = vld [vmem:[%s1367_s0 + $0xc0] sm:$0xff]   ;;  %929 = vmatprep.subr.bf16.mxu0 %v1016_v0  ;;  %v1021_v6 = vld [vmem:[%s1367_s0 + $0xc8] sm:$0xff]   ;;  %v1025_v10 = vld [vmem:[%s1367_s0 + $0xd0] sm:$0xff]  }
   0x3   :  { %v1018_v3 = vld [vmem:[%s1367_s0] sm:$0xff]   ;;  %957 = vmatprep.subr.bf16.mxu1 %v1017_v2  ;;  %v1022_v7 = vld [vmem:[%s1367_s0 + $0x8] sm:$0xff]   ;;  %v1026_v11 = vld [vmem:[%s1367_s0 + $0x10] sm:$0xff]  }
   0x4   :  { %v1019_v4 = vld [vmem:[%s1367_s0 + $0x80] sm:$0xff]   ;;  %930 = vmatpush3.bf16.msra.mxu0 %v1018_v3  ;;  %v1023_v8 = vld [vmem:[%s1367_s0 + $0x88] sm:$0xff]   ;;  %v1027_v12 = vld [vmem:[%s1367_s0 + $0x90] sm:$0xff]  }
   0x5   :  { %958 = vmatpush3.bf16.msra.mxu1 %v1019_v4  ;;  %931 = vmatprep.subr.bf16.mxu0 %v1020_v5  ;;  %v1028_v13 = vld [vmem:[%s1367_s0 + $0x58] sm:$0xff]   ;;  %v1032_v17 = vld [vmem:[%s1367_s0 + $0x60] sm:$0xff]   ;;  %v1036_v21 = vld [vmem:[%s1367_s0 + $0x68] sm:$0xff]  }
   0x6   :  { %959 = vmatprep.subr.bf16.mxu1 %v1021_v6  ;;  %v1029_v14 = vld [vmem:[%s1367_s0 + $0xd8] sm:$0xff]   ;;  %v1033_v18 = vld [vmem:[%s1367_s0 + $0xe0] sm:$0xff]   ;;  %v1037_v22 = vld [vmem:[%s1367_s0 + $0xe8] sm:$0xff]  }
   0x7   :  { %v1030_v15 = vld [vmem:[%s1367_s0 + $0x18] sm:$0xff]   ;;  %v1034_v19 = vld [vmem:[%s1367_s0 + $0x20] sm:$0xff]   ;;  %v1038_v23 = vld [vmem:[%s1367_s0 + $0x28] sm:$0xff]  }
   0x8   :  { %932 = vmatpush3.bf16.msra.mxu0 %v1022_v7  ;;  %v1031_v16 = vld [vmem:[%s1367_s0 + $0x98] sm:$0xff]   ;;  %v1035_v20 = vld [vmem:[%s1367_s0 + $0xa0] sm:$0xff]   ;;  %v1039_v24 = vld [vmem:[%s1367_s0 + $0xa8] sm:$0xff]  }
   0x9   :  { %960 = vmatpush3.bf16.msra.mxu1 %v1023_v8  ;;  %933 = vmatprep.subr.bf16.mxu0 %v1024_v9  ;;  %v1040_v25 = vld [vmem:[%s1367_s0 + $0x70] sm:$0xff]   ;;  %v1044_v29 = vld [vmem:[%s1367_s0 + $0x78] sm:$0xff]   ;;  %v15_v33 = vld [vmem:[%s1368_s1] sm:$0xff] }
   0xa   :  { %961 = vmatprep.subr.bf16.mxu1 %v1025_v10  ;;  %v1041_v26 = vld [vmem:[%s1367_s0 + $0xf0] sm:$0xff]   ;;  %v1045_v30 = vld [vmem:[%s1367_s0 + $0xf8] sm:$0xff]   ;;  %v19_v34 = vld [vmem:[%s1368_s1 + $0x20] sm:$0xff] }
   0xb   :  { %v1042_v27 = vld [vmem:[%s1367_s0 + $0x30] sm:$0xff]   ;;  %v1046_v31 = vld [vmem:[%s1367_s0 + $0x38] sm:$0xff]   ;;  %v16_v35 = vld [vmem:[%s1368_s1 + $0x8] sm:$0xff]  ;;  %v837_v36 = vcombine.low %v15_v33, %v19_v34  ;;  %v838_v37 = vcombine.high %v15_v33, %v19_v34 }
   0xc   :  { %934 = vmatpush3.bf16.msra.mxu0 %v1026_v11  ;;  %v1043_v28 = vld [vmem:[%s1367_s0 + $0xb0] sm:$0xff]   ;;  %v1047_v32 = vld [vmem:[%s1367_s0 + $0xb8] sm:$0xff]   ;;  %v20_v38 = vld [vmem:[%s1368_s1 + $0x28] sm:$0xff] }
   0xd   :  { %962 = vmatpush3.bf16.msra.mxu1 %v1027_v12  ;;  %935 = vmatprep.subr.bf16.mxu0 %v1028_v13  ;;  %v839_v39 = vcombine.low %v16_v35, %v20_v38  ;;  %v840_v40 = vcombine.high %v16_v35, %v20_v38  ;;  %v1048_v41 = vld [vmem:[%s1367_s0 + $0x140] sm:$0xff]   ;;  %v1051_v44 = vld [vmem:[%s1367_s0 + $0x148] sm:$0xff]   ;;  %v1054_v47 = vld [vmem:[%s1367_s0 + $0x150] sm:$0xff]  }
   0xe   :  { %963 = vmatprep.subr.bf16.mxu1 %v1029_v14  ;;  %654 = vmatprep.mubr.bf16.mxu0 %v838_v37  ;;  %v1049_v42 = vld [vmem:[%s1367_s0 + $0x100] sm:$0xff]   ;;  %v1052_v45 = vld [vmem:[%s1367_s0 + $0x108] sm:$0xff]   ;;  %v1055_v48 = vld [vmem:[%s1367_s0 + $0x110] sm:$0xff]  }
   0xf   :  { %702 = vmatprep.mubr.bf16.mxu1 %v840_v40  ;;  %v1050_v43 = vld [vmem:[%s1367_s0 + $0x180] sm:$0xff]   ;;  %v1053_v46 = vld [vmem:[%s1367_s0 + $0x188] sm:$0xff]   ;;  %v1056_v49 = vld [vmem:[%s1367_s0 + $0x190] sm:$0xff]  }
  0x10   :  { %936 = vmatpush3.bf16.msra.mxu0 %v1030_v15  ;;  %v1057_v50 = vld [vmem:[%s1367_s0 + $0x158] sm:$0xff]   ;;  %v1060_v53 = vld [vmem:[%s1367_s0 + $0x160] sm:$0xff]   ;;  %v1063_v56 = vld [vmem:[%s1367_s0 + $0x168] sm:$0xff]  }
  0x11   :  { %964 = vmatpush3.bf16.msra.mxu1 %v1031_v16  ;;  %937 = vmatprep.subr.bf16.mxu0 %v1032_v17  ;;  %v1058_v51 = vld [vmem:[%s1367_s0 + $0x118] sm:$0xff]   ;;  %v1061_v54 = vld [vmem:[%s1367_s0 + $0x120] sm:$0xff]   ;;  %v1064_v59 = vld [vmem:[%s1367_s0 + $0x128] sm:$0xff]  }
  0x12   :  { %965 = vmatprep.subr.bf16.mxu1 %v1033_v18  ;;  %v1059_v52 = vld [vmem:[%s1367_s0 + $0x198] sm:$0xff]   ;;  %v1062_v55 = vld [vmem:[%s1367_s0 + $0x1a0] sm:$0xff]   ;;  %v1065_v61 = vld [vmem:[%s1367_s0 + $0x1a8] sm:$0xff]  }
  0x13   :  { %v23_v57 = vld [vmem:[%s1368_s1 + $0x40] sm:$0x33]  ;;  %v1068_v62 = vld [vmem:[%s1367_s0 + $0x170] sm:$0xff]   ;;  %v1071_v4 = vld [vmem:[%s1367_s0 + $0x178] sm:$0xff]  }
  0x14   :  { %938 = vmatpush3.bf16.msra.mxu0 %v1034_v19  ;;  %v846_v58 = vcombine.high %v23_v57, %v23_v57  ;;  %v845_v60 = vcombine.low %v23_v57, %v23_v57  ;;  %v1069_v63 = vld [vmem:[%s1367_s0 + $0x130] sm:$0xff]   ;;  %v1072_v6 = vld [vmem:[%s1367_s0 + $0x138] sm:$0xff]   ;;  %v24_v8 = vld [vmem:[%s1368_s1 + $0x48] sm:$0x33] }
  0x15   :  { %966 = vmatpush3.bf16.msra.mxu1 %v1035_v20  ;;  %939 = vmatprep.subr.bf16.mxu0 %v1036_v21  ;;  %v1070_v0 = vld [vmem:[%s1367_s0 + $0x1b0] sm:$0xff]   ;;  %v1073_v7 = vld [vmem:[%s1367_s0 + $0x1b8] sm:$0xff]   ;;  %v848_v9 = vcombine.high %v24_v8, %v24_v8  ;;  %v847_v10 = vcombine.low %v24_v8, %v24_v8  ;;  %v1074_v14 = vld [vmem:[%s1367_s0 + $0x1c0] sm:$0xff]  }
  0x16   :  { %967 = vmatprep.subr.bf16.mxu1 %v1037_v22  ;;  %v17_v2 = vld [vmem:[%s1368_s1 + $0x10] sm:$0xff]  ;;  %v18_v13 = vld [vmem:[%s1368_s1 + $0x18] sm:$0xff]  ;;  %v152_v17 = vld [vmem:[%s1369_s2] sm:$0xff] }
  0x17   :  { %v21_v3 = vld [vmem:[%s1368_s1 + $0x30] sm:$0xff]  ;;  %v22_v16 = vld [vmem:[%s1368_s1 + $0x38] sm:$0xff]  ;;  %157 = vperm.xlu0 %1014, %v152_v17   ;;  %v153_v20 = vld [vmem:[%s1369_s2 + $0x8] sm:$0xff] }
  0x18   :  { %940 = vmatpush3.bf16.msra.mxu0 %v1038_v23  ;;  %v842_v5 = vcombine.high %v17_v2, %v21_v3  ;;  %v25_v11 = vld [vmem:[%s1368_s1 + $0x50] sm:$0x33]  ;;  %v841_v12 = vcombine.low %v17_v2, %v21_v3  ;;  %v844_v18 = vcombine.high %v18_v13, %v22_v16  ;;  %v1075_v21 = vld [vmem:[%s1367_s0 + $0x1c8] sm:$0xff]  }
  0x19   :  { %968 = vmatpush3.bf16.msra.mxu1 %v1039_v24  ;;  %941 = vmatprep.subr.bf16.mxu0 %v1040_v25  ;;  %v850_v15 = vcombine.high %v25_v11, %v25_v11  ;;  %v154_v19 = vld [vmem:[%s1369_s2 + $0x10] sm:$0xf]  ;;  %v849_v22 = vcombine.low %v25_v11, %v25_v11  ;;  %v1077_v24 = vld [vmem:[%s1367_s0 + $0x1d8] sm:$0xff]   ;;  %v1081_v25 = vld [vmem:[%s1367_s0 + $0x1e0] sm:$0xff]  }
  0x1a   :  { %969 = vmatprep.subr.bf16.mxu1 %v1041_v26  ;;  %167 = vperm.xlu1 %1015, %v154_v19   ;;  %v1076_v23 = vld [vmem:[%s1367_s0 + $0x1d0] sm:$0xff]   ;;  %v1083_v26 = vld [vmem:[%s1367_s0 + $0x1e8] sm:$0xff]  }
  0x1b   :  { %162 = vperm.xlu0 %1014, %v153_v20  }
  0x1c   :  { %942 = vmatpush3.bf16.msra.mxu0 %v1042_v27  ;;  %v1084_v27 = vld [vmem:[%s1367_s0 + $0x1f0] ss:$0 sps:$4 sm:$0xff]  }
  0x1d   :  { %970 = vmatpush3.bf16.msra.mxu1 %v1043_v28  ;;  %943 = vmatprep.subr.bf16.mxu0 %v1044_v29  ;;  %v620_v28 = vsel %vm618_vm1, %v1084_v27, 0  ;;  %v26_v29 = vld [vmem:[%s1368_s1 + $0x58] sm:$0x33] }
  0x1e   :  { %971 = vmatprep.subr.bf16.mxu1 %v1045_v30  ;;  %v843_v30 = vcombine.low %v18_v13, %v22_v16 }
  0x20   :  { %944 = vmatpush3.bf16.msra.mxu0 %v1046_v31  ;;  %v852_v31 = vcombine.high %v26_v29, %v26_v29 }
  0x21   :  { %972 = vmatpush3.bf16.msra.mxu1 %v1047_v32  ;;  %985 = vmatprep.subr.bf16.mxu0 %v1048_v41  ;;  %v851_v32 = vcombine.low %v26_v29, %v26_v29 }
  0x22   :  { %766 = vmatprep.subr.bf16.mxu1 %v1087_v1 }
  0x23   :  { %655 = vmatmul.mubr.bf16.vlgmr.msra.gmra.mrb[0].mxu0 %v837_v36 }
  0x24   :  { %703 = vmatmul.mubr.bf16.vlgmr.msra.gmra.mrb[0].mxu1 %v839_v39  ;;  %986 = vmatpush3.bf16.msra.mxu0 %v1049_v42 }
  0x25   :  { %767 = vmatpush1.bf16.msra.mxu1 %v1050_v43  ;;  %987 = vmatprep.subr.bf16.mxu0 %v1051_v44 }
  0x26   :  { %768 = vmatprep.subr.bf16.mxu1 %v1087_v1  ;;  %662 = vmatprep.mubr.bf16.mxu0 %v846_v58 }
  0x27   :  { %710 = vmatprep.mubr.bf16.mxu1 %v848_v9 }
  0x28   :  { %988 = vmatpush3.bf16.msra.mxu0 %v1052_v45 }
  0x29   :  { %769 = vmatpush1.bf16.msra.mxu1 %v1053_v46  ;;  %989 = vmatprep.subr.bf16.mxu0 %v1054_v47 }
  0x2a   :  { %770 = vmatprep.subr.bf16.mxu1 %v1087_v1 }
  0x2b   :  { %663 = vmatmul.mubr.bf16.gmra.mrb[4].mxu0 %v845_v60 }
  0x2c   :  { %990 = vmatpush3.bf16.msra.mxu0 %v1055_v48  ;;  %750 = vmatprep.mubr.bf16.mxu0 %v842_v5 }
  0x2d   :  { %771 = vmatpush1.bf16.msra.mxu1 %v1056_v49  ;;  %991 = vmatprep.subr.bf16.mxu0 %v1057_v50 }
  0x2e   :  { %772 = vmatprep.subr.bf16.mxu1 %v1087_v1  ;;  %711 = vmatmul.mubr.bf16.gmra.mrb[4].mxu1 %v847_v10 }
  0x2f   :  { %916 = vmatprep.mubr.msk.bf16.mxu1 %vm611_vm0, %v844_v18 }
  0x30   :  { %992 = vmatpush3.bf16.msra.mxu0 %v1058_v51 }
  0x31   :  { %773 = vmatpush1.bf16.msra.mxu1 %v1059_v52  ;;  %993 = vmatprep.subr.bf16.mxu0 %v1060_v53 }
  0x32   :  { %774 = vmatprep.subr.bf16.mxu1 %v1087_v1 }
  0x34   :  { %994 = vmatpush3.bf16.msra.mxu0 %v1061_v54 }
  0x35   :  { %775 = vmatpush1.bf16.msra.mxu1 %v1062_v55  ;;  %995 = vmatprep.subr.bf16.mxu0 %v1063_v56 }
  0x36   :  { %776 = vmatprep.subr.bf16.mxu1 %v1087_v1 }
  0x38   :  { %996 = vmatpush3.bf16.msra.mxu0 %v1064_v59 }
  0x39   :  { %777 = vmatpush1.bf16.msra.mxu1 %v1065_v61  ;;  %997 = vmatprep.subr.bf16.mxu0 %v1068_v62 }
  0x3a   :  { %778 = vmatprep.subr.bf16.mxu1 %v1087_v1 }
  0x3c   :  { %998 = vmatpush3.bf16.msra.mxu0 %v1069_v63 }
  0x3d   :  { %779 = vmatpush1.bf16.msra.mxu1 %v1070_v0  ;;  %999 = vmatprep.subr.bf16.mxu0 %v1071_v4 }
  0x3e   :  { %780 = vmatprep.subr.bf16.mxu1 %v1087_v1 }
  0x40   :  { %1000 = vmatpush3.bf16.msra.mxu0 %v1072_v6 }
  0x41   :  { %781 = vmatpush1.bf16.msra.mxu1 %v1073_v7 }
  0x42   :  { %782 = vmatprep.subr.bf16.mxu1 %v1087_v1 }
  0x43   :  { %751 = vmatmul.mubr.bf16.vlgmr.msra.gmra.mrb[8].mxu0 %v841_v12 }
  0x44   :  { %758 = vmatprep.mubr.bf16.mxu0 %v850_v15 }
  0x45   :  { %783 = vmatpush1.bf16.msra.mxu1 %v1074_v14 }
  0x46   :  { %784 = vmatprep.subr.bf16.mxu1 %v1087_v1 }
  0x49   :  { %785 = vmatpush1.bf16.msra.mxu1 %v1075_v21 }
  0x4a   :  { %786 = vmatprep.subr.bf16.mxu1 %v1087_v1 }
  0x4b   :  { %759 = vmatmul.mubr.bf16.gmra.mrb[12].mxu0 %v849_v22 }
  0x4d   :  { %787 = vmatpush1.bf16.msra.mxu1 %v1076_v23 }
  0x4e   :  { %788 = vmatprep.subr.bf16.mxu1 %v1087_v1 }
  0x51   :  { %789 = vmatpush1.bf16.msra.mxu1 %v1077_v24 }
  0x52   :  { %790 = vmatprep.subr.bf16.mxu1 %v1087_v1 }
  0x55   :  { %791 = vmatpush1.bf16.msra.mxu1 %v1081_v25 }
  0x56   :  { %792 = vmatprep.subr.bf16.mxu1 %v1087_v1 }
  0x59   :  { %793 = vmatpush1.bf16.msra.mxu1 %v1083_v26 }
  0x5a   :  { %794 = vmatprep.subr.bf16.mxu1 %v1087_v1 }
  0x5d   :  { %795 = vmatpush1.bf16.msra.mxu1 %v620_v28 }
  0x60   :  { %799 = vmatmul.mubr.bf16.vlgmr.msra.gmra.mrb[8].mxu1 %v843_v30 }
  0x61   :  { %917 = vmatprep.mubr.msk.bf16.mxu1 %vm611_vm0, %v852_v31 }
  0x68   :  { %807 = vmatmul.mubr.bf16.gmra.mrb[12].mxu1 %v851_v32 }
  0x96   :  { %v158_v33 = vpop.permute.xlu0 %157 }
  0x99   :  { %v168_v55 = vpop.permute.xlu1 %167 }
  0x9a   :  { %v163_v35 = vpop.permute.xlu0 %162 }
  0xf6   :  { %v945_v34 = vpop.f32.mrb[0].mxu0 }
  0xf7   :  { %v973_v36 = vpop.f32.mrb[0].mxu1  ;;  %v946_v37 = vpop.f32.mrb[1].mxu0 }
  0xf8   :  { %v947_v38 = vadd.f32 %v946_v37, %v945_v34  ;;  %v974_v1 = vpop.f32.mrb[1].mxu1  ;;  %v948_v39 = vpop.f32.mrb[2].mxu0 }
  0xf9   :  { %v975_v40 = vadd.f32 %v974_v1, %v973_v36  ;;  %v976_v41 = vpop.f32.mrb[2].mxu1  ;;  %v949_v42 = vpop.f32.mrb[3].mxu0 }
  0xfa   :  { %v657_v43 = vadd.f32 %v947_v38, %v158_v33  ;;  %v950_v44 = vadd.f32 %v949_v42, %v948_v39  ;;  %v977_v45 = vpop.f32.mrb[3].mxu1 }
  0xfb   :  { %v978_v46 = vadd.f32 %v977_v45, %v976_v41 }
  0xfc   :  { %v705_v47 = vadd.f32 %v975_v40, %v657_v43  ;;  %v660_v48 = vadd.f32 %v950_v44, %v163_v35 }
  0xfe   :  { %v708_v49 = vadd.f32 %v978_v46, %v660_v48  ;;  %v951_v50 = vpop.f32.mrb[4].mxu0 }
  0xff   :  { %v952_v51 = vpop.f32.mrb[5].mxu0 }
 0x100   :  { %v953_v52 = vadd.f32 %v952_v51, %v951_v50  ;;  %v954_v53 = vpop.f32.mrb[6].mxu0 }
 0x101   :  { %v955_v54 = vpop.f32.mrb[7].mxu0  ;;  %v979_v56 = vpop.f32.mrb[4].mxu1 }
 0x102   :  { %v665_v57 = vadd.f32 %v953_v52, %v168_v55  ;;  %v980_v58 = vpop.f32.mrb[5].mxu1 }
 0x103   :  { %v981_v60 = vadd.f32 %v980_v58, %v979_v56  ;;  %v982_v61 = vpop.f32.mrb[6].mxu1 }
 0x104   :  { %v983_v63 = vpop.f32.mrb[7].mxu1 }
 0x105   :  { %v713_v3 = vadd.f32 %v981_v60, %v665_v57 }
 0x116   :  { %v1001_v59 = vpop.f32.mrb[8].mxu0 }
 0x117   :  { %v1002_v62 = vpop.f32.mrb[9].mxu0 }
 0x118   :  { %v1003_v0 = vadd.f32 %v1002_v62, %v1001_v59  ;;  %v1004_v2 = vpop.f32.mrb[10].mxu0 }
 0x119   :  { %v1005_v4 = vpop.f32.mrb[11].mxu0 }
 0x11a   :  { %v1006_v5 = vadd.f32 %v1005_v4, %v1004_v2  ;;  %v753_v6 = vadd.f32 %v1003_v0, %v705_v47 }
 0x11c   :  { %v756_v7 = vadd.f32 %v1006_v5, %v708_v49 }
 0x11e   :  { %v1007_v8 = vpop.f32.mrb[12].mxu0 }
 0x11f   :  { %v1008_v9 = vpop.f32.mrb[13].mxu0 }
 0x120   :  { %v1009_v10 = vadd.f32 %v1008_v9, %v1007_v8  ;;  %v1010_v11 = vpop.f32.mrb[14].mxu0 }
 0x121   :  { %v1011_v12 = vpop.f32.mrb[15].mxu0 }
 0x122   :  { %v761_v13 = vadd.f32 %v1009_v10, %v713_v3 }
 0x133   :  { %v800_v14 = vpop.f32.mrb[8].mxu1 }
 0x134   :  { %v801_v15 = vadd.f32 %v800_v14, %v753_v6  ;;  %v802_v16 = vpop.f32.mrb[9].mxu1 }
 0x135   :  { %v803_v17 = vpop.f32.mrb[10].mxu1 }
 0x136   :  { %v804_v18 = vadd.f32 %v803_v17, %v756_v7  ;;  %v805_v19 = vpop.f32.mrb[11].mxu1  ;;  %v814_v20 = vmax.f32 %v801_v15, 0.0 }
 0x138   :  { %v815_v21 = vmax.f32 %v804_v18, 0.0 }
 0x13a   :  { %v927_v22 = vpack.c.bf16 %v815_v21, %v814_v20 }
 0x13b   :  { %v808_v23 = vpop.f32.mrb[12].mxu1 }
 0x13c   :  { %v809_v24 = vadd.f32 %v808_v23, %v761_v13  ;;  %928 = vst [vmem:[%s1370_s3] sm:$0xff] %v927_v22   ;;  %v810_v25 = vpop.f32.mrb[13].mxu1 }
 0x13d   :  { %v811_v26 = vpop.f32.mrb[14].mxu1 }
 0x13e   :  { %v816_v27 = vmax.f32 %v809_v24, 0.0  ;;  %v812_v28 = vpop.f32.mrb[15].mxu1 }
 0x140   :  { %v923_v29 = vpack.c.bf16 %v816_v27, %v816_v27 }
 0x142   :  { %832 = vst [vmem:[%s1370_s3 + $0x8] sm:$0x3] %v923_v29 }

// kernel: attention_mcnn_forward.21
= control target key start
LH: loop header
LB: loop body
LE: loop exit
PB: predicated region body
PF: predicated region fallthrough
CT: control target
= control target key end

     0   :  { %v654_v1 = vmov 0   ;;  %vm333_vm0 = vcmask 1041408   ;;  %vm326_vm1 = vcmask 949248   ;;  %s815_s0 = inlined_call_operand.vmem [shape: bf16[500,128], index: 0, kind: input, shape index: {}]   ;;  %s816_s1 = inlined_call_operand.vmem [shape: bf16[20,500], index: 1, kind: input, shape index: {}]   ;;  %s817_s2 = inlined_call_operand.vmem [shape: f32[20,1], index: 2, kind: input, shape index: {}]   ;;  %s818_s3 = inlined_call_operand.vmem [shape: bf16[20,128], index: 3, kind: input, shape index: {}]   ;;  %s819_s4 = inlined_call_operand.vmem [shape: bf16[20,128], index: 4, kind: output, shape index: {}]  }
   0x1   :  { %v600_v0 = vld [vmem:[%s815_s0 + $0x40] sm:$0xff]   ;;  %598 = vset.pattern.permute.xlu0 %v654_v1  ;;  %599 = vset.pattern.permute.xlu1 %v654_v1  ;;  %v604_v5 = vld [vmem:[%s815_s0 + $0x48] sm:$0xff]   ;;  %v608_v9 = vld [vmem:[%s815_s0 + $0x50] sm:$0xff]  }
   0x2   :  { %v601_v2 = vld [vmem:[%s815_s0 + $0xc0] sm:$0xff]   ;;  %540 = vmatprep.subr.bf16.mxu0 %v600_v0  ;;  %v605_v6 = vld [vmem:[%s815_s0 + $0xc8] sm:$0xff]   ;;  %v609_v10 = vld [vmem:[%s815_s0 + $0xd0] sm:$0xff]  }
   0x3   :  { %v602_v3 = vld [vmem:[%s815_s0] sm:$0xff]   ;;  %568 = vmatprep.subr.bf16.mxu1 %v601_v2  ;;  %v606_v7 = vld [vmem:[%s815_s0 + $0x8] sm:$0xff]   ;;  %v610_v11 = vld [vmem:[%s815_s0 + $0x10] sm:$0xff]  }
   0x4   :  { %v603_v4 = vld [vmem:[%s815_s0 + $0x80] sm:$0xff]   ;;  %541 = vmatpush3.bf16.msra.mxu0 %v602_v3  ;;  %v607_v8 = vld [vmem:[%s815_s0 + $0x88] sm:$0xff]   ;;  %v611_v12 = vld [vmem:[%s815_s0 + $0x90] sm:$0xff]  }
   0x5   :  { %569 = vmatpush3.bf16.msra.mxu1 %v603_v4  ;;  %542 = vmatprep.subr.bf16.mxu0 %v604_v5  ;;  %v612_v13 = vld [vmem:[%s815_s0 + $0x58] sm:$0xff]   ;;  %v616_v17 = vld [vmem:[%s815_s0 + $0x60] sm:$0xff]   ;;  %v620_v21 = vld [vmem:[%s815_s0 + $0x68] sm:$0xff]  }
   0x6   :  { %570 = vmatprep.subr.bf16.mxu1 %v605_v6  ;;  %v613_v14 = vld [vmem:[%s815_s0 + $0xd8] sm:$0xff]   ;;  %v617_v18 = vld [vmem:[%s815_s0 + $0xe0] sm:$0xff]   ;;  %v621_v22 = vld [vmem:[%s815_s0 + $0xe8] sm:$0xff]  }
   0x7   :  { %v614_v15 = vld [vmem:[%s815_s0 + $0x18] sm:$0xff]   ;;  %v618_v19 = vld [vmem:[%s815_s0 + $0x20] sm:$0xff]   ;;  %v622_v23 = vld [vmem:[%s815_s0 + $0x28] sm:$0xff]  }
   0x8   :  { %543 = vmatpush3.bf16.msra.mxu0 %v606_v7  ;;  %v615_v16 = vld [vmem:[%s815_s0 + $0x98] sm:$0xff]   ;;  %v619_v20 = vld [vmem:[%s815_s0 + $0xa0] sm:$0xff]   ;;  %v623_v24 = vld [vmem:[%s815_s0 + $0xa8] sm:$0xff]  }
   0x9   :  { %571 = vmatpush3.bf16.msra.mxu1 %v607_v8  ;;  %544 = vmatprep.subr.bf16.mxu0 %v608_v9  ;;  %v624_v25 = vld [vmem:[%s815_s0 + $0x70] sm:$0xff]   ;;  %v628_v29 = vld [vmem:[%s815_s0 + $0x78] sm:$0xff]   ;;  %v22_v37 = vld [vmem:[%s816_s1 + $0x20] sm:$0x33] }
   0xa   :  { %572 = vmatprep.subr.bf16.mxu1 %v609_v10  ;;  %v625_v26 = vld [vmem:[%s815_s0 + $0xf0] sm:$0xff]   ;;  %v629_v30 = vld [vmem:[%s815_s0 + $0xf8] ss:$0 sps:$4 sm:$0x33]   ;;  %v637_v36 = vld [vmem:[%s816_s1 + $0xc] ss:$16 sps:$4 sm:$0xff]   ;;  %v485_v39 = vcombine.high %v22_v37, %v22_v37  ;;  %v484_v44 = vcombine.low %v22_v37, %v22_v37 }
   0xb   :  { %v626_v27 = vld [vmem:[%s815_s0 + $0x30] sm:$0xff]   ;;  %v630_v31 = vld [vmem:[%s815_s0 + $0x38] sm:$0xff]   ;;  %v23_v38 = vld [vmem:[%s816_s1 + $0x28] sm:$0x33]  ;;  %520 = vmatprep.mubr.msk.bf16.mxu1 %vm326_vm1, %v637_v36 }
   0xc   :  { %545 = vmatpush3.bf16.msra.mxu0 %v610_v11  ;;  %v627_v28 = vld [vmem:[%s815_s0 + $0xb0] sm:$0xff]   ;;  %v631_v32 = vld [vmem:[%s815_s0 + $0xb8] sm:$0xff]   ;;  %v487_v40 = vcombine.high %v23_v38, %v23_v38  ;;  %v87_v41 = vld [vmem:[%s817_s2] sm:$0xff]  ;;  %v486_v45 = vcombine.low %v23_v38, %v23_v38 }
   0xd   :  { %573 = vmatpush3.bf16.msra.mxu1 %v611_v12  ;;  %546 = vmatprep.subr.bf16.mxu0 %v612_v13  ;;  %v632_v33 = vld [vmem:[%s816_s1] ss:$16 sps:$4 sm:$0xff]   ;;  %v634_v34 = vld [vmem:[%s816_s1 + $0x4] ss:$16 sps:$4 sm:$0xff]   ;;  %v635_v35 = vld [vmem:[%s816_s1 + $0x8] ss:$16 sps:$4 sm:$0xff]  }
   0xe   :  { %574 = vmatprep.subr.bf16.mxu1 %v613_v14  ;;  %369 = vmatprep.mubr.bf16.mxu0 %v634_v34  ;;  %v89_v42 = vld [vmem:[%s817_s2 + $0x10] sm:$0xf]  ;;  %v88_v43 = vld [vmem:[%s817_s2 + $0x8] sm:$0xff] }
   0xf   :  { %92 = vperm.xlu0 %598, %v87_v41   ;;  %102 = vperm.xlu1 %599, %v89_v42  }
  0x10   :  { %547 = vmatpush3.bf16.msra.mxu0 %v614_v15 }
  0x11   :  { %575 = vmatpush3.bf16.msra.mxu1 %v615_v16  ;;  %548 = vmatprep.subr.bf16.mxu0 %v616_v17 }
  0x12   :  { %576 = vmatprep.subr.bf16.mxu1 %v617_v18 }
  0x13   :  { %97 = vperm.xlu0 %598, %v88_v43  }
  0x14   :  { %549 = vmatpush3.bf16.msra.mxu0 %v618_v19 }
  0x15   :  { %577 = vmatpush3.bf16.msra.mxu1 %v619_v20  ;;  %550 = vmatprep.subr.bf16.mxu0 %v620_v21  ;;  %v532_v21 = vld [vmem:[%s818_s3] sm:$0xff]  }
  0x16   :  { %578 = vmatprep.subr.bf16.mxu1 %v621_v22 }
  0x18   :  { %551 = vmatpush3.bf16.msra.mxu0 %v622_v23  ;;  %v533_v23 = vunpack.c.l.bf16 %v532_v21 }
  0x19   :  { %579 = vmatpush3.bf16.msra.mxu1 %v623_v24  ;;  %552 = vmatprep.subr.bf16.mxu0 %v624_v25  ;;  %v534_v24 = vunpack.c.h.bf16 %v532_v21 }
  0x1a   :  { %580 = vmatprep.subr.bf16.mxu1 %v625_v26 }
  0x1c   :  { %553 = vmatpush3.bf16.msra.mxu0 %v626_v27  ;;  %v453_v27 = vld [vmem:[%s818_s3 + $0x8] sm:$0x3] }
  0x1d   :  { %581 = vmatpush3.bf16.msra.mxu1 %v627_v28  ;;  %554 = vmatprep.subr.bf16.mxu0 %v628_v29 }
  0x1e   :  { %596 = vmatprep.subr.msk.bf16.mxu1 %vm333_vm0, %v629_v30 }
  0x20   :  { %555 = vmatpush3.bf16.msra.mxu0 %v630_v31  ;;  %v456_v31 = vunpack.c.l.bf16 %v453_v27 }
  0x21   :  { %583 = vmatpush3.bf16.msra.mxu1 %v631_v32 }
  0x23   :  { %370 = vmatmul.mubr.bf16.vlgmr.msra.gmra.mrb[0].mxu0 %v632_v33 }
  0x24   :  { %418 = vmatmul.mubr.bf16.vlgmr.msra.gmra.mrb[0].mxu1 %v635_v35  ;;  %377 = vmatprep.mubr.bf16.mxu0 %v485_v39 }
  0x25   :  { %521 = vmatprep.mubr.msk.bf16.mxu1 %vm326_vm1, %v487_v40 }
  0x2b   :  { %378 = vmatmul.mubr.bf16.gmra.mrb[4].mxu0 %v484_v44 }
  0x2c   :  { %426 = vmatmul.mubr.bf16.gmra.mrb[4].mxu1 %v486_v45 }
  0x8e   :  { %v93_v46 = vpop.permute.xlu0 %92  ;;  %v103_v3 = vpop.permute.xlu1 %102 }
  0x92   :  { %v98_v49 = vpop.permute.xlu0 %97 }
  0xf6   :  { %v556_v47 = vpop.f32.mrb[0].mxu0 }
  0xf7   :  { %v557_v48 = vpop.f32.mrb[1].mxu0  ;;  %v584_v50 = vpop.f32.mrb[0].mxu1 }
  0xf8   :  { %v558_v51 = vadd.f32 %v557_v48, %v556_v47  ;;  %v559_v52 = vpop.f32.mrb[2].mxu0  ;;  %v585_v53 = vpop.f32.mrb[1].mxu1 }
  0xf9   :  { %v560_v54 = vpop.f32.mrb[3].mxu0  ;;  %v586_v56 = vadd.f32 %v585_v53, %v584_v50  ;;  %v587_v57 = vpop.f32.mrb[2].mxu1 }
  0xfa   :  { %v372_v55 = vadd.f32 %v558_v51, %v93_v46  ;;  %v561_v58 = vadd.f32 %v560_v54, %v559_v52  ;;  %v588_v59 = vpop.f32.mrb[3].mxu1 }
  0xfb   :  { %v589_v61 = vadd.f32 %v588_v59, %v587_v57 }
  0xfc   :  { %v420_v60 = vadd.f32 %v586_v56, %v372_v55  ;;  %v375_v62 = vadd.f32 %v561_v58, %v98_v49 }
  0xfe   :  { %v522_v63 = vmul.f32 -1.442695, %v420_v60  ;;  %v423_v0 = vadd.f32 %v589_v61, %v375_v62  ;;  %v562_v1 = vpop.f32.mrb[4].mxu0 }
  0xff   :  { %v563_v2 = vpop.f32.mrb[5].mxu0  ;;  %v590_v5 = vpop.f32.mrb[4].mxu1 }
 0x100   :  { %642 = vpow2.f32 %v522_v63  ;;  %v523_v4 = vmul.f32 -1.442695, %v423_v0  ;;  %v564_v6 = vadd.f32 %v563_v2, %v562_v1  ;;  %v565_v7 = vpop.f32.mrb[6].mxu0  ;;  %v591_v8 = vpop.f32.mrb[5].mxu1 }
 0x101   :  { %v566_v9 = vpop.f32.mrb[7].mxu0  ;;  %v592_v10 = vadd.f32 %v591_v8, %v590_v5  ;;  %v593_v11 = vpop.f32.mrb[6].mxu1 }
 0x102   :  { %644 = vpow2.f32 %v523_v4  ;;  %v380_v12 = vadd.f32 %v564_v6, %v103_v3  ;;  %v594_v13 = vpop.f32.mrb[7].mxu1 }
 0x104   :  { %v428_v14 = vadd.f32 %v592_v10, %v380_v12 }
 0x106   :  { %v524_v15 = vmul.f32 -1.442695, %v428_v14 }
 0x108   :  { %646 = vpow2.f32 %v524_v15 }
 0x10a   :  { %v643_v16 = vpop.eup %642 }
 0x10b   :  { %v442_v17 = vadd.f32 1.0, %v643_v16 }
 0x10c   :  { %v645_v18 = vpop.eup %644 }
 0x10d   :  { %648 = vrcp.f32 %v442_v17  ;;  %v443_v19 = vadd.f32 1.0, %v645_v18 }
 0x10f   :  { %650 = vrcp.f32 %v443_v19 }
 0x112   :  { %v647_v20 = vpop.eup %646 }
 0x113   :  { %v444_v22 = vadd.f32 1.0, %v647_v20 }
 0x115   :  { %652 = vrcp.f32 %v444_v22 }
 0x117   :  { %v649_v25 = vpop.eup %648 }
 0x118   :  { %v457_v28 = vmul.f32 %v649_v25, %v533_v23 }
 0x119   :  { %v651_v26 = vpop.eup %650 }
 0x11a   :  { %v458_v29 = vmul.f32 %v651_v26, %v534_v24 }
 0x11c   :  { %v538_v30 = vpack.c.bf16 %v458_v29, %v457_v28 }
 0x11e   :  { %539 = vst [vmem:[%s819_s4] sm:$0xff] %v538_v30  }
 0x11f   :  { %v653_v32 = vpop.eup %652 }
 0x120   :  { %v459_v33 = vmul.f32 %v653_v32, %v456_v31 }
 0x122   :  { %v530_v34 = vpack.c.bf16 %v459_v33, %v459_v33 }
 0x124   :  { %475 = vst [vmem:[%s819_s4 + $0x8] sm:$0x3] %v530_v34 }

// kernel: attention_mcnn_forward.22
= control target key start
LH: loop header
LB: loop body
LE: loop exit
PB: predicated region body
PF: predicated region fallthrough
CT: control target
= control target key end

     0   :  { %v534_v1 = vmov 0   ;;  %vm306_vm0 = vcmask 1041408   ;;  %vm302_vm1 = vcmask 949248   ;;  %s675_s0 = inlined_call_operand.vmem [shape: bf16[500,128], index: 0, kind: input, shape index: {}]   ;;  %s676_s1 = inlined_call_operand.vmem [shape: bf16[10,500], index: 1, kind: input, shape index: {}]   ;;  %s677_s2 = inlined_call_operand.vmem [shape: f32[10,1], index: 2, kind: input, shape index: {}]   ;;  %s678_s3 = inlined_call_operand.vmem [shape: bf16[10,128], index: 3, kind: output, shape index: {}]  }
   0x1   :  { %v496_v0 = vld [vmem:[%s675_s0 + $0x40] sm:$0xff]   ;;  %495 = vset.pattern.permute.xlu0 %v534_v1  ;;  %v500_v5 = vld [vmem:[%s675_s0 + $0x48] sm:$0xff]   ;;  %v504_v9 = vld [vmem:[%s675_s0 + $0x50] sm:$0xff]  }
   0x2   :  { %v497_v2 = vld [vmem:[%s675_s0 + $0xc0] sm:$0xff]   ;;  %449 = vmatprep.subr.bf16.mxu0 %v496_v0  ;;  %v501_v6 = vld [vmem:[%s675_s0 + $0xc8] sm:$0xff]   ;;  %v505_v10 = vld [vmem:[%s675_s0 + $0xd0] sm:$0xff]  }
   0x3   :  { %v498_v3 = vld [vmem:[%s675_s0] sm:$0xff]   ;;  %471 = vmatprep.subr.bf16.mxu1 %v497_v2  ;;  %v502_v7 = vld [vmem:[%s675_s0 + $0x8] sm:$0xff]   ;;  %v506_v11 = vld [vmem:[%s675_s0 + $0x10] sm:$0xff]  }
   0x4   :  { %v499_v4 = vld [vmem:[%s675_s0 + $0x80] sm:$0xff]   ;;  %450 = vmatpush3.bf16.msra.mxu0 %v498_v3  ;;  %v503_v8 = vld [vmem:[%s675_s0 + $0x88] sm:$0xff]   ;;  %v507_v12 = vld [vmem:[%s675_s0 + $0x90] sm:$0xff]  }
   0x5   :  { %472 = vmatpush3.bf16.msra.mxu1 %v499_v4  ;;  %451 = vmatprep.subr.bf16.mxu0 %v500_v5  ;;  %v508_v13 = vld [vmem:[%s675_s0 + $0x58] sm:$0xff]   ;;  %v512_v17 = vld [vmem:[%s675_s0 + $0x60] sm:$0xff]   ;;  %v516_v21 = vld [vmem:[%s675_s0 + $0x68] sm:$0xff]  }
   0x6   :  { %473 = vmatprep.subr.bf16.mxu1 %v501_v6  ;;  %v509_v14 = vld [vmem:[%s675_s0 + $0xd8] sm:$0xff]   ;;  %v513_v18 = vld [vmem:[%s675_s0 + $0xe0] sm:$0xff]   ;;  %v517_v22 = vld [vmem:[%s675_s0 + $0xe8] sm:$0xff]  }
   0x7   :  { %v510_v15 = vld [vmem:[%s675_s0 + $0x18] sm:$0xff]   ;;  %v514_v19 = vld [vmem:[%s675_s0 + $0x20] sm:$0xff]   ;;  %v518_v23 = vld [vmem:[%s675_s0 + $0x28] sm:$0xff]  }
   0x8   :  { %452 = vmatpush3.bf16.msra.mxu0 %v502_v7  ;;  %v511_v16 = vld [vmem:[%s675_s0 + $0x98] sm:$0xff]   ;;  %v515_v20 = vld [vmem:[%s675_s0 + $0xa0] sm:$0xff]   ;;  %v519_v24 = vld [vmem:[%s675_s0 + $0xa8] sm:$0xff]  }
   0x9   :  { %474 = vmatpush3.bf16.msra.mxu1 %v503_v8  ;;  %453 = vmatprep.subr.bf16.mxu0 %v504_v9  ;;  %v520_v25 = vld [vmem:[%s675_s0 + $0x70] sm:$0xff]   ;;  %v524_v29 = vld [vmem:[%s675_s0 + $0x78] sm:$0xff]   ;;  %v82_v35 = vld [vmem:[%s677_s2] sm:$0xff] }
   0xa   :  { %475 = vmatprep.subr.bf16.mxu1 %v505_v10  ;;  %v521_v26 = vld [vmem:[%s675_s0 + $0xf0] sm:$0xff]   ;;  %v525_v30 = vld [vmem:[%s675_s0 + $0xf8] ss:$0 sps:$4 sm:$0x33]   ;;  %86 = vperm.xlu0 %495, %v82_v35   ;;  %v83_v38 = vld [vmem:[%s677_s2 + $0x8] sm:$0x3] }
   0xb   :  { %v522_v27 = vld [vmem:[%s675_s0 + $0x30] sm:$0xff]   ;;  %v526_v31 = vld [vmem:[%s675_s0 + $0x38] sm:$0xff]  }
   0xc   :  { %454 = vmatpush3.bf16.msra.mxu0 %v506_v11  ;;  %v523_v28 = vld [vmem:[%s675_s0 + $0xb0] sm:$0xff]   ;;  %v527_v32 = vld [vmem:[%s675_s0 + $0xb8] sm:$0xff]  }
   0xd   :  { %476 = vmatpush3.bf16.msra.mxu1 %v507_v12  ;;  %455 = vmatprep.subr.bf16.mxu0 %v508_v13  ;;  %v528_v33 = vld [vmem:[%s676_s1] ss:$16 sps:$4 sm:$0x1f]   ;;  %v530_v34 = vld [vmem:[%s676_s1 + $0x4] ss:$16 sps:$4 sm:$0x1f]  }
   0xe   :  { %477 = vmatprep.subr.bf16.mxu1 %v509_v14  ;;  %v531_v36 = vld [vmem:[%s676_s1 + $0x8] ss:$16 sps:$4 sm:$0x1f]   ;;  %v533_v37 = vld [vmem:[%s676_s1 + $0xc] ss:$16 sps:$4 sm:$0x1f]   ;;  %342 = vmatprep.mubr.bf16.mxu0 %v530_v34 }
   0xf   :  { %444 = vmatprep.mubr.msk.bf16.mxu1 %vm302_vm1, %v533_v37  ;;  %91 = vperm.xlu0 %495, %v83_v38  }
  0x10   :  { %456 = vmatpush3.bf16.msra.mxu0 %v510_v15 }
  0x11   :  { %478 = vmatpush3.bf16.msra.mxu1 %v511_v16  ;;  %457 = vmatprep.subr.bf16.mxu0 %v512_v17 }
  0x12   :  { %479 = vmatprep.subr.bf16.mxu1 %v513_v18 }
  0x14   :  { %458 = vmatpush3.bf16.msra.mxu0 %v514_v19 }
  0x15   :  { %480 = vmatpush3.bf16.msra.mxu1 %v515_v20  ;;  %459 = vmatprep.subr.bf16.mxu0 %v516_v21 }
  0x16   :  { %481 = vmatprep.subr.bf16.mxu1 %v517_v22 }
  0x18   :  { %460 = vmatpush3.bf16.msra.mxu0 %v518_v23 }
  0x19   :  { %482 = vmatpush3.bf16.msra.mxu1 %v519_v24  ;;  %461 = vmatprep.subr.bf16.mxu0 %v520_v25 }
  0x1a   :  { %483 = vmatprep.subr.bf16.mxu1 %v521_v26 }
  0x1c   :  { %462 = vmatpush3.bf16.msra.mxu0 %v522_v27 }
  0x1d   :  { %484 = vmatpush3.bf16.msra.mxu1 %v523_v28  ;;  %463 = vmatprep.subr.bf16.mxu0 %v524_v29 }
  0x1e   :  { %493 = vmatprep.subr.msk.bf16.mxu1 %vm306_vm0, %v525_v30 }
  0x20   :  { %464 = vmatpush3.bf16.msra.mxu0 %v526_v31 }
  0x21   :  { %486 = vmatpush3.bf16.msra.mxu1 %v527_v32 }
  0x23   :  { %343 = vmatmul.mubr.bf16.vlgmr.msra.gmra.mrb[0].mxu0 %v528_v33 }
  0x24   :  { %384 = vmatmul.mubr.bf16.vlgmr.msra.gmra.mrb[0].mxu1 %v531_v36 }
  0x89   :  { %v87_v39 = vpop.permute.xlu0 %86 }
  0x8e   :  { %v92_v52 = vpop.permute.xlu0 %91 }
  0xf6   :  { %v465_v40 = vpop.f32.mrb[0].mxu0 }
  0xf7   :  { %v487_v41 = vpop.f32.mrb[0].mxu1  ;;  %v466_v42 = vpop.f32.mrb[1].mxu0 }
  0xf8   :  { %v467_v43 = vadd.f32 %v466_v42, %v465_v40  ;;  %v488_v44 = vpop.f32.mrb[1].mxu1  ;;  %v468_v45 = vpop.f32.mrb[2].mxu0 }
  0xf9   :  { %v489_v46 = vadd.f32 %v488_v44, %v487_v41  ;;  %v490_v47 = vpop.f32.mrb[2].mxu1  ;;  %v469_v48 = vpop.f32.mrb[3].mxu0 }
  0xfa   :  { %v345_v49 = vadd.f32 %v467_v43, %v87_v39  ;;  %v470_v50 = vadd.f32 %v469_v48, %v468_v45  ;;  %v491_v51 = vpop.f32.mrb[3].mxu1 }
  0xfb   :  { %v492_v53 = vadd.f32 %v491_v51, %v490_v47 }
  0xfc   :  { %v386_v54 = vadd.f32 %v489_v46, %v345_v49  ;;  %v348_v55 = vadd.f32 %v470_v50, %v92_v52 }
  0xfe   :  { %v392_v56 = vmax.f32 %v386_v54, 0.0  ;;  %v389_v57 = vadd.f32 %v492_v53, %v348_v55 }
 0x100   :  { %v447_v58 = vpack.c.bf16 %v392_v56, %v392_v56  ;;  %v393_v59 = vmax.f32 %v389_v57, 0.0 }
 0x102   :  { %402 = vst [vmem:[%s678_s3] sm:$0xf] %v447_v58  ;;  %v448_v60 = vpack.c.bf16 %v393_v59, %v393_v59 }
 0x104   :  { %403 = vst [vmem:[%s678_s3 + $0x4] sm:$0x1] %v448_v60 }

// kernel: attention_mcnn_forward.23
= control target key start
LH: loop header
LB: loop body
LE: loop exit
PB: predicated region body
PF: predicated region fallthrough
CT: control target
= control target key end

     0   :  { %s771_s12 = smov 0   ;;  %s773_s13 = smov 0   ;;  %s902_s0 = inlined_call_operand.vmem [shape: bf16[4,216,128], index: 0, kind: input, shape index: {}]   ;;  %s903_s1 = inlined_call_operand.vmem [shape: bf16[48,216], index: 1, kind: input, shape index: {}]   ;;  %s904_s2 = inlined_call_operand.vmem [shape: f32[48,1], index: 2, kind: input, shape index: {}]   ;;  %s905_s3 = inlined_call_operand.vmem [shape: bf16[48,128], index: 3, kind: output, shape index: {}]  }
   0x1   :  { %s775_s14 = smov 0  }
   0x2 LB: > { %s22_s15 = sadd.s32 1, %s744_s13  ;;  %p587_p0 = scmp.ge.s32.totalorder %s748_s14, 1  ;;  %s748_s14 = sphi %s775_s14, %s13_s14   ;;  %s744_s13 = sphi %s773_s13, %s907_s13   ;;  %s740_s12 = sphi %s771_s12, %s906_s12  }
   0x3   : > { %p23_p1 = scmp.ge.s32.totalorder %s22_s15, 4  ;;  %p154_p2 = scmp.lt.s32.totalorder %s748_s14, 5 }
   0x5   : > { %s909_s15 = smov (%p23_p1, %s22_s15), 0  ;;  %p155_p3 = pnand %p587_p0, %p154_p2 }
   0x6   : > { %p180_p4 = scmp.lt.s32.totalorder (!%p155_p3), %s740_s12, 3  ;;  %vm370_vm0 = vcmask (!%p155_p3), 719872   ;;  %v750_v0 = vmov (!%p155_p3), 0   ;;  %v719_v1 = vld [vmem:[%s903_s1 + $0x4] ss:$8 sps:$4 sm:$0xff] (!%p155_p3)   ;;  %v228_v3 = vld [vmem:[%s904_s2 + $0x10] sm:$0xff] (!%p155_p3) }
   0x7   : > { %158 = sbr.rel (%p155_p3) target bundleno = 322 (0x142), region = 32  ;;  %384 = vmatprep.subr.bf16.mxu0 (!%p155_p3), %v750_v0  ;;  %647 = vmatprep.subr.bf16.mxu1 (!%p155_p3), %v750_v0  ;;  %v722_v2 = vld [vmem:[%s903_s1 + $0x14] ss:$8 sps:$4 sm:$0xff] (!%p155_p3)   ;;  %v226_v4 = vld [vmem:[%s904_s2] sm:$0xff] (!%p155_p3)  ;;  %v227_v7 = vld [vmem:[%s904_s2 + $0x8] sm:$0xff] (!%p155_p3)  ;;  %vm380_vm1 = vcmask (!%p155_p3), 1043456  }
   0x8   : > { %702 = vset.pattern.permute.xlu1 (!%p155_p3), %v750_v0  ;;  %701 = vset.pattern.permute.xlu0 (!%p155_p3), %v750_v0  ;;  %v229_v5 = vld [vmem:[%s904_s2 + $0x18] sm:$0xff] (!%p155_p3)  ;;  %v231_v9 = vld [vmem:[%s904_s2 + $0x28] sm:$0xff] (!%p155_p3)  ;;  %v230_v10 = vld [vmem:[%s904_s2 + $0x20] sm:$0xff] (!%p155_p3)  ;;  %p612_p5 = scmp.ne.s32.totalorder (!%p155_p3), %s740_s12, 0 }
   0x9   : > { %609 = vmatprep.mubr.msk.bf16.mxu0 (!%p155_p3), %vm370_vm0, %v719_v1  ;;  %610 = vmatprep.mubr.msk.bf16.mxu1 (!%p155_p3), %vm370_vm0, %v722_v2  ;;  %v717_v24 = vld [vmem:[%s903_s1] ss:$8 sps:$4 sm:$0xff] (!%p155_p3)   ;;  %v720_v25 = vld [vmem:[%s903_s1 + $0x10] ss:$8 sps:$4 sm:$0xff] (!%p155_p3)   ;;  %v723_v26 = vld [vmem:[%s903_s1 + $0x24] ss:$8 sps:$4 sm:$0xff] (!%p155_p3)  }
   0xa   : > { %244 = vperm.xlu1 (!%p155_p3), %702, %v228_v3   ;;  %234 = vperm.xlu0 (!%p155_p3), %701, %v226_v4   ;;  %v725_v27 = vld [vmem:[%s903_s1 + $0x20] ss:$8 sps:$4 sm:$0xff] (!%p155_p3)  }
   0xe   : > { %s181_s18 = scalar_select %p180_p4, %s740_s12, 3  ;;  %249 = vperm.xlu1 %702, %v229_v5   ;;  %239 = vperm.xlu0 %701, %v227_v7  }
  0x10   : > { %s675_s21 = smul.u32 108, %s181_s18 }
  0x12   : > { %s814_s28 = scalar_lea.vmem %s902_s0, %s675_s21  ;;  %259 = vperm.xlu1 %702, %v231_v9   ;;  %254 = vperm.xlu0 %701, %v230_v10  }
  0x13   : > { %v703_v6 = vld [vmem:[%s814_s28] sm:$0xff]   ;;  %v704_v8 = vld [vmem:[%s814_s28 + $0x8] sm:$0xff]   ;;  %v705_v11 = vld [vmem:[%s814_s28 + $0x10] sm:$0xff]  }
  0x14   : > { %385 = vmatpush1.bf16.msra.mxu0 %v703_v6  ;;  %661 = vmatpush1.bf16.msra.mxu1 %v703_v6  ;;  %v706_v12 = vld [vmem:[%s814_s28 + $0x18] sm:$0xff]   ;;  %v707_v13 = vld [vmem:[%s814_s28 + $0x20] sm:$0xff]   ;;  %v708_v14 = vld [vmem:[%s814_s28 + $0x28] sm:$0xff]  }
  0x15   : > { %386 = vmatprep.subr.bf16.mxu0 %v750_v0  ;;  %648 = vmatprep.subr.bf16.mxu1 %v750_v0  ;;  %v709_v15 = vld [vmem:[%s814_s28 + $0x30] sm:$0xff]   ;;  %v710_v16 = vld [vmem:[%s814_s28 + $0x38] sm:$0xff]   ;;  %v711_v17 = vld [vmem:[%s814_s28 + $0x40] sm:$0xff]  }
  0x16   : > { %v712_v18 = vld [vmem:[%s814_s28 + $0x48] sm:$0xff]   ;;  %v713_v19 = vld [vmem:[%s814_s28 + $0x50] sm:$0xff]   ;;  %v714_v20 = vld [vmem:[%s814_s28 + $0x58] sm:$0xff]  }
  0x17   : > { %v715_v21 = vld [vmem:[%s814_s28 + $0x60] sm:$0xff]   ;;  %v716_v22 = vld [vmem:[%s814_s28 + $0x68] ss:$0 sps:$4 sm:$0xff]  }
  0x18   : > { %387 = vmatpush1.bf16.msra.mxu0 %v704_v8  ;;  %662 = vmatpush1.bf16.msra.mxu1 %v704_v8  ;;  %v382_v23 = vsel %vm380_vm1, %v716_v22, 0 }
  0x19   : > { %388 = vmatprep.subr.bf16.mxu0 %v750_v0  ;;  %649 = vmatprep.subr.bf16.mxu1 %v750_v0 }
  0x1c   : > { %389 = vmatpush1.bf16.msra.mxu0 %v705_v11  ;;  %663 = vmatpush1.bf16.msra.mxu1 %v705_v11 }
  0x1d   : > { %390 = vmatprep.subr.bf16.mxu0 %v750_v0  ;;  %650 = vmatprep.subr.bf16.mxu1 %v750_v0 }
  0x20   : > { %391 = vmatpush1.bf16.msra.mxu0 %v706_v12  ;;  %664 = vmatpush1.bf16.msra.mxu1 %v706_v12 }
  0x21   : > { %392 = vmatprep.subr.bf16.mxu0 %v750_v0  ;;  %651 = vmatprep.subr.bf16.mxu1 %v750_v0 }
  0x24   : > { %393 = vmatpush1.bf16.msra.mxu0 %v707_v13  ;;  %665 = vmatpush1.bf16.msra.mxu1 %v707_v13 }
  0x25   : > { %394 = vmatprep.subr.bf16.mxu0 %v750_v0  ;;  %652 = vmatprep.subr.bf16.mxu1 %v750_v0 }
  0x28   : > { %395 = vmatpush1.bf16.msra.mxu0 %v708_v14  ;;  %666 = vmatpush1.bf16.msra.mxu1 %v708_v14 }
  0x29   : > { %396 = vmatprep.subr.bf16.mxu0 %v750_v0  ;;  %653 = vmatprep.subr.bf16.mxu1 %v750_v0 }
  0x2c   : > { %397 = vmatpush1.bf16.msra.mxu0 %v709_v15  ;;  %667 = vmatpush1.bf16.msra.mxu1 %v709_v15 }
  0x2d   : > { %398 = vmatprep.subr.bf16.mxu0 %v750_v0  ;;  %654 = vmatprep.subr.bf16.mxu1 %v750_v0 }
  0x30   : > { %399 = vmatpush1.bf16.msra.mxu0 %v710_v16  ;;  %668 = vmatpush1.bf16.msra.mxu1 %v710_v16 }
  0x31   : > { %400 = vmatprep.subr.bf16.mxu0 %v750_v0  ;;  %655 = vmatprep.subr.bf16.mxu1 %v750_v0 }
  0x34   : > { %401 = vmatpush1.bf16.msra.mxu0 %v711_v17  ;;  %669 = vmatpush1.bf16.msra.mxu1 %v711_v17 }
  0x35   : > { %402 = vmatprep.subr.bf16.mxu0 %v750_v0  ;;  %656 = vmatprep.subr.bf16.mxu1 %v750_v0 }
  0x38   : > { %403 = vmatpush1.bf16.msra.mxu0 %v712_v18  ;;  %670 = vmatpush1.bf16.msra.mxu1 %v712_v18 }
  0x39   : > { %404 = vmatprep.subr.bf16.mxu0 %v750_v0  ;;  %657 = vmatprep.subr.bf16.mxu1 %v750_v0 }
  0x3c   : > { %405 = vmatpush1.bf16.msra.mxu0 %v713_v19  ;;  %671 = vmatpush1.bf16.msra.mxu1 %v713_v19 }
  0x3d   : > { %406 = vmatprep.subr.bf16.mxu0 %v750_v0  ;;  %658 = vmatprep.subr.bf16.mxu1 %v750_v0 }
  0x40   : > { %407 = vmatpush1.bf16.msra.mxu0 %v714_v20  ;;  %672 = vmatpush1.bf16.msra.mxu1 %v714_v20 }
  0x41   : > { %408 = vmatprep.subr.bf16.mxu0 %v750_v0  ;;  %659 = vmatprep.subr.bf16.mxu1 %v750_v0 }
  0x44   : > { %409 = vmatpush1.bf16.msra.mxu0 %v715_v21  ;;  %673 = vmatpush1.bf16.msra.mxu1 %v715_v21 }
  0x45   : > { %410 = vmatprep.subr.bf16.mxu0 %v750_v0  ;;  %660 = vmatprep.subr.bf16.mxu1 %v750_v0 }
  0x48   : > { %411 = vmatpush1.bf16.msra.mxu0 %v382_v23  ;;  %674 = vmatpush1.bf16.msra.mxu1 %v382_v23 }
  0x4b   : > { %417 = vmatmul.mubr.bf16.vlgmr.msra.gmra.mrb[0].mxu0 %v717_v24  ;;  %425 = vmatmul.mubr.bf16.vlgmr.msra.gmra.mrb[0].mxu1 %v720_v25 }
  0x4c   : > { %611 = vmatprep.mubr.msk.bf16.mxu1 %vm370_vm0, %v723_v26 }
  0x53   : > { %433 = vmatmul.mubr.bf16.gmra.mrb[4].mxu1 %v725_v27 }
  0x89   : > { %v245_v28 = vpop.permute.xlu1 %244  ;;  %v235_v29 = vpop.permute.xlu0 %234 }
  0x8d   : > { %v250_v30 = vpop.permute.xlu1 %249  ;;  %v240_v31 = vpop.permute.xlu0 %239 }
  0x91   : > { %v255_v48 = vpop.permute.xlu0 %254  ;;  %v260_v52 = vpop.permute.xlu1 %259 }
 0x11e   : > { %v418_v32 = vpop.f32.mrb[0].mxu0  ;;  %v426_v33 = vpop.f32.mrb[0].mxu1 }
 0x11f   : > { %v419_v34 = vadd.f32 %v418_v32, %v235_v29  ;;  %v427_v35 = vadd.f32 %v426_v33, %v245_v28  ;;  %v420_v36 = vpop.f32.mrb[1].mxu0  ;;  %v428_v37 = vpop.f32.mrb[1].mxu1 }
 0x120   : > { %v421_v38 = vpop.f32.mrb[2].mxu0  ;;  %v429_v39 = vpop.f32.mrb[2].mxu1 }
 0x121   : > { %v441_v40 = vmax.f32 %v419_v34, 0.0  ;;  %v443_v41 = vmax.f32 %v427_v35, 0.0  ;;  %v422_v42 = vadd.f32 %v421_v38, %v240_v31  ;;  %v430_v43 = vadd.f32 %v429_v39, %v250_v30  ;;  %v431_v44 = vpop.f32.mrb[3].mxu1  ;;  %v423_v45 = vpop.f32.mrb[3].mxu0 }
 0x123   : > { %v442_v46 = vmax.f32 %v422_v42, 0.0  ;;  %v444_v47 = vmax.f32 %v430_v43, 0.0  ;;  %451 = vst [vmem:[#allocation2] sm:$0xff] (!%p612_p5), %v441_v40  ;;  %453 = vst [vmem:[#allocation2 + $0x10] sm:$0xff] (!%p612_p5), %v443_v41 }
 0x125   : > { %450 = sbr.rel (%p612_p5) target bundleno = 302 (0x12e), region = 36  ;;  %452 = vst [vmem:[#allocation2 + $0x8] sm:$0xff] (!%p612_p5), %v442_v46  ;;  %454 = vst [vmem:[#allocation2 + $0x18] sm:$0xff] (!%p612_p5), %v444_v47 }
 0x126   : > { %v434_v49 = vpop.f32.mrb[4].mxu1 }
 0x127   : > { %v435_v50 = vadd.f32 %v434_v49, %v255_v48  ;;  %v436_v51 = vpop.f32.mrb[5].mxu1 }
 0x128   : > { %v437_v53 = vpop.f32.mrb[6].mxu1 }
 0x129   : > { %v445_v54 = vmax.f32 %v435_v50, 0.0  ;;  %v438_v55 = vadd.f32 %v437_v53, %v260_v52  ;;  %v439_v56 = vpop.f32.mrb[7].mxu1 }
 0x12b   : > { %v446_v57 = vmax.f32 %v438_v55, 0.0  ;;  %455 = vst [vmem:[#allocation2 + $0x20] sm:$0xff] (!%p612_p5), %v445_v54 }
 0x12d   : > { %456 = vst [vmem:[#allocation2 + $0x28] sm:$0xff] %v446_v57 }
 0x12e PF: > { %p613_p6 = scmp.le.s32.totalorder %s740_s12, 0 }
 0x12f   : > { %v461_v58 = vld [vmem:[#allocation2] sm:$0xff] (!%p613_p6)  ;;  %v462_v59 = vld [vmem:[#allocation2 + $0x8] sm:$0xff] (!%p613_p6)  ;;  %v463_v60 = vld [vmem:[#allocation2 + $0x10] sm:$0xff] (!%p613_p6) }
 0x130   : > { %460 = sbr.rel (%p613_p6) target bundleno = 312 (0x138), region = 40  ;;  %v467_v61 = vmax.f32 (!%p613_p6), %v461_v58, %v441_v40  ;;  %v468_v62 = vmax.f32 (!%p613_p6), %v462_v59, %v442_v46  ;;  %v469_v63 = vmax.f32 (!%p613_p6), %v463_v60, %v443_v41  ;;  %v464_v0 = vld [vmem:[#allocation2 + $0x18] sm:$0xff] (!%p613_p6) }
 0x131   : > { %v470_v3 = vmax.f32 (!%p613_p6), %v464_v0, %v444_v47 }
 0x132   : > { %473 = vst [vmem:[#allocation2] sm:$0xff] (!%p613_p6), %v467_v61  ;;  %474 = vst [vmem:[#allocation2 + $0x8] sm:$0xff] (!%p613_p6), %v468_v62 }
 0x133   : > { %475 = vst [vmem:[#allocation2 + $0x10] sm:$0xff] (!%p613_p6), %v469_v63  ;;  %476 = vst [vmem:[#allocation2 + $0x18] sm:$0xff] (!%p613_p6), %v470_v3 }
 0x134   : > { %v465_v1 = vld [vmem:[#allocation2 + $0x20] sm:$0xff] (!%p613_p6)  ;;  %v466_v2 = vld [vmem:[#allocation2 + $0x28] sm:$0xff] (!%p613_p6) }
 0x135   : > { %v471_v4 = vmax.f32 (!%p613_p6), %v465_v1, %v445_v54  ;;  %v472_v5 = vmax.f32 (!%p613_p6), %v466_v2, %v446_v57 }
 0x137   : > { %477 = vst [vmem:[#allocation2 + $0x20] sm:$0xff] %v471_v4  ;;  %478 = vst [vmem:[#allocation2 + $0x28] sm:$0xff] %v472_v5 }
 0x138 PF: > { %p614_p7 = scmp.ne.s32.totalorder %s740_s12, 3 }
 0x13a   : > { %482 = sbr.rel (%p614_p7) target bundleno = 322 (0x142), region = 44  ;;  %v483_v6 = vld [vmem:[#allocation2] sm:$0xff] (!%p614_p7)  ;;  %v484_v7 = vld [vmem:[#allocation2 + $0x8] sm:$0xff] (!%p614_p7) }
 0x13b   : > { %v485_v8 = vld [vmem:[#allocation2 + $0x10] sm:$0xff] (!%p614_p7)  ;;  %v633_v9 = vpack.c.bf16 (!%p614_p7), %v484_v7, %v483_v6  ;;  %v486_v10 = vld [vmem:[#allocation2 + $0x18] sm:$0xff] (!%p614_p7) }
 0x13c   : > { %v638_v13 = vpack.c.bf16 (!%p614_p7), %v486_v10, %v485_v8 }
 0x13d   : > { %634 = vst [vmem:[%s905_s3] sm:$0xff] (!%p614_p7), %v633_v9  }
 0x13e   : > { %v487_v11 = vld [vmem:[#allocation2 + $0x20] sm:$0xff] (!%p614_p7)  ;;  %v488_v12 = vld [vmem:[#allocation2 + $0x28] sm:$0xff] (!%p614_p7)  ;;  %645 = vst [vmem:[%s905_s3 + $0x8] sm:$0xff] (!%p614_p7), %v638_v13  }
 0x13f   : > { %v643_v14 = vpack.c.bf16 (!%p614_p7), %v488_v12, %v487_v11 }
 0x141   : > { %646 = vst [vmem:[%s905_s3 + $0x10] sm:$0xff] %v643_v14  }
 0x142 PF: > { %s13_s14 = sadd.s32 1, %s748_s14   ;;  %s906_s12 = smov %s744_s13 }
 0x143   : > { %p10_p8 = scmp.ge.s32.totalorder %s13_s14, 6   ;;  %s907_s13 = smov %s909_s15 }
 0x145   :  { %12 = sbr.rel (!%p10_p8) target bundleno = 2 (0x2), region = 74 }

// kernel: attention_mcnn_forward.24
= control target key start
LH: loop header
LB: loop body
LE: loop exit
PB: predicated region body
PF: predicated region fallthrough
CT: control target
= control target key end

     0   :  { %v529_v0 = vmov 0   ;;  %vm287_vm0 = vcmask 392192   ;;  %s679_s0 = inlined_call_operand.vmem [shape: bf16[432,128], index: 0, kind: input, shape index: {}]   ;;  %s680_s1 = inlined_call_operand.vmem [shape: bf16[24,432], index: 1, kind: input, shape index: {}]   ;;  %s681_s2 = inlined_call_operand.vmem [shape: f32[24,1], index: 2, kind: input, shape index: {}]   ;;  %s682_s3 = inlined_call_operand.vmem [shape: bf16[24,128], index: 3, kind: output, shape index: {}]  }
   0x1   :  { %342 = vmatprep.subr.bf16.mxu1 %v529_v0  ;;  %v492_v1 = vld [vmem:[%s679_s0 + $0x80] sm:$0xff]   ;;  %490 = vset.pattern.permute.xlu0 %v529_v0  ;;  %v495_v4 = vld [vmem:[%s679_s0 + $0x88] sm:$0xff]   ;;  %v498_v7 = vld [vmem:[%s679_s0 + $0x90] sm:$0xff]  }
   0x2   :  { %v493_v2 = vld [vmem:[%s679_s0 + $0x40] sm:$0xff]   ;;  %491 = vset.pattern.permute.xlu1 %v529_v0  ;;  %343 = vmatpush1.bf16.msra.mxu1 %v492_v1  ;;  %v496_v5 = vld [vmem:[%s679_s0 + $0x48] sm:$0xff]   ;;  %v499_v8 = vld [vmem:[%s679_s0 + $0x50] sm:$0xff]  }
   0x3   :  { %v494_v3 = vld [vmem:[%s679_s0] sm:$0xff]   ;;  %461 = vmatprep.subr.bf16.mxu0 %v493_v2  ;;  %344 = vmatprep.subr.bf16.mxu1 %v529_v0  ;;  %v497_v6 = vld [vmem:[%s679_s0 + $0x8] sm:$0xff]   ;;  %v500_v9 = vld [vmem:[%s679_s0 + $0x10] sm:$0xff]  }
   0x4   :  { %462 = vmatpush3.bf16.msra.mxu0 %v494_v3  ;;  %v501_v10 = vld [vmem:[%s679_s0 + $0x98] sm:$0xff]   ;;  %v505_v13 = vld [vmem:[%s679_s0 + $0x60] sm:$0xff]   ;;  %v508_v16 = vld [vmem:[%s679_s0 + $0x68] sm:$0xff]  }
   0x5   :  { %463 = vmatprep.subr.bf16.mxu0 %v496_v5  ;;  %v502_v11 = vld [vmem:[%s679_s0 + $0x58] sm:$0xff]   ;;  %v504_v14 = vld [vmem:[%s679_s0 + $0xa0] sm:$0xff]   ;;  %v507_v17 = vld [vmem:[%s679_s0 + $0xa8] sm:$0xff]  }
   0x6   :  { %345 = vmatpush1.bf16.msra.mxu1 %v495_v4  ;;  %v503_v12 = vld [vmem:[%s679_s0 + $0x18] sm:$0xff]   ;;  %v506_v15 = vld [vmem:[%s679_s0 + $0x20] sm:$0xff]   ;;  %v509_v18 = vld [vmem:[%s679_s0 + $0x28] sm:$0xff]  }
   0x7   :  { %346 = vmatprep.subr.bf16.mxu1 %v529_v0  ;;  %v511_v19 = vld [vmem:[%s679_s0 + $0x70] sm:$0xff]   ;;  %v513_v22 = vld [vmem:[%s679_s0 + $0xb8] sm:$0xff]   ;;  %v19_v26 = vld [vmem:[%s680_s1 + $0x20] sm:$0xff] }
   0x8   :  { %464 = vmatpush3.bf16.msra.mxu0 %v497_v6  ;;  %v510_v20 = vld [vmem:[%s679_s0 + $0xb0] sm:$0xff]   ;;  %v514_v23 = vld [vmem:[%s679_s0 + $0x78] sm:$0xff]   ;;  %v516_v28 = vld [vmem:[%s679_s0 + $0xc0] sm:$0xff]   ;;  %v418_v32 = vcombine.high %v19_v26, %v19_v26  ;;  %v417_v36 = vcombine.low %v19_v26, %v19_v26 }
   0x9   :  { %465 = vmatprep.subr.bf16.mxu0 %v499_v8  ;;  %v512_v21 = vld [vmem:[%s679_s0 + $0x30] sm:$0xff]   ;;  %v515_v25 = vld [vmem:[%s679_s0 + $0x38] sm:$0xff]   ;;  %v75_v29 = vld [vmem:[%s681_s2] sm:$0xff] }
   0xa   :  { %347 = vmatpush1.bf16.msra.mxu1 %v498_v7  ;;  %v519_v24 = vld [vmem:[%s680_s1 + $0x4] ss:$16 sps:$4 sm:$0xff]   ;;  %v525_v27 = vld [vmem:[%s680_s1 + $0xc] ss:$16 sps:$4 sm:$0xff]   ;;  %v517_v30 = vld [vmem:[%s680_s1] ss:$16 sps:$4 sm:$0xff]   ;;  %80 = vperm.xlu0 %490, %v75_v29  }
   0xb   :  { %348 = vmatprep.subr.bf16.mxu1 %v529_v0  ;;  %326 = vmatprep.mubr.bf16.mxu0 %v519_v24  ;;  %v77_v31 = vld [vmem:[%s681_s2 + $0x10] sm:$0xff]  ;;  %v76_v33 = vld [vmem:[%s681_s2 + $0x8] sm:$0xff] }
   0xc   :  { %466 = vmatpush3.bf16.msra.mxu0 %v500_v9  ;;  %448 = vmatprep.mubr.msk.bf16.mxu1 %vm287_vm0, %v525_v27  ;;  %v520_v34 = vld [vmem:[%s679_s0 + $0xc8] sm:$0xff]   ;;  %v521_v35 = vld [vmem:[%s679_s0 + $0xd0] sm:$0xff]  }
   0xd   :  { %467 = vmatprep.subr.bf16.mxu0 %v502_v11  ;;  %90 = vperm.xlu1 %491, %v77_v31   ;;  %v20_v37 = vld [vmem:[%s680_s1 + $0x28] sm:$0xff] }
   0xe   :  { %349 = vmatpush1.bf16.msra.mxu1 %v501_v10  ;;  %85 = vperm.xlu0 %490, %v76_v33   ;;  %v523_v38 = vld [vmem:[%s680_s1 + $0x8] ss:$16 sps:$4 sm:$0xff]   ;;  %v420_v39 = vcombine.high %v20_v37, %v20_v37  ;;  %v419_v40 = vcombine.low %v20_v37, %v20_v37 }
   0xf   :  { %350 = vmatprep.subr.bf16.mxu1 %v529_v0 }
  0x10   :  { %468 = vmatpush3.bf16.msra.mxu0 %v503_v12 }
  0x11   :  { %469 = vmatprep.subr.bf16.mxu0 %v505_v13 }
  0x12   :  { %351 = vmatpush1.bf16.msra.mxu1 %v504_v14 }
  0x13   :  { %352 = vmatprep.subr.bf16.mxu1 %v529_v0 }
  0x14   :  { %470 = vmatpush3.bf16.msra.mxu0 %v506_v15 }
  0x15   :  { %471 = vmatprep.subr.bf16.mxu0 %v508_v16 }
  0x16   :  { %353 = vmatpush1.bf16.msra.mxu1 %v507_v17 }
  0x17   :  { %354 = vmatprep.subr.bf16.mxu1 %v529_v0 }
  0x18   :  { %472 = vmatpush3.bf16.msra.mxu0 %v509_v18 }
  0x19   :  { %473 = vmatprep.subr.bf16.mxu0 %v511_v19 }
  0x1a   :  { %355 = vmatpush1.bf16.msra.mxu1 %v510_v20 }
  0x1b   :  { %356 = vmatprep.subr.bf16.mxu1 %v529_v0 }
  0x1c   :  { %474 = vmatpush3.bf16.msra.mxu0 %v512_v21 }
  0x1d   :  { %475 = vmatprep.subr.bf16.mxu0 %v514_v23 }
  0x1e   :  { %357 = vmatpush1.bf16.msra.mxu1 %v513_v22 }
  0x1f   :  { %358 = vmatprep.subr.bf16.mxu1 %v529_v0 }
  0x20   :  { %476 = vmatpush3.bf16.msra.mxu0 %v515_v25 }
  0x22   :  { %359 = vmatpush1.bf16.msra.mxu1 %v516_v28 }
  0x23   :  { %327 = vmatmul.mubr.bf16.vlgmr.msra.gmra.mrb[0].mxu0 %v517_v30  ;;  %360 = vmatprep.subr.bf16.mxu1 %v529_v0 }
  0x24   :  { %334 = vmatprep.mubr.bf16.mxu0 %v418_v32 }
  0x26   :  { %361 = vmatpush1.bf16.msra.mxu1 %v520_v34 }
  0x27   :  { %362 = vmatprep.subr.bf16.mxu1 %v529_v0 }
  0x2a   :  { %363 = vmatpush1.bf16.msra.mxu1 %v521_v35 }
  0x2b   :  { %335 = vmatmul.mubr.bf16.gmra.mrb[4].mxu0 %v417_v36 }
  0x2d   :  { %375 = vmatmul.mubr.bf16.vlgmr.msra.gmra.mrb[0].mxu1 %v523_v38 }
  0x2e   :  { %449 = vmatprep.mubr.msk.bf16.mxu1 %vm287_vm0, %v420_v39 }
  0x35   :  { %383 = vmatmul.mubr.bf16.gmra.mrb[4].mxu1 %v419_v40 }
  0x89   :  { %v81_v43 = vpop.permute.xlu0 %80 }
  0x8c   :  { %v91_v60 = vpop.permute.xlu1 %90 }
  0x8d   :  { %v86_v49 = vpop.permute.xlu0 %85 }
  0xf6   :  { %v477_v41 = vpop.f32.mrb[0].mxu0 }
  0xf7   :  { %v478_v42 = vpop.f32.mrb[1].mxu0 }
  0xf8   :  { %v479_v44 = vadd.f32 %v478_v42, %v477_v41  ;;  %v480_v45 = vpop.f32.mrb[2].mxu0 }
  0xf9   :  { %v481_v46 = vpop.f32.mrb[3].mxu0 }
  0xfa   :  { %v482_v47 = vadd.f32 %v481_v46, %v480_v45  ;;  %v329_v48 = vadd.f32 %v479_v44, %v81_v43 }
  0xfc   :  { %v332_v55 = vadd.f32 %v482_v47, %v86_v49 }
  0xfe   :  { %v483_v50 = vpop.f32.mrb[4].mxu0 }
  0xff   :  { %v484_v51 = vpop.f32.mrb[5].mxu0 }
 0x100   :  { %v376_v52 = vpop.f32.mrb[0].mxu1  ;;  %v485_v53 = vadd.f32 %v484_v51, %v483_v50  ;;  %v486_v54 = vpop.f32.mrb[6].mxu0 }
 0x101   :  { %v377_v56 = vadd.f32 %v376_v52, %v329_v48  ;;  %v378_v57 = vpop.f32.mrb[1].mxu1  ;;  %v487_v58 = vpop.f32.mrb[7].mxu0 }
 0x102   :  { %v379_v59 = vpop.f32.mrb[2].mxu1  ;;  %v337_v1 = vadd.f32 %v485_v53, %v91_v60 }
 0x103   :  { %v380_v61 = vadd.f32 %v379_v59, %v332_v55  ;;  %v381_v62 = vpop.f32.mrb[3].mxu1  ;;  %v390_v63 = vmax.f32 %v377_v56, 0.0 }
 0x105   :  { %v391_v0 = vmax.f32 %v380_v61, 0.0 }
 0x107   :  { %v459_v2 = vpack.c.bf16 %v391_v0, %v390_v63 }
 0x108   :  { %v384_v3 = vpop.f32.mrb[4].mxu1 }
 0x109   :  { %v385_v4 = vadd.f32 %v384_v3, %v337_v1  ;;  %460 = vst [vmem:[%s682_s3] sm:$0xff] %v459_v2   ;;  %v386_v5 = vpop.f32.mrb[5].mxu1 }
 0x10a   :  { %v387_v6 = vpop.f32.mrb[6].mxu1 }
 0x10b   :  { %v392_v7 = vmax.f32 %v385_v4, 0.0  ;;  %v388_v8 = vpop.f32.mrb[7].mxu1 }
 0x10d   :  { %v455_v9 = vpack.c.bf16 %v392_v7, %v392_v7 }
 0x10f   :  { %408 = vst [vmem:[%s682_s3 + $0x8] sm:$0xf] %v455_v9 }

// kernel: attention_mcnn_forward.26
= control target key start
LH: loop header
LB: loop body
LE: loop exit
PB: predicated region body
PF: predicated region fallthrough
CT: control target
= control target key end

     0   :  { %v251_v0 = vmov 0   ;;  %vm146_vm0 = vcmask 719872   ;;  %vm150_vm1 = vcmask 1043456   ;;  %s332_s0 = inlined_call_operand.vmem [shape: bf16[216,128], index: 0, kind: input, shape index: {}]   ;;  %s333_s2 = inlined_call_operand.vmem [shape: f32[12,1], index: 2, kind: input, shape index: {}]   ;;  %s334_s1 = inlined_call_operand.vmem [shape: bf16[12,216], index: 1, kind: input, shape index: {}]   ;;  %s335_s3 = inlined_call_operand.vmem [shape: bf16[12,128], index: 3, kind: output, shape index: {}]  }
   0x1   :  { %154 = vmatprep.subr.bf16.mxu0 %v251_v0  ;;  %v234_v1 = vld [vmem:[%s332_s0] sm:$0xff]   ;;  %233 = vset.pattern.permute.xlu0 %v251_v0  ;;  %v235_v2 = vld [vmem:[%s332_s0 + $0x8] sm:$0xff]   ;;  %v236_v3 = vld [vmem:[%s332_s0 + $0x10] sm:$0xff]  }
   0x2   :  { %155 = vmatpush1.bf16.msra.mxu0 %v234_v1  ;;  %v237_v4 = vld [vmem:[%s332_s0 + $0x18] sm:$0xff]   ;;  %v238_v5 = vld [vmem:[%s332_s0 + $0x20] sm:$0xff]   ;;  %v45_v8 = vld [vmem:[%s333_s2 + $0x8] sm:$0xf] }
   0x3   :  { %156 = vmatprep.subr.bf16.mxu0 %v251_v0  ;;  %v44_v6 = vld [vmem:[%s333_s2] sm:$0xff]  ;;  %v239_v9 = vld [vmem:[%s332_s0 + $0x28] sm:$0xff]   ;;  %v240_v10 = vld [vmem:[%s332_s0 + $0x30] sm:$0xff]  }
   0x4   :  { %v250_v7 = vld [vmem:[%s334_s1 + $0x4] ss:$8 sps:$4 sm:$0x3f]   ;;  %48 = vperm.xlu0 %233, %v44_v6   ;;  %v241_v11 = vld [vmem:[%s332_s0 + $0x38] sm:$0xff]   ;;  %v244_v14 = vld [vmem:[%s332_s0 + $0x50] sm:$0xff]  }
   0x5   :  { %227 = vmatprep.mubr.msk.bf16.mxu0 %vm146_vm0, %v250_v7  ;;  %v242_v12 = vld [vmem:[%s332_s0 + $0x40] sm:$0xff]   ;;  %v243_v13 = vld [vmem:[%s332_s0 + $0x48] sm:$0xff]   ;;  %v245_v15 = vld [vmem:[%s332_s0 + $0x58] sm:$0xff]  }
   0x6   :  { %157 = vmatpush1.bf16.msra.mxu0 %v235_v2  ;;  %v246_v16 = vld [vmem:[%s332_s0 + $0x60] sm:$0xff]   ;;  %v247_v17 = vld [vmem:[%s332_s0 + $0x68] ss:$0 sps:$4 sm:$0xff]  }
   0x7   :  { %158 = vmatprep.subr.bf16.mxu0 %v251_v0  ;;  %v152_v18 = vsel %vm150_vm1, %v247_v17, 0  ;;  %v248_v19 = vld [vmem:[%s334_s1] ss:$8 sps:$4 sm:$0x3f]  }
   0x8   :  { %53 = vperm.xlu0 %233, %v45_v8  }
   0xa   :  { %159 = vmatpush1.bf16.msra.mxu0 %v236_v3 }
   0xb   :  { %160 = vmatprep.subr.bf16.mxu0 %v251_v0 }
   0xe   :  { %161 = vmatpush1.bf16.msra.mxu0 %v237_v4 }
   0xf   :  { %162 = vmatprep.subr.bf16.mxu0 %v251_v0 }
  0x12   :  { %163 = vmatpush1.bf16.msra.mxu0 %v238_v5 }
  0x13   :  { %164 = vmatprep.subr.bf16.mxu0 %v251_v0 }
  0x16   :  { %165 = vmatpush1.bf16.msra.mxu0 %v239_v9 }
  0x17   :  { %166 = vmatprep.subr.bf16.mxu0 %v251_v0 }
  0x1a   :  { %167 = vmatpush1.bf16.msra.mxu0 %v240_v10 }
  0x1b   :  { %168 = vmatprep.subr.bf16.mxu0 %v251_v0 }
  0x1e   :  { %169 = vmatpush1.bf16.msra.mxu0 %v241_v11 }
  0x1f   :  { %170 = vmatprep.subr.bf16.mxu0 %v251_v0 }
  0x22   :  { %171 = vmatpush1.bf16.msra.mxu0 %v242_v12 }
  0x23   :  { %172 = vmatprep.subr.bf16.mxu0 %v251_v0 }
  0x26   :  { %173 = vmatpush1.bf16.msra.mxu0 %v243_v13 }
  0x27   :  { %174 = vmatprep.subr.bf16.mxu0 %v251_v0 }
  0x2a   :  { %175 = vmatpush1.bf16.msra.mxu0 %v244_v14 }
  0x2b   :  { %176 = vmatprep.subr.bf16.mxu0 %v251_v0 }
  0x2e   :  { %177 = vmatpush1.bf16.msra.mxu0 %v245_v15 }
  0x2f   :  { %178 = vmatprep.subr.bf16.mxu0 %v251_v0 }
  0x32   :  { %179 = vmatpush1.bf16.msra.mxu0 %v246_v16 }
  0x33   :  { %180 = vmatprep.subr.bf16.mxu0 %v251_v0 }
  0x36   :  { %181 = vmatpush1.bf16.msra.mxu0 %v152_v18 }
  0x39   :  { %187 = vmatmul.mubr.bf16.vlgmr.msra.gmra.mrb[0].mxu0 %v248_v19 }
  0x83   :  { %v49_v20 = vpop.permute.xlu0 %48 }
  0x87   :  { %v54_v24 = vpop.permute.xlu0 %53 }
 0x10c   :  { %v188_v21 = vpop.f32.mrb[0].mxu0 }
 0x10d   :  { %v189_v22 = vadd.f32 %v188_v21, %v49_v20  ;;  %v190_v23 = vpop.f32.mrb[1].mxu0 }
 0x10e   :  { %v191_v25 = vpop.f32.mrb[2].mxu0 }
 0x10f   :  { %v195_v26 = vmax.f32 %v189_v22, 0.0  ;;  %v192_v27 = vadd.f32 %v191_v25, %v54_v24  ;;  %v193_v28 = vpop.f32.mrb[3].mxu0 }
 0x111   :  { %v230_v29 = vpack.c.bf16 %v195_v26, %v195_v26  ;;  %v196_v30 = vmax.f32 %v192_v27, 0.0 }
 0x113   :  { %205 = vst [vmem:[%s335_s3] sm:$0xf] %v230_v29  ;;  %v231_v31 = vpack.c.bf16 %v196_v30, %v196_v30 }
 0x115   :  { %206 = vst [vmem:[%s335_s3 + $0x4] sm:$0x3] %v231_v31 }

// kernel: attention_mcnn_forward.25
= control target key start
LH: loop header
LB: loop body
LE: loop exit
PB: predicated region body
PF: predicated region fallthrough
CT: control target
= control target key end

     0   :  { %v368_v0 = vmov 0   ;;  %vm162_vm0 = vcmask 719872   ;;  %vm169_vm1 = vcmask 1043456   ;;  %s498_s0 = inlined_call_operand.vmem [shape: bf16[216,128], index: 0, kind: input, shape index: {}]   ;;  %s499_s1 = inlined_call_operand.vmem [shape: bf16[24,216], index: 1, kind: input, shape index: {}]   ;;  %s500_s2 = inlined_call_operand.vmem [shape: f32[24,1], index: 2, kind: input, shape index: {}]   ;;  %s501_s3 = inlined_call_operand.vmem [shape: bf16[24,128], index: 3, kind: input, shape index: {}]   ;;  %s502_s4 = inlined_call_operand.vmem [shape: bf16[24,128], index: 4, kind: output, shape index: {}]  }
   0x1   :  { %173 = vmatprep.subr.bf16.mxu0 %v368_v0  ;;  %306 = vmatprep.subr.bf16.mxu1 %v368_v0  ;;  %v337_v1 = vld [vmem:[%s498_s0] sm:$0xff]   ;;  %v338_v2 = vld [vmem:[%s498_s0 + $0x8] sm:$0xff]   ;;  %v339_v3 = vld [vmem:[%s498_s0 + $0x10] sm:$0xff]  }
   0x2   :  { %335 = vset.pattern.permute.xlu0 %v368_v0  ;;  %336 = vset.pattern.permute.xlu1 %v368_v0  ;;  %v340_v4 = vld [vmem:[%s498_s0 + $0x18] sm:$0xff]   ;;  %v341_v5 = vld [vmem:[%s498_s0 + $0x20] sm:$0xff]   ;;  %v20_v7 = vld [vmem:[%s499_s1 + $0x10] sm:$0xff] }
   0x3   :  { %174 = vmatpush1.bf16.msra.mxu0 %v337_v1  ;;  %320 = vmatpush1.bf16.msra.mxu1 %v337_v1  ;;  %v353_v6 = vld [vmem:[%s499_s1 + $0x4] ss:$8 sps:$4 sm:$0xff]   ;;  %v271_v9 = vcombine.high %v20_v7, %v20_v7  ;;  %v50_v10 = vld [vmem:[%s500_s2 + $0x10] sm:$0xff]  ;;  %v344_v14 = vld [vmem:[%s498_s0 + $0x38] sm:$0xff]   ;;  %v270_v23 = vcombine.low %v20_v7, %v20_v7 }
   0x4   :  { %175 = vmatprep.subr.bf16.mxu0 %v368_v0  ;;  %307 = vmatprep.subr.bf16.mxu1 %v368_v0  ;;  %v48_v8 = vld [vmem:[%s500_s2] sm:$0xff]  ;;  %v49_v11 = vld [vmem:[%s500_s2 + $0x8] sm:$0xff]  ;;  %v343_v13 = vld [vmem:[%s498_s0 + $0x30] sm:$0xff]  }
   0x5   :  { %286 = vmatprep.mubr.msk.bf16.mxu0 %vm162_vm0, %v353_v6  ;;  %53 = vperm.xlu0 %335, %v48_v8   ;;  %v342_v12 = vld [vmem:[%s498_s0 + $0x28] sm:$0xff]   ;;  %v345_v15 = vld [vmem:[%s498_s0 + $0x40] sm:$0xff]   ;;  %v347_v17 = vld [vmem:[%s498_s0 + $0x50] sm:$0xff]  }
   0x6   :  { %63 = vperm.xlu1 %336, %v50_v10   ;;  %287 = vmatprep.mubr.msk.bf16.mxu1 %vm162_vm0, %v271_v9  ;;  %v346_v16 = vld [vmem:[%s498_s0 + $0x48] sm:$0xff]   ;;  %v348_v18 = vld [vmem:[%s498_s0 + $0x58] sm:$0xff]   ;;  %v349_v19 = vld [vmem:[%s498_s0 + $0x60] sm:$0xff]  }
   0x7   :  { %176 = vmatpush1.bf16.msra.mxu0 %v338_v2  ;;  %321 = vmatpush1.bf16.msra.mxu1 %v338_v2  ;;  %v350_v20 = vld [vmem:[%s498_s0 + $0x68] ss:$0 sps:$4 sm:$0xff]   ;;  %v298_v48 = vld [vmem:[%s501_s3] sm:$0xff]  }
   0x8   :  { %177 = vmatprep.subr.bf16.mxu0 %v368_v0  ;;  %308 = vmatprep.subr.bf16.mxu1 %v368_v0  ;;  %v171_v21 = vsel %vm169_vm1, %v350_v20, 0  ;;  %v351_v22 = vld [vmem:[%s499_s1] ss:$8 sps:$4 sm:$0xff]   ;;  %v299_v50 = vunpack.c.l.bf16 %v298_v48  ;;  %v300_v51 = vunpack.c.h.bf16 %v298_v48 }
   0x9   :  { %58 = vperm.xlu0 %335, %v49_v11   ;;  %v241_v47 = vld [vmem:[%s501_s3 + $0x8] sm:$0xf] }
   0xa   :  { %v244_v49 = vunpack.c.l.bf16 %v241_v47 }
   0xb   :  { %178 = vmatpush1.bf16.msra.mxu0 %v339_v3  ;;  %322 = vmatpush1.bf16.msra.mxu1 %v339_v3 }
   0xc   :  { %179 = vmatprep.subr.bf16.mxu0 %v368_v0  ;;  %309 = vmatprep.subr.bf16.mxu1 %v368_v0 }
   0xf   :  { %180 = vmatpush1.bf16.msra.mxu0 %v340_v4  ;;  %323 = vmatpush1.bf16.msra.mxu1 %v340_v4 }
  0x10   :  { %181 = vmatprep.subr.bf16.mxu0 %v368_v0  ;;  %310 = vmatprep.subr.bf16.mxu1 %v368_v0 }
  0x13   :  { %182 = vmatpush1.bf16.msra.mxu0 %v341_v5  ;;  %324 = vmatpush1.bf16.msra.mxu1 %v341_v5 }
  0x14   :  { %183 = vmatprep.subr.bf16.mxu0 %v368_v0  ;;  %311 = vmatprep.subr.bf16.mxu1 %v368_v0 }
  0x17   :  { %184 = vmatpush1.bf16.msra.mxu0 %v342_v12  ;;  %325 = vmatpush1.bf16.msra.mxu1 %v342_v12 }
  0x18   :  { %185 = vmatprep.subr.bf16.mxu0 %v368_v0  ;;  %312 = vmatprep.subr.bf16.mxu1 %v368_v0 }
  0x1b   :  { %186 = vmatpush1.bf16.msra.mxu0 %v343_v13  ;;  %326 = vmatpush1.bf16.msra.mxu1 %v343_v13 }
  0x1c   :  { %187 = vmatprep.subr.bf16.mxu0 %v368_v0  ;;  %313 = vmatprep.subr.bf16.mxu1 %v368_v0 }
  0x1f   :  { %188 = vmatpush1.bf16.msra.mxu0 %v344_v14  ;;  %327 = vmatpush1.bf16.msra.mxu1 %v344_v14 }
  0x20   :  { %189 = vmatprep.subr.bf16.mxu0 %v368_v0  ;;  %314 = vmatprep.subr.bf16.mxu1 %v368_v0 }
  0x23   :  { %190 = vmatpush1.bf16.msra.mxu0 %v345_v15  ;;  %328 = vmatpush1.bf16.msra.mxu1 %v345_v15 }
  0x24   :  { %191 = vmatprep.subr.bf16.mxu0 %v368_v0  ;;  %315 = vmatprep.subr.bf16.mxu1 %v368_v0 }
  0x27   :  { %192 = vmatpush1.bf16.msra.mxu0 %v346_v16  ;;  %329 = vmatpush1.bf16.msra.mxu1 %v346_v16 }
  0x28   :  { %193 = vmatprep.subr.bf16.mxu0 %v368_v0  ;;  %316 = vmatprep.subr.bf16.mxu1 %v368_v0 }
  0x2b   :  { %194 = vmatpush1.bf16.msra.mxu0 %v347_v17  ;;  %330 = vmatpush1.bf16.msra.mxu1 %v347_v17 }
  0x2c   :  { %195 = vmatprep.subr.bf16.mxu0 %v368_v0  ;;  %317 = vmatprep.subr.bf16.mxu1 %v368_v0 }
  0x2f   :  { %196 = vmatpush1.bf16.msra.mxu0 %v348_v18  ;;  %331 = vmatpush1.bf16.msra.mxu1 %v348_v18 }
  0x30   :  { %197 = vmatprep.subr.bf16.mxu0 %v368_v0  ;;  %318 = vmatprep.subr.bf16.mxu1 %v368_v0 }
  0x33   :  { %198 = vmatpush1.bf16.msra.mxu0 %v349_v19  ;;  %332 = vmatpush1.bf16.msra.mxu1 %v349_v19 }
  0x34   :  { %199 = vmatprep.subr.bf16.mxu0 %v368_v0  ;;  %319 = vmatprep.subr.bf16.mxu1 %v368_v0 }
  0x37   :  { %200 = vmatpush1.bf16.msra.mxu0 %v171_v21  ;;  %333 = vmatpush1.bf16.msra.mxu1 %v171_v21 }
  0x3a   :  { %206 = vmatmul.mubr.bf16.vlgmr.msra.gmra.mrb[0].mxu0 %v351_v22  ;;  %214 = vmatmul.mubr.bf16.vlgmr.msra.gmra.mrb[0].mxu1 %v270_v23 }
  0x84   :  { %v54_v24 = vpop.permute.xlu0 %53 }
  0x85   :  { %v64_v25 = vpop.permute.xlu1 %63 }
  0x88   :  { %v59_v26 = vpop.permute.xlu0 %58 }
 0x10d   :  { %v207_v27 = vpop.f32.mrb[0].mxu0  ;;  %v215_v28 = vpop.f32.mrb[0].mxu1 }
 0x10e   :  { %v208_v29 = vadd.f32 %v207_v27, %v54_v24  ;;  %v209_v30 = vpop.f32.mrb[1].mxu0  ;;  %v217_v31 = vpop.f32.mrb[1].mxu1  ;;  %v216_v32 = vadd.f32 %v215_v28, %v64_v25 }
 0x10f   :  { %v210_v33 = vpop.f32.mrb[2].mxu0  ;;  %v218_v34 = vpop.f32.mrb[2].mxu1 }
 0x110   :  { %v288_v35 = vmul.f32 -1.442695, %v208_v29  ;;  %v290_v36 = vmul.f32 -1.442695, %v216_v32  ;;  %v211_v37 = vadd.f32 %v210_v33, %v59_v26  ;;  %v212_v38 = vpop.f32.mrb[3].mxu0  ;;  %v219_v39 = vpop.f32.mrb[3].mxu1 }
 0x112   :  { %356 = vpow2.f32 %v288_v35  ;;  %v289_v40 = vmul.f32 -1.442695, %v211_v37 }
 0x113   :  { %358 = vpow2.f32 %v290_v36 }
 0x114   :  { %360 = vpow2.f32 %v289_v40 }
 0x11c   :  { %v357_v41 = vpop.eup %356 }
 0x11d   :  { %v359_v42 = vpop.eup %358  ;;  %v230_v43 = vadd.f32 1.0, %v357_v41 }
 0x11e   :  { %v361_v44 = vpop.eup %360  ;;  %v232_v45 = vadd.f32 1.0, %v359_v42 }
 0x11f   :  { %362 = vrcp.f32 %v230_v43  ;;  %v231_v46 = vadd.f32 1.0, %v361_v44 }
 0x120   :  { %364 = vrcp.f32 %v232_v45 }
 0x121   :  { %366 = vrcp.f32 %v231_v46 }
 0x129   :  { %v363_v52 = vpop.eup %362 }
 0x12a   :  { %v365_v53 = vpop.eup %364  ;;  %v245_v56 = vmul.f32 %v363_v52, %v299_v50 }
 0x12b   :  { %v367_v54 = vpop.eup %366  ;;  %v247_v55 = vmul.f32 %v365_v53, %v244_v49 }
 0x12c   :  { %v246_v57 = vmul.f32 %v367_v54, %v300_v51 }
 0x12d   :  { %v296_v58 = vpack.c.bf16 %v247_v55, %v247_v55 }
 0x12e   :  { %v304_v59 = vpack.c.bf16 %v246_v57, %v245_v56 }
 0x12f   :  { %263 = vst [vmem:[%s502_s4 + $0x8] sm:$0xf] %v296_v58 }
 0x130   :  { %305 = vst [vmem:[%s502_s4] sm:$0xff] %v304_v59  }

// kernel: attention_mcnn_forward.27
= control target key start
LH: loop header
LB: loop body
LE: loop exit
PB: predicated region body
PF: predicated region fallthrough
CT: control target
= control target key end

     0   :  { %vm47_vm0 = vcmask 1046528   ;;  %v116_v0 = vmov 0.0   ;;  %vm117_vm1 = vmmov 0   ;;  %v118_v4 = vmov 0   ;;  %s154_s0 = inlined_call_operand.vmem [shape: bf16[30,128], index: 0, kind: input, shape index: {}]   ;;  %s155_s2 = inlined_call_operand.<no memory space> [shape: f32[1,1], index: 2, kind: input, shape index: {}]   ;;  %s156_s1 = inlined_call_operand.vmem [shape: bf16[1,30], index: 1, kind: input, shape index: {}]   ;;  %s157_s3 = inlined_call_operand.vmem [shape: f32[1,128], index: 3, kind: output, shape index: {}]  }
   0x1   :  { %102 = vmatprep.subr.bf16.mxu0 %v116_v0  ;;  %v114_v1 = vld [vmem:[%s154_s0] sm:$0xff]   ;;  %106 = vmatprep.mubr.msk.bf16.mxu0 %vm117_vm1, %v116_v0  ;;  %v8_v2 = vstv %s155_s2  ;;  %v115_v3 = vld [vmem:[%s154_s0 + $0x8] sm:$0x7f]   ;;  %vm43_vm2 = vcmask 244736   ;;  %v28_v8 = vlaneseq }
   0x2   :  { %113 = vset.pattern.permute.xlu0 %v118_v4  ;;  %9 = vst [vmem:[#allocation2] sm:$0x1] %v8_v2  ;;  %103 = vmatpush3.bf16.msra.mxu0 %v114_v1  ;;  %v49_v5 = vsel %vm47_vm0, %v115_v3, 0  ;;  %v17_v6 = vld [vmem:[%s156_s1] sm:$0x1] }
   0x3   :  { %104 = vmatprep.subr.bf16.mxu0 %v116_v0  ;;  %v29_v9 = vshrl.u32 %v28_v8, 7 }
   0x5   :  { %v30_v10 = vsub.s32 0, %v29_v9 }
   0x6   :  { %105 = vmatpush3.bf16.msra.mxu0 %v49_v5 }
   0x9   :  { %v22_v7 = vld [vmem:[#allocation2] sm:$0x1]  ;;  %107 = vmatmul.mubr.msk.bf16.vlgmr.msra.gmra.mrb[0].mxu0 %vm43_vm2, %v17_v6 }
   0xa   :  { %25 = vperm.xlu0 %113, %v22_v7  }
  0x89   :  { %v26_v11 = vpop.permute.xlu0 %25 }
  0x8a   :  { %v31_v12 = vrot.slane %v26_v11, %v30_v10 }
  0xdc   :  { %v85_v13 = vpop.f32.mrb[0].mxu0 }
  0xdd   :  { %v86_v14 = vadd.f32 %v85_v13, %v31_v12  ;;  %v108_v15 = vpop.f32.mrb[1].mxu0 }
  0xde   :  { %v88_v16 = vpop.f32.mrb[2].mxu0 }
  0xdf   :  { %91 = vst [vmem:[%s157_s3] sm:$0x1] %v86_v14  ;;  %v109_v17 = vpop.f32.mrb[3].mxu0 }

</bundles_post_ra>
